<compile_context>
chip_gen: v7x
topology: tpu7x:2x2x1
jax: 0.10.0
libtpu: 0.0.40
codegen_flags: <defaults>
</compile_context>

<pallas_src>
import jax
import jax.numpy as jnp
from jax.experimental import pallas as pl
from jax.experimental.pallas import tpu as pltpu

EPS = 1e-5          # BatchNorm2d default eps
SLOPE = 0.2         # LeakyReLU negative slope
LANE = 128          # TPU lane width
VMEM_LIMIT = 32 * 1024 * 1024     # explicit scoped-VMEM limit (safe on v5e/v6e/v7x)
VMEM_BUDGET = 24 * 1024 * 1024    # planning budget with headroom below the limit


def _round_up(v, m):
    return (v + m - 1) // m * m


def _pick_tile_h(H, W, Cx, Cp, budget=VMEM_BUDGET):
    """Largest row tile dividing H that keeps (8,128) alignment and fits the VMEM budget."""
    def fits(t):
        inp = 2 * (t + 2) * (W + 2) * Cx * 2     # bf16 halo window, double-buffered
        out = 2 * t * W * Cp * 4                 # f32 output block, double-buffered
        wgt = 2 * 9 * Cx * Cp * 2                # resident bf16 weights (conservative x2)
        sts = 2 * 2 * Cp * 4                     # per-tile stats
        return inp + out + wgt + sts <= budget

    cands = [t for t in range(H, 0, -1) if H % t == 0]
    for t in cands:                              # prefer sublane-aligned tiles
        if (t % 8 == 0 or t == H) and (t * W) % 8 == 0 and fits(t):
            return t
    for t in cands:                              # fallback: any aligned divisor that fits
        if (t * W) % 8 == 0 and fits(t):
            return t
    return H


def _pick_row_tile(rows, cp, budget_bytes=2 * 1024 * 1024):
    """Largest row tile dividing `rows` under ~budget bytes/block with (8,128) alignment."""
    cap = max(8, min(rows, budget_bytes // (cp * 4)))
    t = cap
    while t > 1:
        if rows % t == 0 and (t % 8 == 0 or t == rows):
            return t
        t -= 1
    return rows


# --------------------------- Pass A: conv + partial BN stats ---------------------------
def _conv_stats_kernel(xwin_ref, w_ref, out_ref, stats_ref):
    """3x3 conv on one reflect-padded row tile + per-tile BatchNorm partial stats.

    xwin_ref : (TILE_H+2, W+2, Cin)  bf16  halo window (reflection already at image borders)
    w_ref    : (9, Cin, Cp)          bf16  conv taps, tap index = dy*3 + dx
    out_ref  : (TILE_H*W, Cp)        f32   pre-BN activations (lane-dense block); also the
                                           f32 accumulator for the 9 MXU matmuls
    stats_ref: (2, Cp)               f32   row 0: sum, row 1: sum of squares
    """
    tile_hp, wp, cin = xwin_ref.shape
    tile_h, w = tile_hp - 2, wp - 2

    out_ref[...] = jnp.zeros_like(out_ref)
    # dx outer so the (costlier) shift along W happens 3x, not 9x; the dy shift is along
    # the major axis and is cheap.
    for dx in range(3):
        xs = xwin_ref[:, dx:dx + w, :]                         # (TILE_H+2, W, Cin)
        for dy in range(3):
            # (TILE_H, W, Cin) -> (TILE_H*W, Cin): lane dim (Cin) untouched -> free reshape.
            patch = xs[dy:dy + tile_h].reshape(tile_h * w, cin)
            out_ref[...] += jnp.dot(patch, w_ref[dy * 3 + dx],
                                    preferred_element_type=jnp.float32)

    acc = out_ref[...]
    s = jnp.sum(acc, axis=0, keepdims=True)                    # (1, Cp)
    ss = jnp.sum(acc * acc, axis=0, keepdims=True)             # (1, Cp)
    stats_ref[...] = jnp.concatenate([s, ss], axis=0)          # (2, Cp)


# --------------------------- Pass B: BatchNorm + LeakyReLU ---------------------------
def _bn_lrelu_kernel(x_ref, a_ref, b_ref, o_ref):
    """y = LeakyReLU(a*x + b) with per-channel a, b; lane-dense elementwise pass."""
    y = x_ref[...] * a_ref[...] + b_ref[...]
    o_ref[...] = jnp.where(y >= 0, y, SLOPE * y)


def conv_block(x_nhwc, w_oihw):
    """One ConvBlock: reflect-pad 3x3 conv (bias=False) + BatchNorm2d (batch stats) + LeakyReLU.

    x_nhwc : (N, H, W, Cx) f32.  Cx may exceed the weight's in_ch (lane padding from a
             previous block); the extra channels are zero and meet zero weight rows -> exact.
    w_oihw : (Cout, Cin, 3, 3) f32.
    Returns (N, H, W, Cp) f32 with Cp = round_up(Cout, 128); channels [Cout:] are zero.
    """
    N, H, W, Cx = x_nhwc.shape
    Cout, Cw = w_oihw.shape[0], w_oihw.shape[1]
    assert Cx >= Cw, (Cx, Cw)
    Cp = _round_up(Cout, LANE)

    tile_h = _pick_tile_h(H, W, Cx, Cp)
    assert H % tile_h == 0
    nT = H // tile_h
    G = N * nT                          # grid size: batch x row-tiles

    # Weights: (Cout, Cin, 3, 3) -> (3,3,Cin,Cout) -> (9, Cin, Cout); zero-pad the in-channel
    # axis up to Cx (matching lane-padded activations) and the out-channel axis up to Cp.
    w = jnp.transpose(w_oihw, (2, 3, 1, 0)).reshape(9, Cw, Cout)
    w = jnp.pad(w, ((0, 0), (0, Cx - Cw), (0, Cp - Cout))).astype(jnp.bfloat16)

    # Reflect padding at *image* borders + bf16 cast + overlapping 1-row-halo row windows.
    # The pad/cast/gather fuse into one XLA producer; only the small halo rows are duplicated.
    xpad = jnp.pad(x_nhwc, ((0, 0), (1, 1), (1, 1), (0, 0)),
                   mode="reflect").astype(jnp.bfloat16)
    rows = jnp.arange(nT)[:, None] * tile_h + jnp.arange(tile_h + 2)[None, :]
    xwin = xpad[:, rows].reshape(G, tile_h + 2, W + 2, Cx)     # (G, TILE_H+2, W+2, Cx)

    n_rows = N * H * W
    conv_out, stats = pl.pallas_call(
        _conv_stats_kernel,
        out_shape=(jax.ShapeDtypeStruct((n_rows, Cp), jnp.float32),
                   jax.ShapeDtypeStruct((G, 2, Cp), jnp.float32)),
        grid=(G,),
        in_specs=[
            pl.BlockSpec((None, tile_h + 2, W + 2, Cx), lambda g: (g, 0, 0, 0)),
            pl.BlockSpec((9, Cx, Cp), lambda g: (0, 0, 0)),      # weights stay resident
        ],
        out_specs=(
            pl.BlockSpec((tile_h * W, Cp), lambda g: (g, 0)),    # lane-dense activation tile
            pl.BlockSpec((None, 2, Cp), lambda g: (g, 0, 0)),    # per-tile partial stats
        ),
        compiler_params=pltpu.CompilerParams(
            dimension_semantics=("parallel",),   # disjoint tiles -> both TCs on v7x
            vmem_limit_bytes=VMEM_LIMIT),
    )(xwin, w)

    # Combine the tiny per-tile partial stats and fold BatchNorm into y = a*x + b.
    cnt = jnp.float32(n_rows)
    mean = jnp.sum(stats[:, 0, :], axis=0) / cnt
    var = jnp.maximum(jnp.sum(stats[:, 1, :], axis=0) / cnt - mean * mean, 0.0)
    scale = jax.lax.rsqrt(var + EPS)             # gamma = 1, beta = 0
    a = scale[None, :]                           # (1, Cp)
    b = (-mean * scale)[None, :]                 # (1, Cp)

    tile_r = _pick_row_tile(n_rows, Cp)
    y2d = pl.pallas_call(
        _bn_lrelu_kernel,
        out_shape=jax.ShapeDtypeStruct((n_rows, Cp), jnp.float32),
        grid=(n_rows // tile_r,),
        in_specs=[
            pl.BlockSpec((tile_r, Cp), lambda i: (i, 0)),
            pl.BlockSpec((1, Cp), lambda i: (0, 0)),
            pl.BlockSpec((1, Cp), lambda i: (0, 0)),
        ],
        out_specs=pl.BlockSpec((tile_r, Cp), lambda i: (i, 0)),
        compiler_params=pltpu.CompilerParams(
            dimension_semantics=("parallel",),
            vmem_limit_bytes=VMEM_LIMIT),
    )(conv_out, a, b)

    return y2d.reshape(N, H, W, Cp)              # free reshape (row-major)


def double_conv_block(x_nchw, w1_oihw, w2_oihw):
    """DoubleConvBlock forward. Input/output in PyTorch NCHW layout."""
    x = jnp.transpose(x_nchw, (0, 2, 3, 1))      # NCHW -> NHWC
    y = conv_block(x, w1_oihw)                   # stays lane-padded between the two blocks
    y = conv_block(y, w2_oihw)
    y = y[..., : w2_oihw.shape[0]]               # drop the lane padding
    return jnp.transpose(y, (0, 3, 1, 2))        # NHWC -> NCHW


# ---------------- pure-JAX reference (same bf16 matmul precision) ----------------
def _conv_block_ref(x_nhwc, w_oihw):
    xpad = jnp.pad(x_nhwc, ((0, 0), (1, 1), (1, 1), (0, 0)), mode="reflect")
    y = jax.lax.conv_general_dilated(
        xpad.astype(jnp.bfloat16),
        jnp.transpose(w_oihw, (2, 3, 1, 0)).astype(jnp.bfloat16),
        window_strides=(1, 1), padding="VALID",
        dimension_numbers=("NHWC", "HWIO", "NHWC"),
        preferred_element_type=jnp.float32)
    mean = jnp.mean(y, axis=(0, 1, 2), keepdims=True)
    var = jnp.mean((y - mean) ** 2, axis=(0, 1, 2), keepdims=True)
    yn = (y - mean) * jax.lax.rsqrt(var + EPS)
    return jnp.where(yn >= 0, yn, SLOPE * yn)


def _double_conv_ref(x_nchw, w1, w2):
    x = jnp.transpose(x_nchw, (0, 2, 3, 1))
    y = _conv_block_ref(x, w1)
    y = _conv_block_ref(y, w2)
    return jnp.transpose(y, (0, 3, 1, 2))


if __name__ == "__main__":
    key = jax.random.PRNGKey(0)
    k_x, k_w1, k_w2 = jax.random.split(key, 3)

    N, in_ch, out_ch, HW = 2, 4, 8, 16

    x = jax.random.normal(k_x, (N, in_ch, HW, HW), dtype=jnp.float32)            # NCHW
    # Conv2d weights (bias=False): (out_ch, in_ch, 3, 3), deterministic init.
    w1 = 0.1 * jax.random.normal(k_w1, (out_ch, in_ch, 3, 3), dtype=jnp.float32)
    w2 = 0.1 * jax.random.normal(k_w2, (out_ch, out_ch, 3, 3), dtype=jnp.float32)

    out = jax.block_until_ready(jax.jit(double_conv_block)(x, w1, w2))
    ref = jax.block_until_ready(_double_conv_ref(x, w1, w2))

    assert out.shape == (N, out_ch, HW, HW), out.shape
    err = float(jnp.max(jnp.abs(out - ref)))
    assert err < 5e-3, err

    # TODO(synk): BatchNorm running-stat (momentum buffer) updates are stateful training-side
    # bookkeeping and are not modeled; the forward uses batch statistics exactly as PyTorch
    # does in training mode.
    print("KERNEL_OK")
</pallas_src>

<mosaic_0001>
module attributes {stable_mosaic.version = 11 : i64} {
  func.func @_conv_stats_kernel(%arg0: i32, %arg1: memref<1x18x18x4xbf16, #tpu.memory_space<vmem>>, %arg2: memref<9x4x128xbf16, #tpu.memory_space<vmem>>, %arg3: memref<256x128xf32, #tpu.memory_space<vmem>>, %arg4: memref<1x2x128xf32, #tpu.memory_space<vmem>>) attributes {dimension_semantics = [#tpu.dimension_semantics<parallel>], iteration_bounds = array<i64: 2>, scalar_prefetch = 0 : i64, scratch_operands = 0 : i64, tpu.core_type = #tpu.core_type<tc>, window_params = [{transform_indices = @transform_0, window_bounds = array<i64: 1, 18, 18, 4>}, {pipeline_mode = #tpu.pipeline_mode<synchronous>, transform_indices = @transform_1, window_bounds = array<i64: 9, 4, 128>}, {transform_indices = @transform_2, window_bounds = array<i64: 256, 128>}, {transform_indices = @transform_3, window_bounds = array<i64: 1, 2, 128>}]} {
    %cst = arith.constant 0.000000e+00 : f32
    %0 = vector.broadcast %cst : f32 to vector<256x128xf32>
    %c0 = arith.constant 0 : index
    %c0_0 = arith.constant 0 : index
    %1 = vector.load %arg3[%c0, %c0_0] : memref<256x128xf32, #tpu.memory_space<vmem>>, vector<256x128xf32>
    tpu.vector_store %arg3[%c0, %c0_0], %0 {strides = array<i32>} : memref<256x128xf32, #tpu.memory_space<vmem>>, vector<256x128xf32>,
    %c0_1 = arith.constant 0 : index
    %c0_2 = arith.constant 0 : index
    %c0_3 = arith.constant 0 : index
    %c0_4 = arith.constant 0 : index
    %2 = vector.load %arg1[%c0_1, %c0_2, %c0_3, %c0_4] : memref<1x18x18x4xbf16, #tpu.memory_space<vmem>>, vector<1x18x16x4xbf16>
    %3 = vector.shape_cast %2 : vector<1x18x16x4xbf16> to vector<18x16x4xbf16>
    %4 = vector.extract_strided_slice %3 {offsets = [0, 0, 0], sizes = [16, 16, 4], strides = [1, 1, 1]} : vector<18x16x4xbf16> to vector<16x16x4xbf16>
    %5 = vector.shape_cast %4 : vector<16x16x4xbf16> to vector<256x4xbf16>
    %c0_5 = arith.constant 0 : index
    %c0_6 = arith.constant 0 : index
    %6 = vector.load %arg3[%c0_5, %c0_6] : memref<256x128xf32, #tpu.memory_space<vmem>>, vector<256x128xf32>
    %c0_7 = arith.constant 0 : index
    %c0_8 = arith.constant 0 : index
    %c0_9 = arith.constant 0 : index
    %7 = vector.load %arg2[%c0_7, %c0_8, %c0_9] : memref<9x4x128xbf16, #tpu.memory_space<vmem>>, vector<1x4x128xbf16>
    %8 = vector.shape_cast %7 : vector<1x4x128xbf16> to vector<4x128xbf16>
    %cst_10 = arith.constant dense<0.000000e+00> : vector<256x128xf32>
    %9 = tpu.matmul %5, %8, %cst_10 {dimension_numbers = #tpu.dot_dimension_numbers<[1], [0], [0], [1], [0, 0, 1, 1], [], []>} : vector<256x4xbf16>, vector<4x128xbf16>, vector<256x128xf32> -> vector<256x128xf32>
    %10 = arith.addf %6, %9 : vector<256x128xf32>
    %c0_11 = arith.constant 0 : index
    %c0_12 = arith.constant 0 : index
    %11 = vector.load %arg3[%c0_11, %c0_12] : memref<256x128xf32, #tpu.memory_space<vmem>>, vector<256x128xf32>
    tpu.vector_store %arg3[%c0_11, %c0_12], %10 {strides = array<i32>} : memref<256x128xf32, #tpu.memory_space<vmem>>, vector<256x128xf32>,
    %12 = vector.extract_strided_slice %3 {offsets = [1, 0, 0], sizes = [16, 16, 4], strides = [1, 1, 1]} : vector<18x16x4xbf16> to vector<16x16x4xbf16>
    %13 = vector.shape_cast %12 : vector<16x16x4xbf16> to vector<256x4xbf16>
    %c0_13 = arith.constant 0 : index
    %c0_14 = arith.constant 0 : index
    %14 = vector.load %arg3[%c0_13, %c0_14] : memref<256x128xf32, #tpu.memory_space<vmem>>, vector<256x128xf32>
    %c3 = arith.constant 3 : index
    %c0_15 = arith.constant 0 : index
    %c0_16 = arith.constant 0 : index
    %15 = vector.load %arg2[%c3, %c0_15, %c0_16] : memref<9x4x128xbf16, #tpu.memory_space<vmem>>, vector<1x4x128xbf16>
    %16 = vector.shape_cast %15 : vector<1x4x128xbf16> to vector<4x128xbf16>
    %cst_17 = arith.constant dense<0.000000e+00> : vector<256x128xf32>
    %17 = tpu.matmul %13, %16, %cst_17 {dimension_numbers = #tpu.dot_dimension_numbers<[1], [0], [0], [1], [0, 0, 1, 1], [], []>} : vector<256x4xbf16>, vector<4x128xbf16>, vector<256x128xf32> -> vector<256x128xf32>
    %18 = arith.addf %14, %17 : vector<256x128xf32>
    %c0_18 = arith.constant 0 : index
    %c0_19 = arith.constant 0 : index
    %19 = vector.load %arg3[%c0_18, %c0_19] : memref<256x128xf32, #tpu.memory_space<vmem>>, vector<256x128xf32>
    tpu.vector_store %arg3[%c0_18, %c0_19], %18 {strides = array<i32>} : memref<256x128xf32, #tpu.memory_space<vmem>>, vector<256x128xf32>,
    %20 = vector.extract_strided_slice %3 {offsets = [2, 0, 0], sizes = [16, 16, 4], strides = [1, 1, 1]} : vector<18x16x4xbf16> to vector<16x16x4xbf16>
    %21 = vector.shape_cast %20 : vector<16x16x4xbf16> to vector<256x4xbf16>
    %c0_20 = arith.constant 0 : index
    %c0_21 = arith.constant 0 : index
    %22 = vector.load %arg3[%c0_20, %c0_21] : memref<256x128xf32, #tpu.memory_space<vmem>>, vector<256x128xf32>
    %c6 = arith.constant 6 : index
    %c0_22 = arith.constant 0 : index
    %c0_23 = arith.constant 0 : index
    %23 = vector.load %arg2[%c6, %c0_22, %c0_23] : memref<9x4x128xbf16, #tpu.memory_space<vmem>>, vector<1x4x128xbf16>
    %24 = vector.shape_cast %23 : vector<1x4x128xbf16> to vector<4x128xbf16>
    %cst_24 = arith.constant dense<0.000000e+00> : vector<256x128xf32>
    %25 = tpu.matmul %21, %24, %cst_24 {dimension_numbers = #tpu.dot_dimension_numbers<[1], [0], [0], [1], [0, 0, 1, 1], [], []>} : vector<256x4xbf16>, vector<4x128xbf16>, vector<256x128xf32> -> vector<256x128xf32>
    %26 = arith.addf %22, %25 : vector<256x128xf32>
    %c0_25 = arith.constant 0 : index
    %c0_26 = arith.constant 0 : index
    %27 = vector.load %arg3[%c0_25, %c0_26] : memref<256x128xf32, #tpu.memory_space<vmem>>, vector<256x128xf32>
    tpu.vector_store %arg3[%c0_25, %c0_26], %26 {strides = array<i32>} : memref<256x128xf32, #tpu.memory_space<vmem>>, vector<256x128xf32>,
    %c0_27 = arith.constant 0 : index
    %c0_28 = arith.constant 0 : index
    %c1 = arith.constant 1 : index
    %c0_29 = arith.constant 0 : index
    %28 = vector.load %arg1[%c0_27, %c0_28, %c1, %c0_29] : memref<1x18x18x4xbf16, #tpu.memory_space<vmem>>, vector<1x18x16x4xbf16>
    %29 = vector.shape_cast %28 : vector<1x18x16x4xbf16> to vector<18x16x4xbf16>
    %30 = vector.extract_strided_slice %29 {offsets = [0, 0, 0], sizes = [16, 16, 4], strides = [1, 1, 1]} : vector<18x16x4xbf16> to vector<16x16x4xbf16>
    %31 = vector.shape_cast %30 : vector<16x16x4xbf16> to vector<256x4xbf16>
    %c0_30 = arith.constant 0 : index
    %c0_31 = arith.constant 0 : index
    %32 = vector.load %arg3[%c0_30, %c0_31] : memref<256x128xf32, #tpu.memory_space<vmem>>, vector<256x128xf32>
    %c1_32 = arith.constant 1 : index
    %c0_33 = arith.constant 0 : index
    %c0_34 = arith.constant 0 : index
    %33 = vector.load %arg2[%c1_32, %c0_33, %c0_34] : memref<9x4x128xbf16, #tpu.memory_space<vmem>>, vector<1x4x128xbf16>
    %34 = vector.shape_cast %33 : vector<1x4x128xbf16> to vector<4x128xbf16>
    %cst_35 = arith.constant dense<0.000000e+00> : vector<256x128xf32>
    %35 = tpu.matmul %31, %34, %cst_35 {dimension_numbers = #tpu.dot_dimension_numbers<[1], [0], [0], [1], [0, 0, 1, 1], [], []>} : vector<256x4xbf16>, vector<4x128xbf16>, vector<256x128xf32> -> vector<256x128xf32>
    %36 = arith.addf %32, %35 : vector<256x128xf32>
    %c0_36 = arith.constant 0 : index
    %c0_37 = arith.constant 0 : index
    %37 = vector.load %arg3[%c0_36, %c0_37] : memref<256x128xf32, #tpu.memory_space<vmem>>, vector<256x128xf32>
    tpu.vector_store %arg3[%c0_36, %c0_37], %36 {strides = array<i32>} : memref<256x128xf32, #tpu.memory_space<vmem>>, vector<256x128xf32>,
    %38 = vector.extract_strided_slice %29 {offsets = [1, 0, 0], sizes = [16, 16, 4], strides = [1, 1, 1]} : vector<18x16x4xbf16> to vector<16x16x4xbf16>
    %39 = vector.shape_cast %38 : vector<16x16x4xbf16> to vector<256x4xbf16>
    %c0_38 = arith.constant 0 : index
    %c0_39 = arith.constant 0 : index
    %40 = vector.load %arg3[%c0_38, %c0_39] : memref<256x128xf32, #tpu.memory_space<vmem>>, vector<256x128xf32>
    %c4 = arith.constant 4 : index
    %c0_40 = arith.constant 0 : index
    %c0_41 = arith.constant 0 : index
    %41 = vector.load %arg2[%c4, %c0_40, %c0_41] : memref<9x4x128xbf16, #tpu.memory_space<vmem>>, vector<1x4x128xbf16>
    %42 = vector.shape_cast %41 : vector<1x4x128xbf16> to vector<4x128xbf16>
    %cst_42 = arith.constant dense<0.000000e+00> : vector<256x128xf32>
    %43 = tpu.matmul %39, %42, %cst_42 {dimension_numbers = #tpu.dot_dimension_numbers<[1], [0], [0], [1], [0, 0, 1, 1], [], []>} : vector<256x4xbf16>, vector<4x128xbf16>, vector<256x128xf32> -> vector<256x128xf32>
    %44 = arith.addf %40, %43 : vector<256x128xf32>
    %c0_43 = arith.constant 0 : index
    %c0_44 = arith.constant 0 : index
    %45 = vector.load %arg3[%c0_43, %c0_44] : memref<256x128xf32, #tpu.memory_space<vmem>>, vector<256x128xf32>
    tpu.vector_store %arg3[%c0_43, %c0_44], %44 {strides = array<i32>} : memref<256x128xf32, #tpu.memory_space<vmem>>, vector<256x128xf32>,
    %46 = vector.extract_strided_slice %29 {offsets = [2, 0, 0], sizes = [16, 16, 4], strides = [1, 1, 1]} : vector<18x16x4xbf16> to vector<16x16x4xbf16>
    %47 = vector.shape_cast %46 : vector<16x16x4xbf16> to vector<256x4xbf16>
    %c0_45 = arith.constant 0 : index
    %c0_46 = arith.constant 0 : index
    %48 = vector.load %arg3[%c0_45, %c0_46] : memref<256x128xf32, #tpu.memory_space<vmem>>, vector<256x128xf32>
    %c7 = arith.constant 7 : index
    %c0_47 = arith.constant 0 : index
    %c0_48 = arith.constant 0 : index
    %49 = vector.load %arg2[%c7, %c0_47, %c0_48] : memref<9x4x128xbf16, #tpu.memory_space<vmem>>, vector<1x4x128xbf16>
    %50 = vector.shape_cast %49 : vector<1x4x128xbf16> to vector<4x128xbf16>
    %cst_49 = arith.constant dense<0.000000e+00> : vector<256x128xf32>
    %51 = tpu.matmul %47, %50, %cst_49 {dimension_numbers = #tpu.dot_dimension_numbers<[1], [0], [0], [1], [0, 0, 1, 1], [], []>} : vector<256x4xbf16>, vector<4x128xbf16>, vector<256x128xf32> -> vector<256x128xf32>
    %52 = arith.addf %48, %51 : vector<256x128xf32>
    %c0_50 = arith.constant 0 : index
    %c0_51 = arith.constant 0 : index
    %53 = vector.load %arg3[%c0_50, %c0_51] : memref<256x128xf32, #tpu.memory_space<vmem>>, vector<256x128xf32>
    tpu.vector_store %arg3[%c0_50, %c0_51], %52 {strides = array<i32>} : memref<256x128xf32, #tpu.memory_space<vmem>>, vector<256x128xf32>,
    %c0_52 = arith.constant 0 : index
    %c0_53 = arith.constant 0 : index
    %c2 = arith.constant 2 : index
    %c0_54 = arith.constant 0 : index
    %54 = vector.load %arg1[%c0_52, %c0_53, %c2, %c0_54] : memref<1x18x18x4xbf16, #tpu.memory_space<vmem>>, vector<1x18x16x4xbf16>
    %55 = vector.shape_cast %54 : vector<1x18x16x4xbf16> to vector<18x16x4xbf16>
    %56 = vector.extract_strided_slice %55 {offsets = [0, 0, 0], sizes = [16, 16, 4], strides = [1, 1, 1]} : vector<18x16x4xbf16> to vector<16x16x4xbf16>
    %57 = vector.shape_cast %56 : vector<16x16x4xbf16> to vector<256x4xbf16>
    %c0_55 = arith.constant 0 : index
    %c0_56 = arith.constant 0 : index
    %58 = vector.load %arg3[%c0_55, %c0_56] : memref<256x128xf32, #tpu.memory_space<vmem>>, vector<256x128xf32>
    %c2_57 = arith.constant 2 : index
    %c0_58 = arith.constant 0 : index
    %c0_59 = arith.constant 0 : index
    %59 = vector.load %arg2[%c2_57, %c0_58, %c0_59] : memref<9x4x128xbf16, #tpu.memory_space<vmem>>, vector<1x4x128xbf16>
    %60 = vector.shape_cast %59 : vector<1x4x128xbf16> to vector<4x128xbf16>
    %cst_60 = arith.constant dense<0.000000e+00> : vector<256x128xf32>
    %61 = tpu.matmul %57, %60, %cst_60 {dimension_numbers = #tpu.dot_dimension_numbers<[1], [0], [0], [1], [0, 0, 1, 1], [], []>} : vector<256x4xbf16>, vector<4x128xbf16>, vector<256x128xf32> -> vector<256x128xf32>
    %62 = arith.addf %58, %61 : vector<256x128xf32>
    %c0_61 = arith.constant 0 : index
    %c0_62 = arith.constant 0 : index
    %63 = vector.load %arg3[%c0_61, %c0_62] : memref<256x128xf32, #tpu.memory_space<vmem>>, vector<256x128xf32>
    tpu.vector_store %arg3[%c0_61, %c0_62], %62 {strides = array<i32>} : memref<256x128xf32, #tpu.memory_space<vmem>>, vector<256x128xf32>,
    %64 = vector.extract_strided_slice %55 {offsets = [1, 0, 0], sizes = [16, 16, 4], strides = [1, 1, 1]} : vector<18x16x4xbf16> to vector<16x16x4xbf16>
    %65 = vector.shape_cast %64 : vector<16x16x4xbf16> to vector<256x4xbf16>
    %c0_63 = arith.constant 0 : index
    %c0_64 = arith.constant 0 : index
    %66 = vector.load %arg3[%c0_63, %c0_64] : memref<256x128xf32, #tpu.memory_space<vmem>>, vector<256x128xf32>
    %c5 = arith.constant 5 : index
    %c0_65 = arith.constant 0 : index
    %c0_66 = arith.constant 0 : index
    %67 = vector.load %arg2[%c5, %c0_65, %c0_66] : memref<9x4x128xbf16, #tpu.memory_space<vmem>>, vector<1x4x128xbf16>
    %68 = vector.shape_cast %67 : vector<1x4x128xbf16> to vector<4x128xbf16>
    %cst_67 = arith.constant dense<0.000000e+00> : vector<256x128xf32>
    %69 = tpu.matmul %65, %68, %cst_67 {dimension_numbers = #tpu.dot_dimension_numbers<[1], [0], [0], [1], [0, 0, 1, 1], [], []>} : vector<256x4xbf16>, vector<4x128xbf16>, vector<256x128xf32> -> vector<256x128xf32>
    %70 = arith.addf %66, %69 : vector<256x128xf32>
    %c0_68 = arith.constant 0 : index
    %c0_69 = arith.constant 0 : index
    %71 = vector.load %arg3[%c0_68, %c0_69] : memref<256x128xf32, #tpu.memory_space<vmem>>, vector<256x128xf32>
    tpu.vector_store %arg3[%c0_68, %c0_69], %70 {strides = array<i32>} : memref<256x128xf32, #tpu.memory_space<vmem>>, vector<256x128xf32>,
    %72 = vector.extract_strided_slice %55 {offsets = [2, 0, 0], sizes = [16, 16, 4], strides = [1, 1, 1]} : vector<18x16x4xbf16> to vector<16x16x4xbf16>
    %73 = vector.shape_cast %72 : vector<16x16x4xbf16> to vector<256x4xbf16>
    %c0_70 = arith.constant 0 : index
    %c0_71 = arith.constant 0 : index
    %74 = vector.load %arg3[%c0_70, %c0_71] : memref<256x128xf32, #tpu.memory_space<vmem>>, vector<256x128xf32>
    %c8 = arith.constant 8 : index
    %c0_72 = arith.constant 0 : index
    %c0_73 = arith.constant 0 : index
    %75 = vector.load %arg2[%c8, %c0_72, %c0_73] : memref<9x4x128xbf16, #tpu.memory_space<vmem>>, vector<1x4x128xbf16>
    %76 = vector.shape_cast %75 : vector<1x4x128xbf16> to vector<4x128xbf16>
    %cst_74 = arith.constant dense<0.000000e+00> : vector<256x128xf32>
    %77 = tpu.matmul %73, %76, %cst_74 {dimension_numbers = #tpu.dot_dimension_numbers<[1], [0], [0], [1], [0, 0, 1, 1], [], []>} : vector<256x4xbf16>, vector<4x128xbf16>, vector<256x128xf32> -> vector<256x128xf32>
    %78 = arith.addf %74, %77 : vector<256x128xf32>
    %c0_75 = arith.constant 0 : index
    %c0_76 = arith.constant 0 : index
    %79 = vector.load %arg3[%c0_75, %c0_76] : memref<256x128xf32, #tpu.memory_space<vmem>>, vector<256x128xf32>
    tpu.vector_store %arg3[%c0_75, %c0_76], %78 {strides = array<i32>} : memref<256x128xf32, #tpu.memory_space<vmem>>, vector<256x128xf32>,
    %c0_77 = arith.constant 0 : index
    %c0_78 = arith.constant 0 : index
    %80 = vector.load %arg3[%c0_77, %c0_78] : memref<256x128xf32, #tpu.memory_space<vmem>>, vector<256x128xf32>
    %cst_79 = arith.constant dense<0.000000e+00> : vector<128xf32>
    %81 = vector.multi_reduction <add>, %80, %cst_79 [0] : vector<256x128xf32> to vector<128xf32>
    %82 = vector.shape_cast %81 : vector<128xf32> to vector<1x128xf32>
    %83 = arith.mulf %80, %80 : vector<256x128xf32>
    %cst_80 = arith.constant dense<0.000000e+00> : vector<128xf32>
    %84 = vector.multi_reduction <add>, %83, %cst_80 [0] : vector<256x128xf32> to vector<128xf32>
    %85 = vector.shape_cast %84 : vector<128xf32> to vector<1x128xf32>
    %86 = tpu.concatenate %82, %85 in 0 : vector<1x128xf32>, vector<1x128xf32> -> vector<2x128xf32>
    %c0_81 = arith.constant 0 : index
    %c0_82 = arith.constant 0 : index
    %c0_83 = arith.constant 0 : index
    %87 = vector.load %arg4[%c0_81, %c0_82, %c0_83] : memref<1x2x128xf32, #tpu.memory_space<vmem>>, vector<1x2x128xf32>
    %88 = vector.shape_cast %87 : vector<1x2x128xf32> to vector<2x128xf32>
    %89 = vector.shape_cast %86 : vector<2x128xf32> to vector<1x2x128xf32>
    tpu.vector_store %arg4[%c0_81, %c0_82, %c0_83], %89 {strides = array<i32>} : memref<1x2x128xf32, #tpu.memory_space<vmem>>, vector<1x2x128xf32>,
    return
  }
  func.func @transform_0(%arg0: i32) -> (i32, i32, i32, i32) {
    %c0_i32 = arith.constant 0 : i32
    %c0_i32_0 = arith.constant 0 : i32
    %c0_i32_1 = arith.constant 0 : i32
    %c0_i32_2 = arith.constant 0 : i32
    return %arg0, %c0_i32, %c0_i32_0, %c0_i32_1 : i32, i32, i32, i32
  }
  func.func @transform_1(%arg0: i32) -> (i32, i32, i32) {
    %c0_i32 = arith.constant 0 : i32
    %c0_i32_0 = arith.constant 0 : i32
    %c0_i32_1 = arith.constant 0 : i32
    %c0_i32_2 = arith.constant 0 : i32
    return %c0_i32, %c0_i32_0, %c0_i32_1 : i32, i32, i32
  }
  func.func @transform_2(%arg0: i32) -> (i32, i32) {
    %c0_i32 = arith.constant 0 : i32
    %c0_i32_0 = arith.constant 0 : i32
    return %arg0, %c0_i32 : i32, i32
  }
  func.func @transform_3(%arg0: i32) -> (i32, i32, i32) {
    %c0_i32 = arith.constant 0 : i32
    %c0_i32_0 = arith.constant 0 : i32
    %c0_i32_1 = arith.constant 0 : i32
    return %arg0, %c0_i32, %c0_i32_0 : i32, i32, i32
  }
}

module attributes {stable_mosaic.version = 11 : i64} {
  func.func @_bn_lrelu_kernel(%arg0: i32, %arg1: memref<512x128xf32, #tpu.memory_space<vmem>>, %arg2: memref<1x128xf32, #tpu.memory_space<vmem>>, %arg3: memref<1x128xf32, #tpu.memory_space<vmem>>, %arg4: memref<512x128xf32, #tpu.memory_space<vmem>>) attributes {dimension_semantics = [#tpu.dimension_semantics<parallel>], iteration_bounds = array<i64: 1>, scalar_prefetch = 0 : i64, scratch_operands = 0 : i64, tpu.core_type = #tpu.core_type<tc>, window_params = [{transform_indices = @transform_0, window_bounds = array<i64: 512, 128>}, {pipeline_mode = #tpu.pipeline_mode<synchronous>, transform_indices = @transform_1, window_bounds = array<i64: 1, 128>}, {pipeline_mode = #tpu.pipeline_mode<synchronous>, transform_indices = @transform_2, window_bounds = array<i64: 1, 128>}, {transform_indices = @transform_3, window_bounds = array<i64: 512, 128>}]} {
    %c0 = arith.constant 0 : index
    %c0_0 = arith.constant 0 : index
    %0 = vector.load %arg1[%c0, %c0_0] : memref<512x128xf32, #tpu.memory_space<vmem>>, vector<512x128xf32>
    %c0_1 = arith.constant 0 : index
    %c0_2 = arith.constant 0 : index
    %1 = vector.load %arg2[%c0_1, %c0_2] : memref<1x128xf32, #tpu.memory_space<vmem>>, vector<1x128xf32>
    %2 = vector.broadcast %1 : vector<1x128xf32> to vector<512x128xf32>
    %3 = arith.mulf %0, %2 : vector<512x128xf32>
    %c0_3 = arith.constant 0 : index
    %c0_4 = arith.constant 0 : index
    %4 = vector.load %arg3[%c0_3, %c0_4] : memref<1x128xf32, #tpu.memory_space<vmem>>, vector<1x128xf32>
    %5 = vector.broadcast %4 : vector<1x128xf32> to vector<512x128xf32>
    %6 = arith.addf %3, %5 : vector<512x128xf32>
    %cst = arith.constant 0.000000e+00 : f32
    %7 = vector.broadcast %cst : f32 to vector<512x128xf32>
    %8 = arith.cmpf oge, %6, %7 : vector<512x128xf32>
    %cst_5 = arith.constant 2.000000e-01 : f32
    %9 = vector.broadcast %cst_5 : f32 to vector<512x128xf32>
    %10 = arith.mulf %9, %6 : vector<512x128xf32>
    %11 = arith.select %8, %6, %10 : vector<512x128xi1>, vector<512x128xf32>
    %c0_6 = arith.constant 0 : index
    %c0_7 = arith.constant 0 : index
    %12 = vector.load %arg4[%c0_6, %c0_7] : memref<512x128xf32, #tpu.memory_space<vmem>>, vector<512x128xf32>
    tpu.vector_store %arg4[%c0_6, %c0_7], %11 {strides = array<i32>} : memref<512x128xf32, #tpu.memory_space<vmem>>, vector<512x128xf32>,
    return
  }
  func.func @transform_0(%arg0: i32) -> (i32, i32) {
    %c0_i32 = arith.constant 0 : i32
    %c0_i32_0 = arith.constant 0 : i32
    return %arg0, %c0_i32 : i32, i32
  }
  func.func @transform_1(%arg0: i32) -> (i32, i32) {
    %c0_i32 = arith.constant 0 : i32
    %c0_i32_0 = arith.constant 0 : i32
    %c0_i32_1 = arith.constant 0 : i32
    return %c0_i32, %c0_i32_0 : i32, i32
  }
  func.func @transform_2(%arg0: i32) -> (i32, i32) {
    %c0_i32 = arith.constant 0 : i32
    %c0_i32_0 = arith.constant 0 : i32
    %c0_i32_1 = arith.constant 0 : i32
    return %c0_i32, %c0_i32_0 : i32, i32
  }
  func.func @transform_3(%arg0: i32) -> (i32, i32) {
    %c0_i32 = arith.constant 0 : i32
    %c0_i32_0 = arith.constant 0 : i32
    return %arg0, %c0_i32 : i32, i32
  }
}

module attributes {stable_mosaic.version = 11 : i64} {
  func.func @_conv_stats_kernel(%arg0: i32, %arg1: memref<1x18x18x128xbf16, #tpu.memory_space<vmem>>, %arg2: memref<9x128x128xbf16, #tpu.memory_space<vmem>>, %arg3: memref<256x128xf32, #tpu.memory_space<vmem>>, %arg4: memref<1x2x128xf32, #tpu.memory_space<vmem>>) attributes {dimension_semantics = [#tpu.dimension_semantics<parallel>], iteration_bounds = array<i64: 2>, scalar_prefetch = 0 : i64, scratch_operands = 0 : i64, tpu.core_type = #tpu.core_type<tc>, window_params = [{transform_indices = @transform_0, window_bounds = array<i64: 1, 18, 18, 128>}, {pipeline_mode = #tpu.pipeline_mode<synchronous>, transform_indices = @transform_1, window_bounds = array<i64: 9, 128, 128>}, {transform_indices = @transform_2, window_bounds = array<i64: 256, 128>}, {transform_indices = @transform_3, window_bounds = array<i64: 1, 2, 128>}]} {
    %cst = arith.constant 0.000000e+00 : f32
    %0 = vector.broadcast %cst : f32 to vector<256x128xf32>
    %c0 = arith.constant 0 : index
    %c0_0 = arith.constant 0 : index
    %1 = vector.load %arg3[%c0, %c0_0] : memref<256x128xf32, #tpu.memory_space<vmem>>, vector<256x128xf32>
    tpu.vector_store %arg3[%c0, %c0_0], %0 {strides = array<i32>} : memref<256x128xf32, #tpu.memory_space<vmem>>, vector<256x128xf32>,
    %c0_1 = arith.constant 0 : index
    %c0_2 = arith.constant 0 : index
    %c0_3 = arith.constant 0 : index
    %c0_4 = arith.constant 0 : index
    %2 = vector.load %arg1[%c0_1, %c0_2, %c0_3, %c0_4] : memref<1x18x18x128xbf16, #tpu.memory_space<vmem>>, vector<1x18x16x128xbf16>
    %3 = vector.shape_cast %2 : vector<1x18x16x128xbf16> to vector<18x16x128xbf16>
    %4 = vector.extract_strided_slice %3 {offsets = [0, 0, 0], sizes = [16, 16, 128], strides = [1, 1, 1]} : vector<18x16x128xbf16> to vector<16x16x128xbf16>
    %5 = vector.shape_cast %4 : vector<16x16x128xbf16> to vector<256x128xbf16>
    %c0_5 = arith.constant 0 : index
    %c0_6 = arith.constant 0 : index
    %6 = vector.load %arg3[%c0_5, %c0_6] : memref<256x128xf32, #tpu.memory_space<vmem>>, vector<256x128xf32>
    %c0_7 = arith.constant 0 : index
    %c0_8 = arith.constant 0 : index
    %c0_9 = arith.constant 0 : index
    %7 = vector.load %arg2[%c0_7, %c0_8, %c0_9] : memref<9x128x128xbf16, #tpu.memory_space<vmem>>, vector<1x128x128xbf16>
    %8 = vector.shape_cast %7 : vector<1x128x128xbf16> to vector<128x128xbf16>
    %cst_10 = arith.constant dense<0.000000e+00> : vector<256x128xf32>
    %9 = tpu.matmul %5, %8, %cst_10 {dimension_numbers = #tpu.dot_dimension_numbers<[1], [0], [0], [1], [0, 0, 1, 1], [], []>} : vector<256x128xbf16>, vector<128x128xbf16>, vector<256x128xf32> -> vector<256x128xf32>
    %10 = arith.addf %6, %9 : vector<256x128xf32>
    %c0_11 = arith.constant 0 : index
    %c0_12 = arith.constant 0 : index
    %11 = vector.load %arg3[%c0_11, %c0_12] : memref<256x128xf32, #tpu.memory_space<vmem>>, vector<256x128xf32>
    tpu.vector_store %arg3[%c0_11, %c0_12], %10 {strides = array<i32>} : memref<256x128xf32, #tpu.memory_space<vmem>>, vector<256x128xf32>,
    %12 = vector.extract_strided_slice %3 {offsets = [1, 0, 0], sizes = [16, 16, 128], strides = [1, 1, 1]} : vector<18x16x128xbf16> to vector<16x16x128xbf16>
    %13 = vector.shape_cast %12 : vector<16x16x128xbf16> to vector<256x128xbf16>
    %c0_13 = arith.constant 0 : index
    %c0_14 = arith.constant 0 : index
    %14 = vector.load %arg3[%c0_13, %c0_14] : memref<256x128xf32, #tpu.memory_space<vmem>>, vector<256x128xf32>
    %c3 = arith.constant 3 : index
    %c0_15 = arith.constant 0 : index
    %c0_16 = arith.constant 0 : index
    %15 = vector.load %arg2[%c3, %c0_15, %c0_16] : memref<9x128x128xbf16, #tpu.memory_space<vmem>>, vector<1x128x128xbf16>
    %16 = vector.shape_cast %15 : vector<1x128x128xbf16> to vector<128x128xbf16>
    %cst_17 = arith.constant dense<0.000000e+00> : vector<256x128xf32>
    %17 = tpu.matmul %13, %16, %cst_17 {dimension_numbers = #tpu.dot_dimension_numbers<[1], [0], [0], [1], [0, 0, 1, 1], [], []>} : vector<256x128xbf16>, vector<128x128xbf16>, vector<256x128xf32> -> vector<256x128xf32>
    %18 = arith.addf %14, %17 : vector<256x128xf32>
    %c0_18 = arith.constant 0 : index
    %c0_19 = arith.constant 0 : index
    %19 = vector.load %arg3[%c0_18, %c0_19] : memref<256x128xf32, #tpu.memory_space<vmem>>, vector<256x128xf32>
    tpu.vector_store %arg3[%c0_18, %c0_19], %18 {strides = array<i32>} : memref<256x128xf32, #tpu.memory_space<vmem>>, vector<256x128xf32>,
    %20 = vector.extract_strided_slice %3 {offsets = [2, 0, 0], sizes = [16, 16, 128], strides = [1, 1, 1]} : vector<18x16x128xbf16> to vector<16x16x128xbf16>
    %21 = vector.shape_cast %20 : vector<16x16x128xbf16> to vector<256x128xbf16>
    %c0_20 = arith.constant 0 : index
    %c0_21 = arith.constant 0 : index
    %22 = vector.load %arg3[%c0_20, %c0_21] : memref<256x128xf32, #tpu.memory_space<vmem>>, vector<256x128xf32>
    %c6 = arith.constant 6 : index
    %c0_22 = arith.constant 0 : index
    %c0_23 = arith.constant 0 : index
    %23 = vector.load %arg2[%c6, %c0_22, %c0_23] : memref<9x128x128xbf16, #tpu.memory_space<vmem>>, vector<1x128x128xbf16>
    %24 = vector.shape_cast %23 : vector<1x128x128xbf16> to vector<128x128xbf16>
    %cst_24 = arith.constant dense<0.000000e+00> : vector<256x128xf32>
    %25 = tpu.matmul %21, %24, %cst_24 {dimension_numbers = #tpu.dot_dimension_numbers<[1], [0], [0], [1], [0, 0, 1, 1], [], []>} : vector<256x128xbf16>, vector<128x128xbf16>, vector<256x128xf32> -> vector<256x128xf32>
    %26 = arith.addf %22, %25 : vector<256x128xf32>
    %c0_25 = arith.constant 0 : index
    %c0_26 = arith.constant 0 : index
    %27 = vector.load %arg3[%c0_25, %c0_26] : memref<256x128xf32, #tpu.memory_space<vmem>>, vector<256x128xf32>
    tpu.vector_store %arg3[%c0_25, %c0_26], %26 {strides = array<i32>} : memref<256x128xf32, #tpu.memory_space<vmem>>, vector<256x128xf32>,
    %c0_27 = arith.constant 0 : index
    %c0_28 = arith.constant 0 : index
    %c1 = arith.constant 1 : index
    %c0_29 = arith.constant 0 : index
    %28 = vector.load %arg1[%c0_27, %c0_28, %c1, %c0_29] : memref<1x18x18x128xbf16, #tpu.memory_space<vmem>>, vector<1x18x16x128xbf16>
    %29 = vector.shape_cast %28 : vector<1x18x16x128xbf16> to vector<18x16x128xbf16>
    %30 = vector.extract_strided_slice %29 {offsets = [0, 0, 0], sizes = [16, 16, 128], strides = [1, 1, 1]} : vector<18x16x128xbf16> to vector<16x16x128xbf16>
    %31 = vector.shape_cast %30 : vector<16x16x128xbf16> to vector<256x128xbf16>
    %c0_30 = arith.constant 0 : index
    %c0_31 = arith.constant 0 : index
    %32 = vector.load %arg3[%c0_30, %c0_31] : memref<256x128xf32, #tpu.memory_space<vmem>>, vector<256x128xf32>
    %c1_32 = arith.constant 1 : index
    %c0_33 = arith.constant 0 : index
    %c0_34 = arith.constant 0 : index
    %33 = vector.load %arg2[%c1_32, %c0_33, %c0_34] : memref<9x128x128xbf16, #tpu.memory_space<vmem>>, vector<1x128x128xbf16>
    %34 = vector.shape_cast %33 : vector<1x128x128xbf16> to vector<128x128xbf16>
    %cst_35 = arith.constant dense<0.000000e+00> : vector<256x128xf32>
    %35 = tpu.matmul %31, %34, %cst_35 {dimension_numbers = #tpu.dot_dimension_numbers<[1], [0], [0], [1], [0, 0, 1, 1], [], []>} : vector<256x128xbf16>, vector<128x128xbf16>, vector<256x128xf32> -> vector<256x128xf32>
    %36 = arith.addf %32, %35 : vector<256x128xf32>
    %c0_36 = arith.constant 0 : index
    %c0_37 = arith.constant 0 : index
    %37 = vector.load %arg3[%c0_36, %c0_37] : memref<256x128xf32, #tpu.memory_space<vmem>>, vector<256x128xf32>
    tpu.vector_store %arg3[%c0_36, %c0_37], %36 {strides = array<i32>} : memref<256x128xf32, #tpu.memory_space<vmem>>, vector<256x128xf32>,
    %38 = vector.extract_strided_slice %29 {offsets = [1, 0, 0], sizes = [16, 16, 128], strides = [1, 1, 1]} : vector<18x16x128xbf16> to vector<16x16x128xbf16>
    %39 = vector.shape_cast %38 : vector<16x16x128xbf16> to vector<256x128xbf16>
    %c0_38 = arith.constant 0 : index
    %c0_39 = arith.constant 0 : index
    %40 = vector.load %arg3[%c0_38, %c0_39] : memref<256x128xf32, #tpu.memory_space<vmem>>, vector<256x128xf32>
    %c4 = arith.constant 4 : index
    %c0_40 = arith.constant 0 : index
    %c0_41 = arith.constant 0 : index
    %41 = vector.load %arg2[%c4, %c0_40, %c0_41] : memref<9x128x128xbf16, #tpu.memory_space<vmem>>, vector<1x128x128xbf16>
    %42 = vector.shape_cast %41 : vector<1x128x128xbf16> to vector<128x128xbf16>
    %cst_42 = arith.constant dense<0.000000e+00> : vector<256x128xf32>
    %43 = tpu.matmul %39, %42, %cst_42 {dimension_numbers = #tpu.dot_dimension_numbers<[1], [0], [0], [1], [0, 0, 1, 1], [], []>} : vector<256x128xbf16>, vector<128x128xbf16>, vector<256x128xf32> -> vector<256x128xf32>
    %44 = arith.addf %40, %43 : vector<256x128xf32>
    %c0_43 = arith.constant 0 : index
    %c0_44 = arith.constant 0 : index
    %45 = vector.load %arg3[%c0_43, %c0_44] : memref<256x128xf32, #tpu.memory_space<vmem>>, vector<256x128xf32>
    tpu.vector_store %arg3[%c0_43, %c0_44], %44 {strides = array<i32>} : memref<256x128xf32, #tpu.memory_space<vmem>>, vector<256x128xf32>,
    %46 = vector.extract_strided_slice %29 {offsets = [2, 0, 0], sizes = [16, 16, 128], strides = [1, 1, 1]} : vector<18x16x128xbf16> to vector<16x16x128xbf16>
    %47 = vector.shape_cast %46 : vector<16x16x128xbf16> to vector<256x128xbf16>
    %c0_45 = arith.constant 0 : index
    %c0_46 = arith.constant 0 : index
    %48 = vector.load %arg3[%c0_45, %c0_46] : memref<256x128xf32, #tpu.memory_space<vmem>>, vector<256x128xf32>
    %c7 = arith.constant 7 : index
    %c0_47 = arith.constant 0 : index
    %c0_48 = arith.constant 0 : index
    %49 = vector.load %arg2[%c7, %c0_47, %c0_48] : memref<9x128x128xbf16, #tpu.memory_space<vmem>>, vector<1x128x128xbf16>
    %50 = vector.shape_cast %49 : vector<1x128x128xbf16> to vector<128x128xbf16>
    %cst_49 = arith.constant dense<0.000000e+00> : vector<256x128xf32>
    %51 = tpu.matmul %47, %50, %cst_49 {dimension_numbers = #tpu.dot_dimension_numbers<[1], [0], [0], [1], [0, 0, 1, 1], [], []>} : vector<256x128xbf16>, vector<128x128xbf16>, vector<256x128xf32> -> vector<256x128xf32>
    %52 = arith.addf %48, %51 : vector<256x128xf32>
    %c0_50 = arith.constant 0 : index
    %c0_51 = arith.constant 0 : index
    %53 = vector.load %arg3[%c0_50, %c0_51] : memref<256x128xf32, #tpu.memory_space<vmem>>, vector<256x128xf32>
    tpu.vector_store %arg3[%c0_50, %c0_51], %52 {strides = array<i32>} : memref<256x128xf32, #tpu.memory_space<vmem>>, vector<256x128xf32>,
    %c0_52 = arith.constant 0 : index
    %c0_53 = arith.constant 0 : index
    %c2 = arith.constant 2 : index
    %c0_54 = arith.constant 0 : index
    %54 = vector.load %arg1[%c0_52, %c0_53, %c2, %c0_54] : memref<1x18x18x128xbf16, #tpu.memory_space<vmem>>, vector<1x18x16x128xbf16>
    %55 = vector.shape_cast %54 : vector<1x18x16x128xbf16> to vector<18x16x128xbf16>
    %56 = vector.extract_strided_slice %55 {offsets = [0, 0, 0], sizes = [16, 16, 128], strides = [1, 1, 1]} : vector<18x16x128xbf16> to vector<16x16x128xbf16>
    %57 = vector.shape_cast %56 : vector<16x16x128xbf16> to vector<256x128xbf16>
    %c0_55 = arith.constant 0 : index
    %c0_56 = arith.constant 0 : index
    %58 = vector.load %arg3[%c0_55, %c0_56] : memref<256x128xf32, #tpu.memory_space<vmem>>, vector<256x128xf32>
    %c2_57 = arith.constant 2 : index
    %c0_58 = arith.constant 0 : index
    %c0_59 = arith.constant 0 : index
    %59 = vector.load %arg2[%c2_57, %c0_58, %c0_59] : memref<9x128x128xbf16, #tpu.memory_space<vmem>>, vector<1x128x128xbf16>
    %60 = vector.shape_cast %59 : vector<1x128x128xbf16> to vector<128x128xbf16>
    %cst_60 = arith.constant dense<0.000000e+00> : vector<256x128xf32>
    %61 = tpu.matmul %57, %60, %cst_60 {dimension_numbers = #tpu.dot_dimension_numbers<[1], [0], [0], [1], [0, 0, 1, 1], [], []>} : vector<256x128xbf16>, vector<128x128xbf16>, vector<256x128xf32> -> vector<256x128xf32>
    %62 = arith.addf %58, %61 : vector<256x128xf32>
    %c0_61 = arith.constant 0 : index
    %c0_62 = arith.constant 0 : index
    %63 = vector.load %arg3[%c0_61, %c0_62] : memref<256x128xf32, #tpu.memory_space<vmem>>, vector<256x128xf32>
    tpu.vector_store %arg3[%c0_61, %c0_62], %62 {strides = array<i32>} : memref<256x128xf32, #tpu.memory_space<vmem>>, vector<256x128xf32>,
    %64 = vector.extract_strided_slice %55 {offsets = [1, 0, 0], sizes = [16, 16, 128], strides = [1, 1, 1]} : vector<18x16x128xbf16> to vector<16x16x128xbf16>
    %65 = vector.shape_cast %64 : vector<16x16x128xbf16> to vector<256x128xbf16>
    %c0_63 = arith.constant 0 : index
    %c0_64 = arith.constant 0 : index
    %66 = vector.load %arg3[%c0_63, %c0_64] : memref<256x128xf32, #tpu.memory_space<vmem>>, vector<256x128xf32>
    %c5 = arith.constant 5 : index
    %c0_65 = arith.constant 0 : index
    %c0_66 = arith.constant 0 : index
    %67 = vector.load %arg2[%c5, %c0_65, %c0_66] : memref<9x128x128xbf16, #tpu.memory_space<vmem>>, vector<1x128x128xbf16>
    %68 = vector.shape_cast %67 : vector<1x128x128xbf16> to vector<128x128xbf16>
    %cst_67 = arith.constant dense<0.000000e+00> : vector<256x128xf32>
    %69 = tpu.matmul %65, %68, %cst_67 {dimension_numbers = #tpu.dot_dimension_numbers<[1], [0], [0], [1], [0, 0, 1, 1], [], []>} : vector<256x128xbf16>, vector<128x128xbf16>, vector<256x128xf32> -> vector<256x128xf32>
    %70 = arith.addf %66, %69 : vector<256x128xf32>
    %c0_68 = arith.constant 0 : index
    %c0_69 = arith.constant 0 : index
    %71 = vector.load %arg3[%c0_68, %c0_69] : memref<256x128xf32, #tpu.memory_space<vmem>>, vector<256x128xf32>
    tpu.vector_store %arg3[%c0_68, %c0_69], %70 {strides = array<i32>} : memref<256x128xf32, #tpu.memory_space<vmem>>, vector<256x128xf32>,
    %72 = vector.extract_strided_slice %55 {offsets = [2, 0, 0], sizes = [16, 16, 128], strides = [1, 1, 1]} : vector<18x16x128xbf16> to vector<16x16x128xbf16>
    %73 = vector.shape_cast %72 : vector<16x16x128xbf16> to vector<256x128xbf16>
    %c0_70 = arith.constant 0 : index
    %c0_71 = arith.constant 0 : index
    %74 = vector.load %arg3[%c0_70, %c0_71] : memref<256x128xf32, #tpu.memory_space<vmem>>, vector<256x128xf32>
    %c8 = arith.constant 8 : index
    %c0_72 = arith.constant 0 : index
    %c0_73 = arith.constant 0 : index
    %75 = vector.load %arg2[%c8, %c0_72, %c0_73] : memref<9x128x128xbf16, #tpu.memory_space<vmem>>, vector<1x128x128xbf16>
    %76 = vector.shape_cast %75 : vector<1x128x128xbf16> to vector<128x128xbf16>
    %cst_74 = arith.constant dense<0.000000e+00> : vector<256x128xf32>
    %77 = tpu.matmul %73, %76, %cst_74 {dimension_numbers = #tpu.dot_dimension_numbers<[1], [0], [0], [1], [0, 0, 1, 1], [], []>} : vector<256x128xbf16>, vector<128x128xbf16>, vector<256x128xf32> -> vector<256x128xf32>
    %78 = arith.addf %74, %77 : vector<256x128xf32>
    %c0_75 = arith.constant 0 : index
    %c0_76 = arith.constant 0 : index
    %79 = vector.load %arg3[%c0_75, %c0_76] : memref<256x128xf32, #tpu.memory_space<vmem>>, vector<256x128xf32>
    tpu.vector_store %arg3[%c0_75, %c0_76], %78 {strides = array<i32>} : memref<256x128xf32, #tpu.memory_space<vmem>>, vector<256x128xf32>,
    %c0_77 = arith.constant 0 : index
    %c0_78 = arith.constant 0 : index
    %80 = vector.load %arg3[%c0_77, %c0_78] : memref<256x128xf32, #tpu.memory_space<vmem>>, vector<256x128xf32>
    %cst_79 = arith.constant dense<0.000000e+00> : vector<128xf32>
    %81 = vector.multi_reduction <add>, %80, %cst_79 [0] : vector<256x128xf32> to vector<128xf32>
    %82 = vector.shape_cast %81 : vector<128xf32> to vector<1x128xf32>
    %83 = arith.mulf %80, %80 : vector<256x128xf32>
    %cst_80 = arith.constant dense<0.000000e+00> : vector<128xf32>
    %84 = vector.multi_reduction <add>, %83, %cst_80 [0] : vector<256x128xf32> to vector<128xf32>
    %85 = vector.shape_cast %84 : vector<128xf32> to vector<1x128xf32>
    %86 = tpu.concatenate %82, %85 in 0 : vector<1x128xf32>, vector<1x128xf32> -> vector<2x128xf32>
    %c0_81 = arith.constant 0 : index
    %c0_82 = arith.constant 0 : index
    %c0_83 = arith.constant 0 : index
    %87 = vector.load %arg4[%c0_81, %c0_82, %c0_83] : memref<1x2x128xf32, #tpu.memory_space<vmem>>, vector<1x2x128xf32>
    %88 = vector.shape_cast %87 : vector<1x2x128xf32> to vector<2x128xf32>
    %89 = vector.shape_cast %86 : vector<2x128xf32> to vector<1x2x128xf32>
    tpu.vector_store %arg4[%c0_81, %c0_82, %c0_83], %89 {strides = array<i32>} : memref<1x2x128xf32, #tpu.memory_space<vmem>>, vector<1x2x128xf32>,
    return
  }
  func.func @transform_0(%arg0: i32) -> (i32, i32, i32, i32) {
    %c0_i32 = arith.constant 0 : i32
    %c0_i32_0 = arith.constant 0 : i32
    %c0_i32_1 = arith.constant 0 : i32
    %c0_i32_2 = arith.constant 0 : i32
    return %arg0, %c0_i32, %c0_i32_0, %c0_i32_1 : i32, i32, i32, i32
  }
  func.func @transform_1(%arg0: i32) -> (i32, i32, i32) {
    %c0_i32 = arith.constant 0 : i32
    %c0_i32_0 = arith.constant 0 : i32
    %c0_i32_1 = arith.constant 0 : i32
    %c0_i32_2 = arith.constant 0 : i32
    return %c0_i32, %c0_i32_0, %c0_i32_1 : i32, i32, i32
  }
  func.func @transform_2(%arg0: i32) -> (i32, i32) {
    %c0_i32 = arith.constant 0 : i32
    %c0_i32_0 = arith.constant 0 : i32
    return %arg0, %c0_i32 : i32, i32
  }
  func.func @transform_3(%arg0: i32) -> (i32, i32, i32) {
    %c0_i32 = arith.constant 0 : i32
    %c0_i32_0 = arith.constant 0 : i32
    %c0_i32_1 = arith.constant 0 : i32
    return %arg0, %c0_i32, %c0_i32_0 : i32, i32, i32
  }
}

</mosaic_0001>

<bundles_post_ra>
// kernel: double_conv_block.5
= control target key start
LH: loop header
LB: loop body
LE: loop exit
PB: predicated region body
PF: predicated region fallthrough
CT: control target
= control target key end

     0   :  { %s1030_s0 = inlined_call_operand.vmem [shape: f32[512,128], index: 0, kind: input, shape index: {}]   ;;  %s1031_s1 = inlined_call_operand.vmem [shape: f32[1,128], index: 1, kind: input, shape index: {}]   ;;  %s1032_s2 = inlined_call_operand.vmem [shape: f32[1,128], index: 2, kind: input, shape index: {}]   ;;  %s1033_s3 = inlined_call_operand.vmem [shape: f32[512,128], index: 3, kind: output, shape index: {}]  }
   0x1   :  { %v14_v0 = vld [vmem:[%s1030_s0] sm:$0xff]  ;;  %v15_v4 = vld [vmem:[%s1030_s0 + $0x8] sm:$0xff]  ;;  %v16_v5 = vld [vmem:[%s1030_s0 + $0x10] sm:$0xff] }
   0x2   :  { %v508_v1 = vld [vmem:[%s1031_s1] ss:$0 sm:$0xff]  ;;  %v17_v6 = vld [vmem:[%s1030_s0 + $0x18] sm:$0xff]  ;;  %v19_v11 = vld [vmem:[%s1030_s0 + $0x28] sm:$0xff] }
   0x3   :  { %v513_v2 = vld [vmem:[%s1032_s2] ss:$0 sm:$0xff]  ;;  %v85_v3 = vmul.f32 %v508_v1, %v14_v0  ;;  %v86_v7 = vmul.f32 %v508_v1, %v15_v4  ;;  %v87_v8 = vmul.f32 %v508_v1, %v16_v5  ;;  %v88_v9 = vmul.f32 %v508_v1, %v17_v6  ;;  %v20_v12 = vld [vmem:[%s1030_s0 + $0x30] sm:$0xff]  ;;  %v21_v17 = vld [vmem:[%s1030_s0 + $0x38] sm:$0xff] }
   0x4   :  { %v18_v10 = vld [vmem:[%s1030_s0 + $0x20] sm:$0xff]  ;;  %v90_v15 = vmul.f32 %v508_v1, %v19_v11  ;;  %v91_v16 = vmul.f32 %v508_v1, %v20_v12  ;;  %v92_v21 = vmul.f32 %v508_v1, %v21_v17  ;;  %v23_v30 = vld [vmem:[%s1030_s0 + $0x48] sm:$0xff]  ;;  %v24_v31 = vld [vmem:[%s1030_s0 + $0x50] sm:$0xff] }
   0x5   :  { %v156_v13 = vadd.f32 %v513_v2, %v85_v3  ;;  %v89_v14 = vmul.f32 %v508_v1, %v18_v10  ;;  %v157_v18 = vadd.f32 %v513_v2, %v86_v7  ;;  %v158_v19 = vadd.f32 %v513_v2, %v87_v8  ;;  %v22_v25 = vld [vmem:[%s1030_s0 + $0x40] sm:$0xff]  ;;  %v25_v43 = vld [vmem:[%s1030_s0 + $0x58] sm:$0xff]  ;;  %v27_v45 = vld [vmem:[%s1030_s0 + $0x68] sm:$0xff] }
   0x6   :  { %v159_v20 = vadd.f32 %v513_v2, %v88_v9  ;;  %v161_v24 = vadd.f32 %v513_v2, %v90_v15  ;;  %v162_v37 = vadd.f32 %v513_v2, %v91_v16  ;;  %v163_v38 = vadd.f32 %v513_v2, %v92_v21  ;;  %v26_v44 = vld [vmem:[%s1030_s0 + $0x60] sm:$0xff]  ;;  %v28_v56 = vld [vmem:[%s1030_s0 + $0x70] sm:$0xff]  ;;  %v29_v4 = vld [vmem:[%s1030_s0 + $0x78] sm:$0xff] }
   0x7   :  { %vm220_vm0 = vcmp.ge.f32.partialorder %v156_v13, 0.0  ;;  %v284_v22 = vmul.f32 0.2, %v156_v13  ;;  %v160_v23 = vadd.f32 %v513_v2, %v89_v14  ;;  %vm221_vm1 = vcmp.ge.f32.partialorder %v157_v18, 0.0  ;;  %v30_v5 = vld [vmem:[%s1030_s0 + $0x80] sm:$0xff]  ;;  %v31_v9 = vld [vmem:[%s1030_s0 + $0x88] sm:$0xff] }
   0x8   :  { %v285_v26 = vmul.f32 0.2, %v157_v18  ;;  %vm222_vm2 = vcmp.ge.f32.partialorder %v158_v19, 0.0  ;;  %v286_v27 = vmul.f32 0.2, %v158_v19  ;;  %vm223_vm3 = vcmp.ge.f32.partialorder %v159_v20, 0.0 }
   0x9   :  { %v348_v28 = vsel %vm220_vm0, %v156_v13, %v284_v22  ;;  %v287_v29 = vmul.f32 0.2, %v159_v20  ;;  %vm224_vm4 = vcmp.ge.f32.partialorder %v160_v23, 0.0  ;;  %v288_v34 = vmul.f32 0.2, %v160_v23  ;;  %v32_v10 = vld [vmem:[%s1030_s0 + $0x90] sm:$0xff] }
   0xa   :  { %412 = vst [vmem:[%s1033_s3] sm:$0xff] %v348_v28  ;;  %v349_v32 = vsel %vm221_vm1, %v157_v18, %v285_v26  ;;  %v350_v33 = vsel %vm222_vm2, %v158_v19, %v286_v27  ;;  %vm225_vm5 = vcmp.ge.f32.partialorder %v161_v24, 0.0  ;;  %v289_v36 = vmul.f32 0.2, %v161_v24  ;;  %v33_v17 = vld [vmem:[%s1030_s0 + $0x98] sm:$0xff]  ;;  %v34_v18 = vld [vmem:[%s1030_s0 + $0xa0] sm:$0xff] }
   0xb   :  { %413 = vst [vmem:[%s1033_s3 + $0x8] sm:$0xff] %v349_v32  ;;  %414 = vst [vmem:[%s1033_s3 + $0x10] sm:$0xff] %v350_v33  ;;  %v351_v35 = vsel %vm223_vm3, %v159_v20, %v287_v29  ;;  %v352_v39 = vsel %vm224_vm4, %v160_v23, %v288_v34  ;;  %v93_v40 = vmul.f32 %v508_v1, %v22_v25  ;;  %vm226_vm6 = vcmp.ge.f32.partialorder %v162_v37, 0.0  ;;  %v35_v32 = vld [vmem:[%s1030_s0 + $0xa8] sm:$0xff]  ;;  %v36_v33 = vld [vmem:[%s1030_s0 + $0xb0] sm:$0xff] }
   0xc   :  { %415 = vst [vmem:[%s1033_s3 + $0x18] sm:$0xff] %v351_v35  ;;  %v94_v41 = vmul.f32 %v508_v1, %v23_v30  ;;  %v95_v42 = vmul.f32 %v508_v1, %v24_v31  ;;  %416 = vst [vmem:[%s1033_s3 + $0x20] sm:$0xff] %v352_v39  ;;  %v353_v46 = vsel %vm225_vm5, %v161_v24, %v289_v36  ;;  %v290_v47 = vmul.f32 0.2, %v162_v37 }
   0xd   :  { %vm227_vm7 = vcmp.ge.f32.partialorder %v163_v38, 0.0  ;;  %417 = vst [vmem:[%s1033_s3 + $0x28] sm:$0xff] %v353_v46  ;;  %v291_v48 = vmul.f32 0.2, %v163_v38  ;;  %v164_v49 = vadd.f32 %v513_v2, %v93_v40  ;;  %v96_v53 = vmul.f32 %v508_v1, %v25_v43  ;;  %v37_v40 = vld [vmem:[%s1030_s0 + $0xb8] sm:$0xff]  ;;  %v39_v46 = vld [vmem:[%s1030_s0 + $0xc8] sm:$0xff] }
   0xe   :  { %v165_v50 = vadd.f32 %v513_v2, %v94_v41  ;;  %v166_v51 = vadd.f32 %v513_v2, %v95_v42  ;;  %v354_v52 = vsel %vm226_vm6, %v162_v37, %v290_v47  ;;  %v97_v54 = vmul.f32 %v508_v1, %v26_v44  ;;  %v40_v47 = vld [vmem:[%s1030_s0 + $0xd0] sm:$0xff] }
   0xf   :  { %v98_v55 = vmul.f32 %v508_v1, %v27_v45  ;;  %418 = vst [vmem:[%s1033_s3 + $0x30] sm:$0xff] %v354_v52  ;;  %v355_v57 = vsel %vm227_vm7, %v163_v38, %v291_v48  ;;  %vm228_vm8 = vcmp.ge.f32.partialorder %v164_v49, 0.0  ;;  %v292_v58 = vmul.f32 0.2, %v164_v49  ;;  %v38_v45 = vld [vmem:[%s1030_s0 + $0xc0] sm:$0xff] }
  0x10   :  { %vm229_vm9 = vcmp.ge.f32.partialorder %v165_v50, 0.0  ;;  %419 = vst [vmem:[%s1033_s3 + $0x38] sm:$0xff] %v355_v57  ;;  %v293_v59 = vmul.f32 0.2, %v165_v50  ;;  %vm230_vm10 = vcmp.ge.f32.partialorder %v166_v51, 0.0  ;;  %v167_v61 = vadd.f32 %v513_v2, %v96_v53 }
  0x11   :  { %v294_v60 = vmul.f32 0.2, %v166_v51  ;;  %v356_v62 = vsel %vm228_vm8, %v164_v49, %v292_v58  ;;  %v168_v63 = vadd.f32 %v513_v2, %v97_v54  ;;  %v169_v0 = vadd.f32 %v513_v2, %v98_v55  ;;  %v41_v58 = vld [vmem:[%s1030_s0 + $0xd8] sm:$0xff] }
  0x12   :  { %v99_v3 = vmul.f32 %v508_v1, %v28_v56  ;;  %420 = vst [vmem:[%s1033_s3 + $0x40] sm:$0xff] %v356_v62  ;;  %v357_v6 = vsel %vm229_vm9, %v165_v50, %v293_v59  ;;  %vm231_vm11 = vcmp.ge.f32.partialorder %v167_v61, 0.0  ;;  %v295_v8 = vmul.f32 0.2, %v167_v61  ;;  %v42_v59 = vld [vmem:[%s1030_s0 + $0xe0] sm:$0xff] }
  0x13   :  { %v358_v7 = vsel %vm230_vm10, %v166_v51, %v294_v60  ;;  %421 = vst [vmem:[%s1033_s3 + $0x48] sm:$0xff] %v357_v6  ;;  %vm232_vm12 = vcmp.ge.f32.partialorder %v168_v63, 0.0  ;;  %v296_v11 = vmul.f32 0.2, %v168_v63  ;;  %vm233_vm13 = vcmp.ge.f32.partialorder %v169_v0, 0.0 }
  0x14   :  { %422 = vst [vmem:[%s1033_s3 + $0x50] sm:$0xff] %v358_v7  ;;  %v297_v12 = vmul.f32 0.2, %v169_v0  ;;  %v359_v13 = vsel %vm231_vm11, %v167_v61, %v295_v8  ;;  %v170_v14 = vadd.f32 %v513_v2, %v99_v3  ;;  %v100_v15 = vmul.f32 %v508_v1, %v29_v4 }
  0x15   :  { %v101_v16 = vmul.f32 %v508_v1, %v30_v5  ;;  %423 = vst [vmem:[%s1033_s3 + $0x58] sm:$0xff] %v359_v13  ;;  %v360_v19 = vsel %vm232_vm12, %v168_v63, %v296_v11  ;;  %v102_v21 = vmul.f32 %v508_v1, %v31_v9  ;;  %v103_v22 = vmul.f32 %v508_v1, %v32_v10  ;;  %v43_v10 = vld [vmem:[%s1030_s0 + $0xe8] sm:$0xff]  ;;  %v44_v11 = vld [vmem:[%s1030_s0 + $0xf0] sm:$0xff] }
  0x16   :  { %v361_v20 = vsel %vm233_vm13, %v169_v0, %v297_v12  ;;  %424 = vst [vmem:[%s1033_s3 + $0x60] sm:$0xff] %v360_v19  ;;  %vm234_vm14 = vcmp.ge.f32.partialorder %v170_v14, 0.0  ;;  %v298_v23 = vmul.f32 0.2, %v170_v14  ;;  %v171_v24 = vadd.f32 %v513_v2, %v100_v15 }
  0x17   :  { %425 = vst [vmem:[%s1033_s3 + $0x68] sm:$0xff] %v361_v20  ;;  %v172_v25 = vadd.f32 %v513_v2, %v101_v16  ;;  %v173_v26 = vadd.f32 %v513_v2, %v102_v21  ;;  %v174_v27 = vadd.f32 %v513_v2, %v103_v22  ;;  %v104_v28 = vmul.f32 %v508_v1, %v33_v17 }
  0x18   :  { %v105_v29 = vmul.f32 %v508_v1, %v34_v18  ;;  %v362_v30 = vsel %vm234_vm14, %v170_v14, %v298_v23  ;;  %vm235_vm15 = vcmp.ge.f32.partialorder %v171_v24, 0.0  ;;  %v299_v31 = vmul.f32 0.2, %v171_v24  ;;  %v45_v18 = vld [vmem:[%s1030_s0 + $0xf8] sm:$0xff]  ;;  %v46_v23 = vld [vmem:[%s1030_s0 + $0x100] sm:$0xff] }
  0x19   :  { %vm236_vm0 = vcmp.ge.f32.partialorder %v172_v25, 0.0  ;;  %426 = vst [vmem:[%s1033_s3 + $0x70] sm:$0xff] %v362_v30  ;;  %v300_v34 = vmul.f32 0.2, %v172_v25  ;;  %vm237_vm1 = vcmp.ge.f32.partialorder %v173_v26, 0.0  ;;  %vm238_vm2 = vcmp.ge.f32.partialorder %v174_v27, 0.0 }
  0x1a   :  { %v301_v35 = vmul.f32 0.2, %v173_v26  ;;  %v363_v36 = vsel %vm235_vm15, %v171_v24, %v299_v31  ;;  %v302_v37 = vmul.f32 0.2, %v174_v27  ;;  %v175_v38 = vadd.f32 %v513_v2, %v104_v28  ;;  %v47_v24 = vld [vmem:[%s1030_s0 + $0x108] sm:$0xff] }
  0x1b   :  { %v176_v39 = vadd.f32 %v513_v2, %v105_v29  ;;  %427 = vst [vmem:[%s1033_s3 + $0x78] sm:$0xff] %v363_v36  ;;  %v364_v41 = vsel %vm236_vm0, %v172_v25, %v300_v34  ;;  %v106_v43 = vmul.f32 %v508_v1, %v35_v32  ;;  %v107_v44 = vmul.f32 %v508_v1, %v36_v33  ;;  %v48_v25 = vld [vmem:[%s1030_s0 + $0x110] sm:$0xff]  ;;  %v49_v36 = vld [vmem:[%s1030_s0 + $0x118] sm:$0xff] }
  0x1c   :  { %v365_v42 = vsel %vm237_vm1, %v173_v26, %v301_v35  ;;  %428 = vst [vmem:[%s1033_s3 + $0x80] sm:$0xff] %v364_v41  ;;  %v366_v48 = vsel %vm238_vm2, %v174_v27, %v302_v37  ;;  %vm239_vm3 = vcmp.ge.f32.partialorder %v175_v38, 0.0  ;;  %v303_v49 = vmul.f32 0.2, %v175_v38  ;;  %v50_v37 = vld [vmem:[%s1030_s0 + $0x120] sm:$0xff] }
  0x1d   :  { %429 = vst [vmem:[%s1033_s3 + $0x88] sm:$0xff] %v365_v42  ;;  %vm240_vm4 = vcmp.ge.f32.partialorder %v176_v39, 0.0  ;;  %430 = vst [vmem:[%s1033_s3 + $0x90] sm:$0xff] %v366_v48  ;;  %v304_v50 = vmul.f32 0.2, %v176_v39  ;;  %v177_v51 = vadd.f32 %v513_v2, %v106_v43  ;;  %v178_v52 = vadd.f32 %v513_v2, %v107_v44 }
  0x1e   :  { %v108_v53 = vmul.f32 %v508_v1, %v37_v40  ;;  %v367_v54 = vsel %vm239_vm3, %v175_v38, %v303_v49  ;;  %v109_v55 = vmul.f32 %v508_v1, %v38_v45  ;;  %v110_v56 = vmul.f32 %v508_v1, %v39_v46 }
  0x1f   :  { %v111_v57 = vmul.f32 %v508_v1, %v40_v47  ;;  %431 = vst [vmem:[%s1033_s3 + $0x98] sm:$0xff] %v367_v54  ;;  %v368_v60 = vsel %vm240_vm4, %v176_v39, %v304_v50  ;;  %vm241_vm5 = vcmp.ge.f32.partialorder %v177_v51, 0.0  ;;  %v305_v61 = vmul.f32 0.2, %v177_v51  ;;  %v51_v50 = vld [vmem:[%s1030_s0 + $0x128] sm:$0xff] }
  0x20   :  { %vm242_vm6 = vcmp.ge.f32.partialorder %v178_v52, 0.0  ;;  %432 = vst [vmem:[%s1033_s3 + $0xa0] sm:$0xff] %v368_v60  ;;  %v306_v62 = vmul.f32 0.2, %v178_v52  ;;  %v179_v63 = vadd.f32 %v513_v2, %v108_v53  ;;  %v180_v0 = vadd.f32 %v513_v2, %v109_v55 }
  0x21   :  { %v181_v3 = vadd.f32 %v513_v2, %v110_v56  ;;  %v369_v4 = vsel %vm241_vm5, %v177_v51, %v305_v61  ;;  %v182_v5 = vadd.f32 %v513_v2, %v111_v57  ;;  %v112_v6 = vmul.f32 %v508_v1, %v41_v58  ;;  %v52_v51 = vld [vmem:[%s1030_s0 + $0x130] sm:$0xff]  ;;  %v53_v58 = vld [vmem:[%s1030_s0 + $0x138] sm:$0xff] }
  0x22   :  { %v113_v7 = vmul.f32 %v508_v1, %v42_v59  ;;  %433 = vst [vmem:[%s1033_s3 + $0xa8] sm:$0xff] %v369_v4  ;;  %v370_v8 = vsel %vm242_vm6, %v178_v52, %v306_v62  ;;  %vm243_vm7 = vcmp.ge.f32.partialorder %v179_v63, 0.0  ;;  %v307_v9 = vmul.f32 0.2, %v179_v63 }
  0x23   :  { %vm244_vm8 = vcmp.ge.f32.partialorder %v180_v0, 0.0  ;;  %434 = vst [vmem:[%s1033_s3 + $0xb0] sm:$0xff] %v370_v8  ;;  %v308_v12 = vmul.f32 0.2, %v180_v0  ;;  %vm245_vm9 = vcmp.ge.f32.partialorder %v181_v3, 0.0  ;;  %vm246_vm10 = vcmp.ge.f32.partialorder %v182_v5, 0.0 }
  0x24   :  { %v309_v13 = vmul.f32 0.2, %v181_v3  ;;  %v371_v14 = vsel %vm243_vm7, %v179_v63, %v307_v9  ;;  %v310_v15 = vmul.f32 0.2, %v182_v5  ;;  %v183_v16 = vadd.f32 %v513_v2, %v112_v6  ;;  %v54_v63 = vld [vmem:[%s1030_s0 + $0x140] sm:$0xff] }
  0x25   :  { %v184_v17 = vadd.f32 %v513_v2, %v113_v7  ;;  %435 = vst [vmem:[%s1033_s3 + $0xb8] sm:$0xff] %v371_v14  ;;  %v372_v19 = vsel %vm244_vm8, %v180_v0, %v308_v12  ;;  %v114_v21 = vmul.f32 %v508_v1, %v43_v10  ;;  %v115_v22 = vmul.f32 %v508_v1, %v44_v11  ;;  %v55_v0 = vld [vmem:[%s1030_s0 + $0x148] sm:$0xff]  ;;  %v57_v14 = vld [vmem:[%s1030_s0 + $0x158] sm:$0xff] }
  0x26   :  { %v373_v20 = vsel %vm245_vm9, %v181_v3, %v309_v13  ;;  %436 = vst [vmem:[%s1033_s3 + $0xc0] sm:$0xff] %v372_v19  ;;  %v374_v26 = vsel %vm246_vm10, %v182_v5, %v310_v15  ;;  %vm247_vm11 = vcmp.ge.f32.partialorder %v183_v16, 0.0  ;;  %v311_v27 = vmul.f32 0.2, %v183_v16  ;;  %v56_v3 = vld [vmem:[%s1030_s0 + $0x150] sm:$0xff]  ;;  %v58_v15 = vld [vmem:[%s1030_s0 + $0x160] sm:$0xff] }
  0x27   :  { %437 = vst [vmem:[%s1033_s3 + $0xc8] sm:$0xff] %v373_v20  ;;  %vm248_vm12 = vcmp.ge.f32.partialorder %v184_v17, 0.0  ;;  %438 = vst [vmem:[%s1033_s3 + $0xd0] sm:$0xff] %v374_v26  ;;  %v312_v28 = vmul.f32 0.2, %v184_v17  ;;  %v185_v29 = vadd.f32 %v513_v2, %v114_v21  ;;  %v186_v30 = vadd.f32 %v513_v2, %v115_v22 }
  0x28   :  { %v116_v31 = vmul.f32 %v508_v1, %v45_v18  ;;  %v375_v32 = vsel %vm247_vm11, %v183_v16, %v311_v27  ;;  %v117_v33 = vmul.f32 %v508_v1, %v46_v23  ;;  %v118_v34 = vmul.f32 %v508_v1, %v47_v24 }
  0x29   :  { %v119_v35 = vmul.f32 %v508_v1, %v48_v25  ;;  %439 = vst [vmem:[%s1033_s3 + $0xd8] sm:$0xff] %v375_v32  ;;  %v376_v38 = vsel %vm248_vm12, %v184_v17, %v312_v28  ;;  %vm249_vm13 = vcmp.ge.f32.partialorder %v185_v29, 0.0  ;;  %v313_v39 = vmul.f32 0.2, %v185_v29  ;;  %v59_v28 = vld [vmem:[%s1030_s0 + $0x168] sm:$0xff] }
  0x2a   :  { %vm250_vm14 = vcmp.ge.f32.partialorder %v186_v30, 0.0  ;;  %440 = vst [vmem:[%s1033_s3 + $0xe0] sm:$0xff] %v376_v38  ;;  %v314_v40 = vmul.f32 0.2, %v186_v30  ;;  %v187_v41 = vadd.f32 %v513_v2, %v116_v31  ;;  %v188_v42 = vadd.f32 %v513_v2, %v117_v33 }
  0x2b   :  { %v189_v43 = vadd.f32 %v513_v2, %v118_v34  ;;  %v377_v44 = vsel %vm249_vm13, %v185_v29, %v313_v39  ;;  %v190_v45 = vadd.f32 %v513_v2, %v119_v35  ;;  %v120_v46 = vmul.f32 %v508_v1, %v49_v36  ;;  %v60_v29 = vld [vmem:[%s1030_s0 + $0x170] sm:$0xff]  ;;  %v61_v36 = vld [vmem:[%s1030_s0 + $0x178] sm:$0xff] }
  0x2c   :  { %v121_v47 = vmul.f32 %v508_v1, %v50_v37  ;;  %441 = vst [vmem:[%s1033_s3 + $0xe8] sm:$0xff] %v377_v44  ;;  %v378_v48 = vsel %vm250_vm14, %v186_v30, %v314_v40  ;;  %vm251_vm15 = vcmp.ge.f32.partialorder %v187_v41, 0.0  ;;  %v315_v49 = vmul.f32 0.2, %v187_v41 }
  0x2d   :  { %vm252_vm0 = vcmp.ge.f32.partialorder %v188_v42, 0.0  ;;  %442 = vst [vmem:[%s1033_s3 + $0xf0] sm:$0xff] %v378_v48  ;;  %v316_v52 = vmul.f32 0.2, %v188_v42  ;;  %vm253_vm1 = vcmp.ge.f32.partialorder %v189_v43, 0.0  ;;  %vm254_vm2 = vcmp.ge.f32.partialorder %v190_v45, 0.0 }
  0x2e   :  { %v317_v53 = vmul.f32 0.2, %v189_v43  ;;  %v379_v54 = vsel %vm251_vm15, %v187_v41, %v315_v49  ;;  %v318_v55 = vmul.f32 0.2, %v190_v45  ;;  %v191_v56 = vadd.f32 %v513_v2, %v120_v46  ;;  %v62_v41 = vld [vmem:[%s1030_s0 + $0x180] sm:$0xff] }
  0x2f   :  { %v192_v57 = vadd.f32 %v513_v2, %v121_v47  ;;  %443 = vst [vmem:[%s1033_s3 + $0xf8] sm:$0xff] %v379_v54  ;;  %v380_v59 = vsel %vm252_vm0, %v188_v42, %v316_v52  ;;  %v122_v61 = vmul.f32 %v508_v1, %v51_v50  ;;  %v123_v62 = vmul.f32 %v508_v1, %v52_v51  ;;  %v63_v42 = vld [vmem:[%s1030_s0 + $0x188] sm:$0xff]  ;;  %v65_v54 = vld [vmem:[%s1030_s0 + $0x198] sm:$0xff] }
  0x30   :  { %v381_v60 = vsel %vm253_vm1, %v189_v43, %v317_v53  ;;  %444 = vst [vmem:[%s1033_s3 + $0x100] sm:$0xff] %v380_v59  ;;  %v382_v4 = vsel %vm254_vm2, %v190_v45, %v318_v55  ;;  %vm255_vm3 = vcmp.ge.f32.partialorder %v191_v56, 0.0  ;;  %v319_v5 = vmul.f32 0.2, %v191_v56  ;;  %v64_v43 = vld [vmem:[%s1030_s0 + $0x190] sm:$0xff]  ;;  %v66_v55 = vld [vmem:[%s1030_s0 + $0x1a0] sm:$0xff] }
  0x31   :  { %445 = vst [vmem:[%s1033_s3 + $0x108] sm:$0xff] %v381_v60  ;;  %vm256_vm4 = vcmp.ge.f32.partialorder %v192_v57, 0.0  ;;  %446 = vst [vmem:[%s1033_s3 + $0x110] sm:$0xff] %v382_v4  ;;  %v320_v6 = vmul.f32 0.2, %v192_v57  ;;  %v193_v7 = vadd.f32 %v513_v2, %v122_v61  ;;  %v194_v8 = vadd.f32 %v513_v2, %v123_v62 }
  0x32   :  { %v124_v9 = vmul.f32 %v508_v1, %v53_v58  ;;  %v383_v10 = vsel %vm255_vm3, %v191_v56, %v319_v5  ;;  %v125_v11 = vmul.f32 %v508_v1, %v54_v63  ;;  %v126_v12 = vmul.f32 %v508_v1, %v55_v0 }
  0x33   :  { %v127_v13 = vmul.f32 %v508_v1, %v56_v3  ;;  %447 = vst [vmem:[%s1033_s3 + $0x118] sm:$0xff] %v383_v10  ;;  %v384_v16 = vsel %vm256_vm4, %v192_v57, %v320_v6  ;;  %vm257_vm5 = vcmp.ge.f32.partialorder %v193_v7, 0.0  ;;  %v321_v17 = vmul.f32 0.2, %v193_v7  ;;  %v67_v6 = vld [vmem:[%s1030_s0 + $0x1a8] sm:$0xff] }
  0x34   :  { %vm258_vm6 = vcmp.ge.f32.partialorder %v194_v8, 0.0  ;;  %448 = vst [vmem:[%s1033_s3 + $0x120] sm:$0xff] %v384_v16  ;;  %v322_v18 = vmul.f32 0.2, %v194_v8  ;;  %v195_v19 = vadd.f32 %v513_v2, %v124_v9  ;;  %v196_v20 = vadd.f32 %v513_v2, %v125_v11 }
  0x35   :  { %v197_v21 = vadd.f32 %v513_v2, %v126_v12  ;;  %v385_v22 = vsel %vm257_vm5, %v193_v7, %v321_v17  ;;  %v198_v23 = vadd.f32 %v513_v2, %v127_v13  ;;  %v128_v24 = vmul.f32 %v508_v1, %v57_v14  ;;  %v68_v7 = vld [vmem:[%s1030_s0 + $0x1b0] sm:$0xff]  ;;  %v69_v14 = vld [vmem:[%s1030_s0 + $0x1b8] sm:$0xff] }
  0x36   :  { %v129_v25 = vmul.f32 %v508_v1, %v58_v15  ;;  %449 = vst [vmem:[%s1033_s3 + $0x128] sm:$0xff] %v385_v22  ;;  %v386_v26 = vsel %vm258_vm6, %v194_v8, %v322_v18  ;;  %vm259_vm7 = vcmp.ge.f32.partialorder %v195_v19, 0.0  ;;  %v323_v27 = vmul.f32 0.2, %v195_v19 }
  0x37   :  { %vm260_vm8 = vcmp.ge.f32.partialorder %v196_v20, 0.0  ;;  %450 = vst [vmem:[%s1033_s3 + $0x130] sm:$0xff] %v386_v26  ;;  %v324_v30 = vmul.f32 0.2, %v196_v20  ;;  %vm261_vm9 = vcmp.ge.f32.partialorder %v197_v21, 0.0  ;;  %vm262_vm10 = vcmp.ge.f32.partialorder %v198_v23, 0.0 }
  0x38   :  { %v325_v31 = vmul.f32 0.2, %v197_v21  ;;  %v387_v32 = vsel %vm259_vm7, %v195_v19, %v323_v27  ;;  %v326_v33 = vmul.f32 0.2, %v198_v23  ;;  %v199_v34 = vadd.f32 %v513_v2, %v128_v24  ;;  %v70_v19 = vld [vmem:[%s1030_s0 + $0x1c0] sm:$0xff] }
  0x39   :  { %v200_v35 = vadd.f32 %v513_v2, %v129_v25  ;;  %451 = vst [vmem:[%s1033_s3 + $0x138] sm:$0xff] %v387_v32  ;;  %v388_v37 = vsel %vm260_vm8, %v196_v20, %v324_v30  ;;  %v130_v39 = vmul.f32 %v508_v1, %v59_v28  ;;  %v131_v40 = vmul.f32 %v508_v1, %v60_v29  ;;  %v71_v20 = vld [vmem:[%s1030_s0 + $0x1c8] sm:$0xff]  ;;  %v73_v32 = vld [vmem:[%s1030_s0 + $0x1d8] sm:$0xff] }
  0x3a   :  { %v389_v38 = vsel %vm261_vm9, %v197_v21, %v325_v31  ;;  %452 = vst [vmem:[%s1033_s3 + $0x140] sm:$0xff] %v388_v37  ;;  %v390_v44 = vsel %vm262_vm10, %v198_v23, %v326_v33  ;;  %vm263_vm11 = vcmp.ge.f32.partialorder %v199_v34, 0.0  ;;  %v327_v45 = vmul.f32 0.2, %v199_v34  ;;  %v72_v21 = vld [vmem:[%s1030_s0 + $0x1d0] sm:$0xff]  ;;  %v74_v33 = vld [vmem:[%s1030_s0 + $0x1e0] sm:$0xff] }
  0x3b   :  { %453 = vst [vmem:[%s1033_s3 + $0x148] sm:$0xff] %v389_v38  ;;  %vm264_vm12 = vcmp.ge.f32.partialorder %v200_v35, 0.0  ;;  %454 = vst [vmem:[%s1033_s3 + $0x150] sm:$0xff] %v390_v44  ;;  %v328_v46 = vmul.f32 0.2, %v200_v35  ;;  %v201_v47 = vadd.f32 %v513_v2, %v130_v39  ;;  %v202_v48 = vadd.f32 %v513_v2, %v131_v40 }
  0x3c   :  { %v132_v49 = vmul.f32 %v508_v1, %v61_v36  ;;  %v391_v50 = vsel %vm263_vm11, %v199_v34, %v327_v45  ;;  %v133_v51 = vmul.f32 %v508_v1, %v62_v41  ;;  %v134_v52 = vmul.f32 %v508_v1, %v63_v42 }
  0x3d   :  { %v135_v53 = vmul.f32 %v508_v1, %v64_v43  ;;  %455 = vst [vmem:[%s1033_s3 + $0x158] sm:$0xff] %v391_v50  ;;  %v392_v56 = vsel %vm264_vm12, %v200_v35, %v328_v46  ;;  %vm265_vm13 = vcmp.ge.f32.partialorder %v201_v47, 0.0  ;;  %v329_v57 = vmul.f32 0.2, %v201_v47  ;;  %v75_v46 = vld [vmem:[%s1030_s0 + $0x1e8] sm:$0xff] }
  0x3e   :  { %vm266_vm14 = vcmp.ge.f32.partialorder %v202_v48, 0.0  ;;  %456 = vst [vmem:[%s1033_s3 + $0x160] sm:$0xff] %v392_v56  ;;  %v330_v58 = vmul.f32 0.2, %v202_v48  ;;  %v203_v59 = vadd.f32 %v513_v2, %v132_v49  ;;  %v204_v60 = vadd.f32 %v513_v2, %v133_v51 }
  0x3f   :  { %v205_v61 = vadd.f32 %v513_v2, %v134_v52  ;;  %v393_v62 = vsel %vm265_vm13, %v201_v47, %v329_v57  ;;  %v206_v63 = vadd.f32 %v513_v2, %v135_v53  ;;  %v136_v0 = vmul.f32 %v508_v1, %v65_v54  ;;  %v76_v47 = vld [vmem:[%s1030_s0 + $0x1f0] sm:$0xff]  ;;  %v77_v54 = vld [vmem:[%s1030_s0 + $0x1f8] sm:$0xff] }
  0x40   :  { %v137_v3 = vmul.f32 %v508_v1, %v66_v55  ;;  %457 = vst [vmem:[%s1033_s3 + $0x168] sm:$0xff] %v393_v62  ;;  %v394_v4 = vsel %vm266_vm14, %v202_v48, %v330_v58  ;;  %vm267_vm15 = vcmp.ge.f32.partialorder %v203_v59, 0.0  ;;  %v331_v5 = vmul.f32 0.2, %v203_v59 }
  0x41   :  { %vm268_vm0 = vcmp.ge.f32.partialorder %v204_v60, 0.0  ;;  %458 = vst [vmem:[%s1033_s3 + $0x170] sm:$0xff] %v394_v4  ;;  %v332_v8 = vmul.f32 0.2, %v204_v60  ;;  %vm269_vm1 = vcmp.ge.f32.partialorder %v205_v61, 0.0  ;;  %vm270_vm2 = vcmp.ge.f32.partialorder %v206_v63, 0.0 }
  0x42   :  { %v333_v9 = vmul.f32 0.2, %v205_v61  ;;  %v395_v10 = vsel %vm267_vm15, %v203_v59, %v331_v5  ;;  %v334_v11 = vmul.f32 0.2, %v206_v63  ;;  %v207_v12 = vadd.f32 %v513_v2, %v136_v0 }
  0x43   :  { %v208_v13 = vadd.f32 %v513_v2, %v137_v3  ;;  %459 = vst [vmem:[%s1033_s3 + $0x178] sm:$0xff] %v395_v10  ;;  %v396_v15 = vsel %vm268_vm0, %v204_v60, %v332_v8  ;;  %v138_v17 = vmul.f32 %v508_v1, %v67_v6  ;;  %v139_v18 = vmul.f32 %v508_v1, %v68_v7 }
  0x44   :  { %v397_v16 = vsel %vm269_vm1, %v205_v61, %v333_v9  ;;  %460 = vst [vmem:[%s1033_s3 + $0x180] sm:$0xff] %v396_v15  ;;  %v398_v22 = vsel %vm270_vm2, %v206_v63, %v334_v11  ;;  %vm271_vm3 = vcmp.ge.f32.partialorder %v207_v12, 0.0  ;;  %v335_v23 = vmul.f32 0.2, %v207_v12 }
  0x45   :  { %461 = vst [vmem:[%s1033_s3 + $0x188] sm:$0xff] %v397_v16  ;;  %vm272_vm4 = vcmp.ge.f32.partialorder %v208_v13, 0.0  ;;  %462 = vst [vmem:[%s1033_s3 + $0x190] sm:$0xff] %v398_v22  ;;  %v336_v24 = vmul.f32 0.2, %v208_v13  ;;  %v209_v25 = vadd.f32 %v513_v2, %v138_v17  ;;  %v210_v26 = vadd.f32 %v513_v2, %v139_v18 }
  0x46   :  { %v140_v27 = vmul.f32 %v508_v1, %v69_v14  ;;  %v399_v28 = vsel %vm271_vm3, %v207_v12, %v335_v23  ;;  %v141_v29 = vmul.f32 %v508_v1, %v70_v19  ;;  %v142_v30 = vmul.f32 %v508_v1, %v71_v20 }
  0x47   :  { %v143_v31 = vmul.f32 %v508_v1, %v72_v21  ;;  %463 = vst [vmem:[%s1033_s3 + $0x198] sm:$0xff] %v399_v28  ;;  %v400_v34 = vsel %vm272_vm4, %v208_v13, %v336_v24  ;;  %vm273_vm5 = vcmp.ge.f32.partialorder %v209_v25, 0.0  ;;  %v337_v35 = vmul.f32 0.2, %v209_v25 }
  0x48   :  { %vm274_vm6 = vcmp.ge.f32.partialorder %v210_v26, 0.0  ;;  %464 = vst [vmem:[%s1033_s3 + $0x1a0] sm:$0xff] %v400_v34  ;;  %v338_v36 = vmul.f32 0.2, %v210_v26  ;;  %v211_v37 = vadd.f32 %v513_v2, %v140_v27  ;;  %v212_v38 = vadd.f32 %v513_v2, %v141_v29 }
  0x49   :  { %v213_v39 = vadd.f32 %v513_v2, %v142_v30  ;;  %v401_v40 = vsel %vm273_vm5, %v209_v25, %v337_v35  ;;  %v214_v41 = vadd.f32 %v513_v2, %v143_v31  ;;  %v144_v42 = vmul.f32 %v508_v1, %v73_v32 }
  0x4a   :  { %v145_v43 = vmul.f32 %v508_v1, %v74_v33  ;;  %465 = vst [vmem:[%s1033_s3 + $0x1a8] sm:$0xff] %v401_v40  ;;  %v402_v44 = vsel %vm274_vm6, %v210_v26, %v338_v36  ;;  %vm275_vm7 = vcmp.ge.f32.partialorder %v211_v37, 0.0  ;;  %v339_v45 = vmul.f32 0.2, %v211_v37 }
  0x4b   :  { %vm276_vm8 = vcmp.ge.f32.partialorder %v212_v38, 0.0  ;;  %466 = vst [vmem:[%s1033_s3 + $0x1b0] sm:$0xff] %v402_v44  ;;  %v340_v48 = vmul.f32 0.2, %v212_v38  ;;  %vm277_vm9 = vcmp.ge.f32.partialorder %v213_v39, 0.0  ;;  %vm278_vm10 = vcmp.ge.f32.partialorder %v214_v41, 0.0 }
  0x4c   :  { %v341_v49 = vmul.f32 0.2, %v213_v39  ;;  %v403_v50 = vsel %vm275_vm7, %v211_v37, %v339_v45  ;;  %v342_v51 = vmul.f32 0.2, %v214_v41  ;;  %v215_v52 = vadd.f32 %v513_v2, %v144_v42 }
  0x4d   :  { %v216_v53 = vadd.f32 %v513_v2, %v145_v43  ;;  %467 = vst [vmem:[%s1033_s3 + $0x1b8] sm:$0xff] %v403_v50  ;;  %v404_v55 = vsel %vm276_vm8, %v212_v38, %v340_v48  ;;  %v146_v57 = vmul.f32 %v508_v1, %v75_v46  ;;  %v147_v58 = vmul.f32 %v508_v1, %v76_v47 }
  0x4e   :  { %v405_v56 = vsel %vm277_vm9, %v213_v39, %v341_v49  ;;  %468 = vst [vmem:[%s1033_s3 + $0x1c0] sm:$0xff] %v404_v55  ;;  %v406_v59 = vsel %vm278_vm10, %v214_v41, %v342_v51  ;;  %vm279_vm11 = vcmp.ge.f32.partialorder %v215_v52, 0.0  ;;  %v343_v60 = vmul.f32 0.2, %v215_v52 }
  0x4f   :  { %469 = vst [vmem:[%s1033_s3 + $0x1c8] sm:$0xff] %v405_v56  ;;  %vm280_vm12 = vcmp.ge.f32.partialorder %v216_v53, 0.0  ;;  %470 = vst [vmem:[%s1033_s3 + $0x1d0] sm:$0xff] %v406_v59  ;;  %v344_v61 = vmul.f32 0.2, %v216_v53  ;;  %v217_v62 = vadd.f32 %v513_v2, %v146_v57  ;;  %v218_v63 = vadd.f32 %v513_v2, %v147_v58 }
  0x50   :  { %v148_v0 = vmul.f32 %v508_v1, %v77_v54  ;;  %v407_v3 = vsel %vm279_vm11, %v215_v52, %v343_v60 }
  0x51   :  { %471 = vst [vmem:[%s1033_s3 + $0x1d8] sm:$0xff] %v407_v3  ;;  %v408_v4 = vsel %vm280_vm12, %v216_v53, %v344_v61  ;;  %vm281_vm13 = vcmp.ge.f32.partialorder %v217_v62, 0.0  ;;  %v345_v5 = vmul.f32 0.2, %v217_v62  ;;  %vm282_vm14 = vcmp.ge.f32.partialorder %v218_v63, 0.0 }
  0x52   :  { %472 = vst [vmem:[%s1033_s3 + $0x1e0] sm:$0xff] %v408_v4  ;;  %v346_v6 = vmul.f32 0.2, %v218_v63  ;;  %v219_v7 = vadd.f32 %v513_v2, %v148_v0 }
  0x53   :  { %v409_v8 = vsel %vm281_vm13, %v217_v62, %v345_v5 }
  0x54   :  { %473 = vst [vmem:[%s1033_s3 + $0x1e8] sm:$0xff] %v409_v8  ;;  %v410_v1 = vsel %vm282_vm14, %v218_v63, %v346_v6  ;;  %vm283_vm15 = vcmp.ge.f32.partialorder %v219_v7, 0.0  ;;  %v347_v9 = vmul.f32 0.2, %v219_v7 }
  0x55   :  { %474 = vst [vmem:[%s1033_s3 + $0x1f0] sm:$0xff] %v410_v1 }
  0x56   :  { %v411_v10 = vsel %vm283_vm15, %v219_v7, %v347_v9 }
  0x57   :  { %475 = vst [vmem:[%s1033_s3 + $0x1f8] sm:$0xff] %v411_v10 }

// kernel: double_conv_block.4
= control target key start
LH: loop header
LB: loop body
LE: loop exit
PB: predicated region body
PF: predicated region fallthrough
CT: control target
= control target key end

     0   :  { %s5108_s12 = smov 0   ;;  %s5987_s0 = inlined_call_operand.vmem [shape: bf16[2,18,18,4], index: 0, kind: input, shape index: {}]   ;;  %s5988_s1 = inlined_call_operand.vmem [shape: bf16[9,4,128], index: 1, kind: input, shape index: {}]   ;;  %s5989_s2 = inlined_call_operand.vmem [shape: f32[512,128], index: 2, kind: output, shape index: {0}]   ;;  %s5990_s3 = inlined_call_operand.vmem [shape: f32[2,2,128], index: 3, kind: output, shape index: {1}]  }
   0x1 LB: > { %s5114_s13 = sadd.s32 4294967295, %s5086_s12   ;;  %p3929_p0 = scmp.ge.s32.totalorder %s5086_s12, 1  ;;  %s5086_s12 = sphi %s5108_s12, %s14_s12  }
   0x2   : > { %p140_p1 = scmp.lt.s32.totalorder %s5086_s12, 3 }
   0x4   : > { %p141_p2 = pnand %p3929_p0, %p140_p1 }
   0x5   : > { %v284_v0 = vld [vmem:[%s5988_s1] sm:$0x3] (!%p141_p2)  ;;  %vm414_vm0 = vcmask (!%p141_p2), 1041408   ;;  %p168_p3 = scmp.lt.s32.totalorder (!%p141_p2), %s5114_s13, 1  ;;  %v3966_v2 = vld [vmem:[%s5988_s1 + $0x6] sm:$0x3] (!%p141_p2) }
   0x6   : > { %144 = sbr.rel (%p141_p2) target bundleno = 557 (0x22d), region = 28  ;;  %5037 = vmatprep.subr.msk.bf16.mxu1 (!%p141_p2), %vm414_vm0, %v284_v0  ;;  %v416_v1 = vsel (!%p141_p2), %vm414_vm0, %v284_v0, 0  ;;  %v4035_v3 = vld [vmem:[%s5988_s1 + $0x8] sm:$0x3] (!%p141_p2)  ;;  %v4053_v5 = vld [vmem:[%s5988_s1 + $0xe] sm:$0x3] (!%p141_p2) }
   0x7   : > { %4314 = vmatpush3.bf16.msra.mxu1 (!%p141_p2), %v416_v1  ;;  %5041 = vmatprep.subr.msk.bf16.mxu0 (!%p141_p2), %vm414_vm0, %v4035_v3  ;;  %v5135_v4 = vsel (!%p141_p2), %vm414_vm0, %v4035_v3, 0  ;;  %vm365_vm1 = vcmask (!%p141_p2), 31744   ;;  %vm1237_vm2 = vsmask.f32 (!%p141_p2), 3328  ;;  %vm1238_vm3 = vsmask.f32 (!%p141_p2), 7440 }
   0x8   : > { %5038 = vmatprep.subr.msk.bf16.mxu1 (!%p141_p2), %vm414_vm0, %v3966_v2  ;;  %4450 = vmatpush3.bf16.msra.mxu0 (!%p141_p2), %v5135_v4  ;;  %v5153_v7 = vld [vmem:[%s5988_s1 + $0xc] sm:$0x3] (!%p141_p2)  ;;  %v686_v9 = vsel (!%p141_p2), %vm414_vm0, %v3966_v2, 0  ;;  %v5166_v11 = vsel (!%p141_p2), %vm414_vm0, %v4053_v5, 0  ;;  %vm5186_vm4 = vmor (!%p141_p2), %vm1237_vm2, %vm1238_vm3  ;;  %vm2668_vm5 = vcmask (!%p141_p2), 1042432   ;;  %vm2669_vm6 = vcmask (!%p141_p2), 1046532  }
   0x9   : > { %5043 = vmatprep.subr.msk.bf16.mxu0 (!%p141_p2), %vm414_vm0, %v4053_v5  ;;  %vm5508_vm7 = vmor (!%p141_p2), %vm2668_vm5, %vm2669_vm6  ;;  %s3931_s14 = sshll.u32 (!%p141_p2), %s5114_s13, 5  ;;  %vm3835_vm8 = vcmask (!%p141_p2), 1040384  }
   0xa   : > { %p174_p4 = scmp.lt.s32.totalorder (!%p141_p2), %s3931_s14, 63 }
   0xd   : > { %s5131_s20 = scalar_select %p168_p3, %s5114_s13, 1 }
   0xe   : > { %s5996_s14 = smov (!%p174_p4, %s3931_s14), 63 }
   0xf   : > { %s5047_s23 = smul.u32 216, %s5131_s20  ;;  %s3932_s15 = sshll.u32 %s5996_s14, 3 }
  0x10   : > { %s5900_s18 = scalar_lea.vmem %s5989_s2, %s3932_s15  ;;  %s3933_s13 = sshll.u32 %s5131_s20, 1 }
  0x11   : > { %s5147_s26 = scalar_lea.vmem %s5987_s0, %s5047_s23  ;;  %s182_s22 = scalar_lea.vmem %s5990_s3, %s3933_s13 }
  0x12   : > { %v5057_v6 = vld [vmem:[%s5147_s26] sm:$0xff]   ;;  %v5156_v8 = vld [vmem:[%s5147_s26 + $0xc] sm:$0xff]   ;;  %v5161_v10 = vld [vmem:[%s5147_s26 + $0x18] sm:$0xff]  }
  0x13   : > { %4315 = vmatprep.mubr.msk.bf16.mxu1 %vm365_vm1, %v5057_v6  ;;  %v1186_v12 = vld [vmem:[%s5147_s26 + $0xc] sm:$0xf]  ;;  %v1187_v13 = vld [vmem:[%s5147_s26 + $0x10] sm:$0xf]  ;;  %v1188_v14 = vld [vmem:[%s5147_s26 + $0x14] sm:$0x1] }
  0x14   : > { %4316 = vmatmul.mubr.msk.bf16.vlgmr.msra.gmra.mrb[0].mxu1 %vm365_vm1, %v5156_v8  ;;  %v5174_v15 = vld [vmem:[%s5147_s26 + $0x24] sm:$0xff]   ;;  %v1265_v16 = vshrl.u32 %v1186_v12, 16  ;;  %v1268_v17 = vshll.u32 %v1186_v12, 16  ;;  %v1274_v18 = vshll.u32 %v1187_v13, 16  ;;  %v1278_v19 = vshrl.u32 %v1187_v13, 16  ;;  %v5182_v37 = vld [vmem:[%s5147_s26 + $0x30] sm:$0xff]  }
  0x15   : > { %4348 = vmatpush3.bf16.msra.mxu1 %v686_v9  ;;  %4319 = vmatprep.mubr.msk.bf16.mxu1 %vm365_vm1, %v5161_v10  ;;  %v1189_v20 = vld [vmem:[%s5147_s26 + $0x18] sm:$0xf]  ;;  %v1284_v21 = vshll.u32 %v1188_v14, 16  ;;  %v1190_v22 = vld [vmem:[%s5147_s26 + $0x1c] sm:$0xf]  ;;  %v5210_v0 = vld [vmem:[%s5147_s26 + $0x48] sm:$0xff]  }
  0x16   : > { %5039 = vmatprep.subr.msk.bf16.mxu1 %vm414_vm0, %v5153_v7  ;;  %v1191_v23 = vld [vmem:[%s5147_s26 + $0x20] sm:$0x1]  ;;  %v1289_v24 = vshrl.u32 %v1189_v20, 16  ;;  %v1267_v25 = vrot.slane %v1265_v16, 4  ;;  %v1270_v26 = vrot.slane %v1268_v17, 5  ;;  %v1276_v27 = vrot.slane %v1274_v18, 5 }
  0x17   : > { %v1280_v28 = vrot.slane %v1278_v19, 4  ;;  %v1286_v29 = vrot.slane %v1284_v21, 5  ;;  %v1292_v31 = vshll.u32 %v1189_v20, 16  ;;  %v1298_v32 = vshll.u32 %v1190_v22, 16  ;;  %v1192_v41 = vld [vmem:[%s5147_s26 + $0x24] sm:$0xf] }
  0x18   : > { %v1291_v30 = vrot.slane %v1289_v24, 4  ;;  %v1271_v33 = vor.u32 %v1270_v26, %v1267_v25  ;;  %v1302_v35 = vshrl.u32 %v1190_v22, 16  ;;  %v1308_v36 = vshll.u32 %v1191_v23, 16  ;;  %v1193_v46 = vld [vmem:[%s5147_s26 + $0x28] sm:$0xf]  ;;  %v5202_v55 = vld [vmem:[%s5147_s26 + $0x3c] sm:$0xff]  }
  0x19   : > { %v1281_v34 = vor.u32 %v1280_v28, %v1276_v27  ;;  %v1294_v39 = vrot.slane %v1292_v31, 5  ;;  %v1300_v40 = vrot.slane %v1298_v32, 5  ;;  %v1194_v48 = vld [vmem:[%s5147_s26 + $0x2c] sm:$0x1]  ;;  %v1313_v49 = vshrl.u32 %v1192_v41, 16 }
  0x1a   : > { %v1272_v42 = vrot.slane %v1271_v33, 4  ;;  %v1304_v44 = vrot.slane %v1302_v35, 4  ;;  %v1310_v45 = vrot.slane %v1308_v36, 5  ;;  %v1316_v50 = vshll.u32 %v1192_v41, 16  ;;  %v1195_v57 = vld [vmem:[%s5147_s26 + $0x30] sm:$0xf] }
  0x1b   : > { %v1282_v43 = vrot.slane %v1281_v34, 4  ;;  %v1295_v47 = vor.u32 %v1294_v39, %v1291_v30  ;;  %v1322_v51 = vshll.u32 %v1193_v46, 16  ;;  %v1326_v56 = vshrl.u32 %v1193_v46, 16  ;;  %v1196_v58 = vld [vmem:[%s5147_s26 + $0x34] sm:$0xf] }
  0x1c   : > { %4320 = vmatmul.mubr.msk.bf16.gmra.mrb[4].mxu1 %vm365_vm1, %v5174_v15  ;;  %v1277_v52 = vsel %vm5186_vm4, %v1272_v42, %v1276_v27  ;;  %v1305_v54 = vor.u32 %v1304_v44, %v1300_v40  ;;  %v1315_v61 = vrot.slane %v1313_v49, 4  ;;  %v1318_v62 = vrot.slane %v1316_v50, 5  ;;  %v1197_v63 = vld [vmem:[%s5147_s26 + $0x38] sm:$0x1]  ;;  %v1198_v19 = vld [vmem:[%s5147_s26 + $0x3c] sm:$0xf] }
  0x1d   : > { %4323 = vmatprep.mubr.msk.bf16.mxu1 %vm365_vm1, %v5182_v37  ;;  %v1287_v53 = vsel %vm5186_vm4, %v1282_v43, %v1286_v29  ;;  %v1296_v60 = vrot.slane %v1295_v47, 4  ;;  %v1324_v2 = vrot.slane %v1322_v51, 5  ;;  %v1328_v3 = vrot.slane %v1326_v56, 4  ;;  %v1199_v24 = vld [vmem:[%s5147_s26 + $0x40] sm:$0xf] }
  0x1e   : > { %v5206_v59 = vcombine.low %v1277_v52, %v1287_v53  ;;  %v1306_v1 = vrot.slane %v1305_v54, 4  ;;  %v1332_v5 = vshll.u32 %v1194_v48, 16  ;;  %v1319_v9 = vor.u32 %v1318_v62, %v1315_v61  ;;  %v5227_v29 = vld [vmem:[%s5988_s1 + $0x4] sm:$0x3]  ;;  %v1201_v35 = vld [vmem:[%s5147_s26 + $0x48] sm:$0xf] }
  0x1f   : > { %v1301_v6 = vsel %vm5186_vm4, %v1296_v60, %v1300_v40  ;;  %v1337_v12 = vshrl.u32 %v1195_v57, 16  ;;  %v1340_v13 = vshll.u32 %v1195_v57, 16  ;;  %v1329_v16 = vor.u32 %v1328_v3, %v1324_v2  ;;  %v1200_v32 = vld [vmem:[%s5147_s26 + $0x44] sm:$0x1]  ;;  %v1202_v42 = vld [vmem:[%s5147_s26 + $0x4c] sm:$0xf] }
  0x20   : > { %4451 = vmatprep.mubr.msk.bf16.mxu0 %vm365_vm1, %v5206_v59  ;;  %v1311_v14 = vsel %vm5186_vm4, %v1306_v1, %v1310_v45  ;;  %v1334_v17 = vrot.slane %v1332_v5, 5  ;;  %v1346_v18 = vshll.u32 %v1196_v58, 16  ;;  %v1320_v21 = vrot.slane %v1319_v9, 4  ;;  %v5244_v45 = vld [vmem:[%s5147_s26 + $0x54] sm:$0xff]   ;;  %v1203_v48 = vld [vmem:[%s5147_s26 + $0x50] sm:$0x1] }
  0x21   : > { %v5219_v20 = vcombine.low %v1301_v6, %v1311_v14  ;;  %v1339_v22 = vrot.slane %v1337_v12, 4  ;;  %v1342_v23 = vrot.slane %v1340_v13, 5  ;;  %v1330_v25 = vrot.slane %v1329_v16, 4  ;;  %v5250_v52 = vld [vmem:[%s5147_s26 + $0x60] sm:$0xff]   ;;  %v1204_v5 = vld [vmem:[%s5147_s26 + $0x54] sm:$0xf] }
  0x22   : > { %v1348_v26 = vrot.slane %v1346_v18, 5  ;;  %v1350_v27 = vshrl.u32 %v1196_v58, 16  ;;  %v1356_v28 = vshll.u32 %v1197_v63, 16  ;;  %v1325_v30 = vsel %vm5186_vm4, %v1320_v21, %v1324_v2  ;;  %v1205_v14 = vld [vmem:[%s5147_s26 + $0x58] sm:$0xf] }
  0x23   : > { %4452 = vmatmul.mubr.msk.bf16.vlgmr.msra.gmra.mrb[0].mxu0 %vm365_vm1, %v5219_v20  ;;  %v1343_v31 = vor.u32 %v1342_v23, %v1339_v22  ;;  %v1361_v33 = vshrl.u32 %v1198_v19, 16  ;;  %v1364_v34 = vshll.u32 %v1198_v19, 16  ;;  %v1335_v36 = vsel %vm5186_vm4, %v1330_v25, %v1334_v17  ;;  %v1206_v21 = vld [vmem:[%s5147_s26 + $0x5c] sm:$0x1]  ;;  %v1207_v22 = vld [vmem:[%s5147_s26 + $0x60] sm:$0xf] }
  0x24   : > { %4324 = vmatmul.mubr.msk.bf16.gmra.mrb[8].mxu1 %vm365_vm1, %v5202_v55  ;;  %4484 = vmatpush3.bf16.msra.mxu0 %v5166_v11  ;;  %v1352_v39 = vrot.slane %v1350_v27, 4  ;;  %v1358_v40 = vrot.slane %v1356_v28, 5  ;;  %v1370_v41 = vshll.u32 %v1199_v24, 16  ;;  %v5241_v43 = vcombine.low %v1325_v30, %v1335_v36  ;;  %v1208_v27 = vld [vmem:[%s5147_s26 + $0x64] sm:$0xf] }
  0x25   : > { %4327 = vmatprep.mubr.msk.bf16.mxu1 %vm365_vm1, %v5210_v0  ;;  %v1344_v44 = vrot.slane %v1343_v31, 4  ;;  %v1363_v46 = vrot.slane %v1361_v33, 4  ;;  %v1366_v47 = vrot.slane %v1364_v34, 5  ;;  %5044 = vmatprep.subr.msk.bf16.mxu0 %vm414_vm0, %v5227_v29  ;;  %v1374_v50 = vshrl.u32 %v1199_v24, 16  ;;  %v5274_v31 = vld [vmem:[%s5147_s26 + $0x6c] sm:$0xff]  }
  0x26   : > { %v1353_v11 = vor.u32 %v1352_v39, %v1348_v26  ;;  %v1372_v49 = vrot.slane %v1370_v41, 5  ;;  %v1380_v51 = vshll.u32 %v1200_v32, 16  ;;  %4455 = vmatprep.mubr.msk.bf16.mxu0 %vm365_vm1, %v5241_v43  ;;  %v1385_v56 = vshrl.u32 %v1201_v35, 16  ;;  %v5280_v41 = vld [vmem:[%s5147_s26 + $0x78] sm:$0xff]  }
  0x27   : > { %v1349_v53 = vsel %vm5186_vm4, %v1344_v44, %v1348_v26  ;;  %v1367_v54 = vor.u32 %v1366_v47, %v1363_v46  ;;  %v1388_v57 = vshll.u32 %v1201_v35, 16  ;;  %v1376_v60 = vrot.slane %v1374_v50, 4 }
  0x28   : > { %v1354_v58 = vrot.slane %v1353_v11, 4  ;;  %v1382_v61 = vrot.slane %v1380_v51, 5  ;;  %v1394_v62 = vshll.u32 %v1202_v42, 16  ;;  %v1387_v1 = vrot.slane %v1385_v56, 4 }
  0x29   : > { %v1368_v63 = vrot.slane %v1367_v54, 4  ;;  %v1390_v2 = vrot.slane %v1388_v57, 5  ;;  %v1398_v3 = vshrl.u32 %v1202_v42, 16  ;;  %v1377_v9 = vor.u32 %v1376_v60, %v1372_v49 }
  0x2a   : > { %v1359_v6 = vsel %vm5186_vm4, %v1354_v58, %v1358_v40  ;;  %v1396_v12 = vrot.slane %v1394_v62, 5  ;;  %v1404_v13 = vshll.u32 %v1203_v48, 16  ;;  %v1409_v25 = vshrl.u32 %v1204_v5, 16  ;;  %v1209_v40 = vld [vmem:[%s5147_s26 + $0x68] sm:$0x1] }
  0x2b   : > { %v5262_v16 = vcombine.low %v1349_v53, %v1359_v6  ;;  %v1373_v17 = vsel %vm5186_vm4, %v1368_v63, %v1372_v49  ;;  %v1391_v18 = vor.u32 %v1390_v2, %v1387_v1  ;;  %v1400_v19 = vrot.slane %v1398_v3, 4 }
  0x2c   : > { %4328 = vmatmul.mubr.msk.bf16.gmra.mrb[12].mxu1 %vm365_vm1, %v5244_v45  ;;  %v1378_v23 = vrot.slane %v1377_v9, 4  ;;  %v1406_v24 = vrot.slane %v1404_v13, 5  ;;  %v1412_v26 = vshll.u32 %v1204_v5, 16  ;;  %v1418_v32 = vshll.u32 %v1205_v14, 16 }
  0x2d   : > { %4331 = vmatprep.mubr.msk.bf16.mxu1 %vm365_vm1, %v5250_v52  ;;  %4456 = vmatmul.mubr.msk.bf16.gmra.mrb[4].mxu0 %vm365_vm1, %v5262_v16  ;;  %v1392_v28 = vrot.slane %v1391_v18, 4  ;;  %v1401_v30 = vor.u32 %v1400_v19, %v1396_v12  ;;  %v1422_v33 = vshrl.u32 %v1205_v14, 16  ;;  %v1411_v35 = vrot.slane %v1409_v25, 4  ;;  %v5303_v14 = vld [vmem:[%s5147_s26 + $0x84] sm:$0xff]   ;;  %v1210_v25 = vld [vmem:[%s5147_s26 + $0x6c] sm:$0xf] }
  0x2e   : > { %v1383_v34 = vsel %vm5186_vm4, %v1378_v23, %v1382_v61  ;;  %v1414_v36 = vrot.slane %v1412_v26, 5  ;;  %v1428_v39 = vshll.u32 %v1206_v21, 16  ;;  %v1420_v47 = vrot.slane %v1418_v32, 5  ;;  %v5308_v21 = vld [vmem:[%s5147_s26 + $0x90] sm:$0xff]   ;;  %v5328_v26 = vld [vmem:[%s5147_s26 + $0x9c] sm:$0xff]  }
  0x2f   : > { %v5282_v42 = vcombine.low %v1373_v17, %v1383_v34  ;;  %v1397_v44 = vsel %vm5186_vm4, %v1392_v28, %v1396_v12  ;;  %v1402_v46 = vrot.slane %v1401_v30, 4  ;;  %v1424_v11 = vrot.slane %v1422_v33, 4  ;;  %v5332_v28 = vld [vmem:[%s5147_s26 + $0xa8] sm:$0xff]   ;;  %v1213_v30 = vld [vmem:[%s5147_s26 + $0x78] sm:$0xf] }
  0x30   : > { %v1415_v48 = vor.u32 %v1414_v36, %v1411_v35  ;;  %v1430_v49 = vrot.slane %v1428_v39, 5  ;;  %v1433_v50 = vshrl.u32 %v1207_v22, 16  ;;  %v1436_v53 = vshll.u32 %v1207_v22, 16  ;;  %v1214_v36 = vld [vmem:[%s5147_s26 + $0x7c] sm:$0xf] }
  0x31   : > { %4459 = vmatprep.mubr.msk.bf16.mxu0 %vm365_vm1, %v5282_v42  ;;  %v1407_v51 = vsel %vm5186_vm4, %v1402_v46, %v1406_v24  ;;  %v1442_v54 = vshll.u32 %v1208_v27, 16  ;;  %v1446_v56 = vshrl.u32 %v1208_v27, 16  ;;  %v1425_v60 = vor.u32 %v1424_v11, %v1420_v47  ;;  %v1211_v27 = vld [vmem:[%s5147_s26 + $0x70] sm:$0xf]  ;;  %v5345_v46 = vld [vmem:[%s5988_s1 + $0xa] sm:$0x3] }
  0x32   : > { %v5290_v57 = vcombine.low %v1397_v44, %v1407_v51  ;;  %v1416_v58 = vrot.slane %v1415_v48, 4  ;;  %v1435_v61 = vrot.slane %v1433_v50, 4  ;;  %v1438_v62 = vrot.slane %v1436_v53, 5  ;;  %v1216_v11 = vld [vmem:[%s5147_s26 + $0x84] sm:$0xf] }
  0x33   : > { %v1444_v63 = vrot.slane %v1442_v54, 5  ;;  %v1448_v1 = vrot.slane %v1446_v56, 4  ;;  %v1452_v2 = vshll.u32 %v1209_v40, 16  ;;  %v1426_v5 = vrot.slane %v1425_v60, 4  ;;  %v1212_v50 = vld [vmem:[%s5147_s26 + $0x74] sm:$0x1] }
  0x34   : > { %4332 = vmatmul.mubr.msk.bf16.gmra.mrb[16].mxu1 %vm365_vm1, %v5274_v31  ;;  %v1421_v3 = vsel %vm5186_vm4, %v1416_v58, %v1420_v47  ;;  %v1439_v6 = vor.u32 %v1438_v62, %v1435_v61  ;;  %v1457_v32 = vshrl.u32 %v1210_v25, 16  ;;  %v1460_v33 = vshll.u32 %v1210_v25, 16  ;;  %v5357_v56 = vld [vmem:[%s5147_s26 + $0xb4] sm:$0xff]  }
  0x35   : > { %4335 = vmatprep.mubr.msk.bf16.mxu1 %vm365_vm1, %v5280_v41  ;;  %4460 = vmatmul.mubr.msk.bf16.gmra.mrb[8].mxu0 %vm365_vm1, %v5290_v57  ;;  %v1449_v9 = vor.u32 %v1448_v1, %v1444_v63  ;;  %v1454_v12 = vrot.slane %v1452_v2, 5  ;;  %v1431_v13 = vsel %vm5186_vm4, %v1426_v5, %v1430_v49  ;;  %v1466_v34 = vshll.u32 %v1211_v27, 16  ;;  %v1217_v49 = vld [vmem:[%s5147_s26 + $0x88] sm:$0xf] }
  0x36   : > { %v5305_v17 = vcombine.low %v1421_v3, %v1431_v13  ;;  %v1440_v18 = vrot.slane %v1439_v6, 4  ;;  %v1470_v35 = vshrl.u32 %v1211_v27, 16  ;;  %v1481_v39 = vshrl.u32 %v1213_v30, 16  ;;  %v1215_v6 = vld [vmem:[%s5147_s26 + $0x80] sm:$0x1] }
  0x37   : > { %v1450_v19 = vrot.slane %v1449_v9, 4  ;;  %v1484_v40 = vshll.u32 %v1213_v30, 16  ;;  %v2914_v44 = vsel %vm414_vm0, %v5227_v29, 0  ;;  %v1459_v47 = vrot.slane %v1457_v32, 4  ;;  %v1220_v27 = vld [vmem:[%s5147_s26 + $0x94] sm:$0xf] }
  0x38   : > { %4463 = vmatprep.mubr.msk.bf16.mxu0 %vm365_vm1, %v5305_v17  ;;  %v1445_v22 = vsel %vm5186_vm4, %v1440_v18, %v1444_v63  ;;  %v1462_v48 = vrot.slane %v1460_v33, 5  ;;  %v5352_v51 = vrot.slane %v1466_v34, 5  ;;  %v1472_v53 = vrot.slane %v1470_v35, 4  ;;  %v1219_v18 = vld [vmem:[%s5147_s26 + $0x90] sm:$0xf] }
  0x39   : > { %v1455_v23 = vsel %vm5186_vm4, %v1450_v19, %v1454_v12  ;;  %v1490_v29 = vshll.u32 %v1214_v36, 16  ;;  %v1494_v54 = vshrl.u32 %v1214_v36, 16  ;;  %v1483_v58 = vrot.slane %v1481_v39, 4  ;;  %v1218_v34 = vld [vmem:[%s5147_s26 + $0x8c] sm:$0x1] }
  0x3a   : > { %v5316_v24 = vcombine.low %v1445_v22, %v1455_v23  ;;  %v1486_v60 = vrot.slane %v1484_v40, 5  ;;  %v1505_v61 = vshrl.u32 %v1216_v11, 16  ;;  %v1508_v62 = vshll.u32 %v1216_v11, 16 }
  0x3b   : > { %v1514_v63 = vshll.u32 %v1217_v49, 16  ;;  %v1518_v1 = vshrl.u32 %v1217_v49, 16  ;;  %v1463_v2 = vor.u32 %v1462_v48, %v1459_v47  ;;  %v1476_v3 = vshll.u32 %v1212_v50, 16  ;;  %v1222_v50 = vld [vmem:[%s5147_s26 + $0x9c] sm:$0xf] }
  0x3c   : > { %4336 = vmatmul.mubr.msk.bf16.gmra.mrb[20].mxu1 %vm365_vm1, %v5303_v14  ;;  %v1473_v5 = vor.u32 %v1472_v53, %v5352_v51  ;;  %v5363_v9 = vrot.slane %v1490_v29, 5  ;;  %v1496_v12 = vrot.slane %v1494_v54, 4  ;;  %v1487_v13 = vor.u32 %v1486_v60, %v1483_v58  ;;  %v1221_v58 = vld [vmem:[%s5147_s26 + $0x98] sm:$0x1]  ;;  %v1223_v60 = vld [vmem:[%s5147_s26 + $0xa0] sm:$0xf] }
  0x3d   : > { %4339 = vmatprep.mubr.msk.bf16.mxu1 %vm365_vm1, %v5308_v21  ;;  %4464 = vmatmul.mubr.msk.bf16.gmra.mrb[12].mxu0 %vm365_vm1, %v5316_v24  ;;  %v1507_v19 = vrot.slane %v1505_v61, 4  ;;  %v1510_v22 = vrot.slane %v1508_v62, 5  ;;  %v5370_v23 = vrot.slane %v1514_v63, 5  ;;  %v1520_v25 = vrot.slane %v1518_v1, 4  ;;  %v1225_v61 = vld [vmem:[%s5147_s26 + $0xa8] sm:$0xf] }
  0x3e   : > { %4485 = vmatprep.mubr.msk.bf16.mxu0 %vm365_vm1, %v5219_v20  ;;  %v1464_v30 = vrot.slane %v1463_v2, 4  ;;  %v1478_v32 = vrot.slane %v1476_v3, 5  ;;  %v1500_v33 = vshll.u32 %v1215_v6, 16  ;;  %v1474_v35 = vrot.slane %v1473_v5, 4  ;;  %v1226_v3 = vld [vmem:[%s5147_s26 + $0xac] sm:$0xf] }
  0x3f   : > { %v1497_v36 = vor.u32 %v1496_v12, %v5363_v9  ;;  %v1532_v39 = vshll.u32 %v1219_v18, 16  ;;  %v1538_v40 = vshll.u32 %v1220_v27, 16  ;;  %v1488_v47 = vrot.slane %v1487_v13, 4 }
  0x40   : > { %v1511_v48 = vor.u32 %v1510_v22, %v1507_v19  ;;  %v1521_v11 = vor.u32 %v1520_v25, %v5370_v23  ;;  %v1524_v49 = vshll.u32 %v1218_v34, 16  ;;  %v956_v53 = vsel %vm414_vm0, %v5153_v7, 0 }
  0x41   : > { %v1469_v29 = vsel %vm5186_vm4, %v1464_v30, %v5352_v51  ;;  %v1502_v54 = vrot.slane %v1500_v33, 5  ;;  %v1479_v62 = vsel %vm5186_vm4, %v1474_v35, %v1478_v32  ;;  %v1498_v63 = vrot.slane %v1497_v36, 4 }
  0x42   : > { %v1534_v2 = vrot.slane %v1532_v39, 5  ;;  %v5394_v5 = vrot.slane %v1538_v40, 5  ;;  %v1553_v6 = vshrl.u32 %v1222_v50, 16  ;;  %v1556_v12 = vshll.u32 %v1222_v50, 16 }
  0x43   : > { %v1493_v51 = vsel %vm5186_vm4, %v1488_v47, %v5363_v9  ;;  %v1512_v13 = vrot.slane %v1511_v48, 4  ;;  %v1526_v19 = vrot.slane %v1524_v49, 5  ;;  %v1562_v22 = vshll.u32 %v1223_v60, 16  ;;  %v1227_v47 = vld [vmem:[%s5147_s26 + $0xb0] sm:$0x1] }
  0x44   : > { %4340 = vmatmul.mubr.msk.bf16.gmra.mrb[24].mxu1 %vm365_vm1, %v5328_v26  ;;  %v1566_v25 = vshrl.u32 %v1223_v60, 16  ;;  %v1503_v30 = vsel %vm5186_vm4, %v1498_v63, %v1502_v54  ;;  %v1586_v32 = vshll.u32 %v1226_v3, 16  ;;  %v1590_v33 = vshrl.u32 %v1226_v3, 16  ;;  %v1228_v60 = vld [vmem:[%s5147_s26 + $0xb4] sm:$0xf] }
  0x45   : > { %4343 = vmatprep.mubr.msk.bf16.mxu1 %vm365_vm1, %v5332_v28  ;;  %4486 = vmatmul.mubr.msk.bf16.vlgmr.msra.gmra.mrb[0].mxu0 %vm365_vm1, %v5241_v43  ;;  %v1555_v35 = vrot.slane %v1553_v6, 4  ;;  %v1558_v36 = vrot.slane %v1556_v12, 5  ;;  %v1517_v39 = vsel %vm5186_vm4, %v1512_v13, %v5370_v23  ;;  %v5417_v48 = vrot.slane %v1562_v22, 5  ;;  %v1231_v13 = vld [vmem:[%s5147_s26 + $0xc0] sm:$0xf] }
  0x46   : > { %4518 = vmatpush3.bf16.msra.mxu0 %v2914_v44  ;;  %4489 = vmatprep.mubr.msk.bf16.mxu0 %vm365_vm1, %v5262_v16  ;;  %v1542_v44 = vshrl.u32 %v1220_v27, 16  ;;  %v1580_v27 = vshll.u32 %v1225_v61, 16  ;;  %v5426_v23 = vrot.slane %v1586_v32, 5  ;;  %v1596_v12 = vshll.u32 %v1227_v47, 16 }
  0x47   : > { %5045 = vmatprep.subr.msk.bf16.mxu0 %vm414_vm0, %v5345_v46  ;;  %v1559_v63 = vor.u32 %v1558_v36, %v1555_v35  ;;  %v1986_v32 = vshll.u32 %v1231_v13, 16 }
  0x48   : > { %v1544_v7 = vrot.slane %v1542_v44, 4  ;;  %v1224_v44 = vld [vmem:[%s5147_s26 + $0xa4] sm:$0x1]  ;;  %v1582_v50 = vrot.slane %v1580_v27, 5  ;;  %v1598_v36 = vrot.slane %v1596_v12, 5 }
  0x49   : > { %v1560_v27 = vrot.slane %v1559_v63, 4 }
  0x4a   : > { %v1545_v34 = vor.u32 %v1544_v7, %v5394_v5 }
  0x4b   : > { %v1565_v63 = vsel %vm5186_vm4, %v1560_v27, %v5417_v48 }
  0x4c   : > { %4344 = vmatmul.mubr.msk.bf16.gmra.mrb[28].mxu1 %vm365_vm1, %v5357_v56 }
  0x4d   : > { %4349 = vmatprep.mubr.msk.bf16.mxu1 %vm365_vm1, %v5156_v8  ;;  %4490 = vmatmul.mubr.msk.bf16.gmra.mrb[4].mxu0 %vm365_vm1, %v5282_v42  ;;  %v1529_v8 = vshrl.u32 %v1219_v18, 16  ;;  %v1522_v18 = vrot.slane %v1521_v11, 4  ;;  %v1568_v11 = vrot.slane %v1566_v25, 4 }
  0x4e   : > { %4493 = vmatprep.mubr.msk.bf16.mxu0 %vm365_vm1, %v5290_v57 }
  0x4f   : > { %v1531_v1 = vrot.slane %v1529_v8, 4  ;;  %v5408_v8 = vcombine.low %v1469_v29, %v1479_v62  ;;  %v1527_v40 = vsel %vm5186_vm4, %v1522_v18, %v1526_v19  ;;  %v5424_v29 = vcombine.low %v1493_v51, %v1503_v30  ;;  %v1232_v18 = vld [vmem:[%s5147_s26 + $0xc4] sm:$0xf] }
  0x50   : > { %v1546_v62 = vrot.slane %v1545_v34, 4  ;;  %v5434_v3 = vcombine.low %v1517_v39, %v1527_v40  ;;  %v1569_v7 = vor.u32 %v1568_v11, %v5417_v48  ;;  %v1601_v51 = vshrl.u32 %v1228_v60, 16 }
  0x51   : > { %v1535_v9 = vor.u32 %v1534_v2, %v1531_v1  ;;  %v1572_v1 = vshll.u32 %v1224_v44, 16  ;;  %v1229_v2 = vld [vmem:[%s5147_s26 + $0xb8] sm:$0xf]  ;;  %v1604_v19 = vshll.u32 %v1228_v60, 16  ;;  %v1230_v44 = vld [vmem:[%s5147_s26 + $0xbc] sm:$0x1] }
  0x52   : > { %v1610_v22 = vshll.u32 %v1229_v2, 16  ;;  %v1614_v25 = vshrl.u32 %v1229_v2, 16  ;;  %v1570_v34 = vrot.slane %v1569_v7, 4  ;;  %v1603_v39 = vrot.slane %v1601_v51, 4  ;;  %v1233_v7 = vld [vmem:[%s5147_s26 + $0xc8] sm:$0x1] }
  0x53   : > { %v1574_v30 = vrot.slane %v1572_v1, 5  ;;  %v1606_v47 = vrot.slane %v1604_v19, 5  ;;  %v1620_v2 = vshll.u32 %v1230_v44, 16  ;;  %v2567_v44 = vld [vmem:[%s5147_s26 + $0x4] sm:$0xf] }
  0x54   : > { %4350 = vmatmul.mubr.msk.bf16.vlgmr.msra.gmra.mrb[0].mxu1 %vm365_vm1, %v5161_v10  ;;  %v1577_v10 = vshrl.u32 %v1225_v61, 16  ;;  %v1536_v61 = vrot.slane %v1535_v9, 4  ;;  %v1996_v9 = vshrl.u32 %v1232_v18, 16  ;;  %v1616_v11 = vrot.slane %v1614_v25, 4 }
  0x55   : > { %4382 = vmatpush3.bf16.msra.mxu1 %v956_v53  ;;  %4353 = vmatprep.mubr.msk.bf16.mxu1 %vm365_vm1, %v5174_v15  ;;  %v1548_v15 = vshll.u32 %v1221_v58, 16  ;;  %v5422_v53 = vld [vmem:[%s5988_s1 + $0x2] sm:$0x3]  ;;  %v1592_v58 = vrot.slane %v1590_v33, 4  ;;  %v1992_v33 = vshll.u32 %v1232_v18, 16  ;;  %v1575_v1 = vsel %vm5186_vm4, %v1570_v34, %v1574_v30 }
  0x56   : > { %4494 = vmatmul.mubr.msk.bf16.gmra.mrb[8].mxu0 %vm365_vm1, %v5305_v17  ;;  %v1579_v49 = vrot.slane %v1577_v10, 4  ;;  %5040 = vmatprep.subr.msk.bf16.mxu1 %vm414_vm0, %v5422_v53  ;;  %v1607_v51 = vor.u32 %v1606_v47, %v1603_v39 }
  0x57   : > { %4497 = vmatprep.mubr.msk.bf16.mxu0 %vm365_vm1, %v5316_v24  ;;  %v1550_v54 = vrot.slane %v1548_v15, 5  ;;  %v1983_v15 = vshrl.u32 %v1231_v13, 16  ;;  %v1994_v60 = vrot.slane %v1992_v33, 5 }
  0x58   : > { %v1583_v6 = vor.u32 %v1582_v50, %v1579_v49  ;;  %v1234_v50 = vld [vmem:[%s5147_s26 + $0xcc] sm:$0xf]  ;;  %v1608_v27 = vrot.slane %v1607_v51, 4 }
  0x59   : > { %v1551_v10 = vsel %vm5186_vm4, %v1546_v62, %v1550_v54  ;;  %v1985_v54 = vrot.slane %v1983_v15, 4  ;;  %v1235_v62 = vld [vmem:[%s5147_s26 + $0xd0] sm:$0xf]  ;;  %v2275_v48 = vshrl.u32 %v1234_v50, 16  ;;  %v2278_v18 = vshll.u32 %v1234_v50, 16 }
  0x5a   : > { %v1584_v35 = vrot.slane %v1583_v6, 4  ;;  %v2288_v19 = vshrl.u32 %v1235_v62, 16  ;;  %v1622_v15 = vrot.slane %v1620_v2, 5 }
  0x5b   : > { %v2280_v33 = vrot.slane %v2278_v18, 5  ;;  %v2570_v18 = vld [vmem:[%s5147_s26 + $0x10] sm:$0xf] }
  0x5c   : > { %4354 = vmatmul.mubr.msk.bf16.gmra.mrb[4].mxu1 %vm365_vm1, %v5182_v37  ;;  %v1593_v37 = vor.u32 %v1592_v58, %v5426_v23  ;;  %v1988_v58 = vrot.slane %v1986_v32, 5  ;;  %v1589_v6 = vsel %vm5186_vm4, %v1584_v35, %v5426_v23  ;;  %v2277_v32 = vrot.slane %v2275_v48, 4 }
  0x5d   : > { %4357 = vmatprep.mubr.msk.bf16.mxu1 %vm365_vm1, %v5202_v55  ;;  %v1541_v55 = vsel %vm5186_vm4, %v1536_v61, %v5394_v5  ;;  %v1612_v5 = vrot.slane %v1610_v22, 5  ;;  %v1998_v61 = vrot.slane %v1996_v9, 4  ;;  %v2290_v34 = vrot.slane %v2288_v19, 4  ;;  %v2573_v19 = vld [vmem:[%s5147_s26 + $0x1c] sm:$0xf] }
  0x5e   : > { %4498 = vmatmul.mubr.msk.bf16.gmra.mrb[12].mxu0 %vm365_vm1, %v5408_v8  ;;  %v1594_v40 = vrot.slane %v1593_v37, 4  ;;  %v5454_v49 = vcombine.low %v1541_v55, %v1551_v10  ;;  %v2284_v37 = vshll.u32 %v1235_v62, 16  ;;  %v1989_v22 = vor.u32 %v1988_v58, %v1985_v54 }
  0x5f   : > { %4501 = vmatprep.mubr.msk.bf16.mxu0 %vm365_vm1, %v5424_v29  ;;  %v1617_v13 = vor.u32 %v1616_v11, %v1612_v5  ;;  %v1999_v25 = vor.u32 %v1998_v61, %v1994_v60  ;;  %v2002_v55 = vshll.u32 %v1233_v7, 16  ;;  %v5475_v10 = vcombine.low %v1565_v63, %v1575_v1  ;;  %v2566_v1 = vld [vmem:[%s5147_s26] sm:$0xe] }
  0x60   : > { %v1599_v12 = vsel %vm5186_vm4, %v1594_v40, %v1598_v36  ;;  %v2286_v9 = vrot.slane %v2284_v37, 5  ;;  %v1990_v35 = vrot.slane %v1989_v22, 4  ;;  %v1236_v40 = vld [vmem:[%s5147_s26 + $0xd4] sm:$0x1]  ;;  %v1613_v47 = vsel %vm5186_vm4, %v1608_v27, %v1612_v5  ;;  %v2568_v5 = vld [vmem:[%s5147_s26 + $0x8] sm:$0x1] }
  0x61   : > { %v5477_v23 = vcombine.low %v1589_v6, %v1599_v12  ;;  %v1618_v30 = vrot.slane %v1617_v13, 4  ;;  %v2000_v36 = vrot.slane %v1999_v25, 4  ;;  %v2004_v39 = vrot.slane %v2002_v55, 5 }
  0x62   : > { %v2281_v50 = vor.u32 %v2280_v33, %v2277_v32  ;;  %v2291_v54 = vor.u32 %v2290_v34, %v2286_v9  ;;  %v2294_v58 = vshll.u32 %v1236_v40, 16  ;;  %v1995_v61 = vsel %vm5186_vm4, %v1990_v35, %v1994_v60  ;;  %v2571_v32 = vld [vmem:[%s5147_s26 + $0x14] sm:$0x1]  ;;  %v2572_v34 = vld [vmem:[%s5147_s26 + $0x18] sm:$0xe] }
  0x63   : > { %v1623_v11 = vsel %vm5186_vm4, %v1618_v30, %v1622_v15  ;;  %v2005_v62 = vsel %vm5186_vm4, %v2000_v36, %v2004_v39  ;;  %v2673_v63 = vrot.slane %v2567_v44, 5  ;;  %v4071_v51 = vrot.slane %v2566_v1, 9  ;;  %v2569_v15 = vld [vmem:[%s5147_s26 + $0xc] sm:$0xe]  ;;  %v2574_v35 = vld [vmem:[%s5147_s26 + $0x20] sm:$0x1] }
  0x64   : > { %4358 = vmatmul.mubr.msk.bf16.gmra.mrb[8].mxu1 %vm365_vm1, %v5210_v0  ;;  %v5499_v2 = vcombine.low %v1613_v47, %v1623_v11  ;;  %v5503_v7 = vcombine.low %v1995_v61, %v2005_v62  ;;  %v2282_v6 = vrot.slane %v2281_v50, 4  ;;  %v2292_v12 = vrot.slane %v2291_v54, 4  ;;  %v2576_v54 = vld [vmem:[%s5147_s26 + $0x28] sm:$0xf] }
  0x65   : > { %4361 = vmatprep.mubr.msk.bf16.mxu1 %vm365_vm1, %v5244_v45  ;;  %v2296_v60 = vrot.slane %v2294_v58, 5  ;;  %v2675_v13 = vrot.slane %v2673_v63, 4  ;;  %v2676_v48 = vrot.slane %v2568_v5, 5  ;;  %v2680_v55 = vrot.slane %v2570_v18, 5  ;;  %v2579_v58 = vld [vmem:[%s5147_s26 + $0x34] sm:$0xf] }
  0x66   : > { %4502 = vmatmul.mubr.msk.bf16.gmra.mrb[16].mxu0 %vm365_vm1, %v5434_v3  ;;  %v2287_v22 = vsel %vm5186_vm4, %v2282_v6, %v2286_v9  ;;  %v2674_v27 = vsel %vm5508_vm7, %v4071_v51, %v2673_v63  ;;  %v2687_v33 = vrot.slane %v2573_v19, 5  ;;  %v4072_v39 = vrot.slane %v2569_v15, 9  ;;  %v2575_v6 = vld [vmem:[%s5147_s26 + $0x24] sm:$0xe]  ;;  %v2578_v51 = vld [vmem:[%s5147_s26 + $0x30] sm:$0xe] }
  0x67   : > { %4505 = vmatprep.mubr.msk.bf16.mxu0 %vm365_vm1, %v5454_v49  ;;  %v2297_v25 = vsel %vm5186_vm4, %v2292_v12, %v2296_v60  ;;  %v2677_v30 = vsel %vm5508_vm7, %v2675_v13, %v2676_v48  ;;  %v2682_v40 = vrot.slane %v2680_v55, 4  ;;  %v2683_v44 = vrot.slane %v2571_v32, 5  ;;  %v2577_v12 = vld [vmem:[%s5147_s26 + $0x2c] sm:$0x1]  ;;  %v2580_v13 = vld [vmem:[%s5147_s26 + $0x38] sm:$0x1] }
  0x68   : > { %v4054_v36 = vcombine.low %v2287_v22, %v2297_v25  ;;  %v4088_v9 = vcombine.low %v2674_v27, %v2677_v30  ;;  %v4073_v47 = vrot.slane %v2572_v34, 9  ;;  %v2689_v11 = vrot.slane %v2687_v33, 4  ;;  %v2582_v32 = vld [vmem:[%s5147_s26 + $0x40] sm:$0xf]  ;;  %v5564_v34 = vld [vmem:[%s5988_s1 + $0x10] sm:$0x3] }
  0x69   : > { %v2690_v50 = vrot.slane %v2574_v35, 5  ;;  %v2681_v61 = vsel %vm5508_vm7, %v4072_v39, %v2680_v55  ;;  %v2684_v62 = vsel %vm5508_vm7, %v2682_v40, %v2683_v44  ;;  %v2694_v63 = vrot.slane %v2576_v54, 5  ;;  %v2581_v44 = vld [vmem:[%s5147_s26 + $0x3c] sm:$0xe]  ;;  %v2586_v54 = vld [vmem:[%s5147_s26 + $0x50] sm:$0x1] }
  0x6a   : > { %v2688_v1 = vsel %vm5508_vm7, %v4073_v47, %v2687_v33  ;;  %v2701_v60 = vrot.slane %v2579_v58, 5  ;;  %v5549_v48 = vcombine.low %v2681_v61, %v2684_v62  ;;  %v4074_v19 = vrot.slane %v2575_v6, 9  ;;  %v2585_v33 = vld [vmem:[%s5147_s26 + $0x4c] sm:$0xf]  ;;  %v2583_v47 = vld [vmem:[%s5147_s26 + $0x44] sm:$0x1] }
  0x6b   : > { %v2691_v5 = vsel %vm5508_vm7, %v2689_v11, %v2690_v50  ;;  %v2696_v22 = vrot.slane %v2694_v63, 4  ;;  %v2697_v25 = vrot.slane %v2577_v12, 5  ;;  %v3192_v55 = vsel %vm414_vm0, %v5345_v46, 0  ;;  %v2584_v50 = vld [vmem:[%s5147_s26 + $0x48] sm:$0xe] }
  0x6c   : > { %4362 = vmatmul.mubr.msk.bf16.gmra.mrb[12].mxu1 %vm365_vm1, %v5250_v52  ;;  %v5553_v18 = vcombine.low %v2688_v1, %v2691_v5  ;;  %v4075_v27 = vrot.slane %v2578_v51, 9  ;;  %v2703_v30 = vrot.slane %v2701_v60, 4  ;;  %v2704_v15 = vrot.slane %v2580_v13, 5  ;;  %v5075_v5 = vld [vmem:[%s5147_s26 + $0x18] sm:$0xff]   ;;  %v2591_v13 = vld [vmem:[%s5147_s26 + $0x64] sm:$0xf] }
  0x6d   : > { %4365 = vmatprep.mubr.msk.bf16.mxu1 %vm365_vm1, %v5274_v31  ;;  %v2695_v46 = vsel %vm5508_vm7, %v4074_v19, %v2694_v63  ;;  %v2698_v35 = vsel %vm5508_vm7, %v2696_v22, %v2697_v25  ;;  %v2715_v11 = vrot.slane %v2585_v33, 5  ;;  %v4076_v62 = vrot.slane %v2581_v44, 9  ;;  %v2588_v51 = vld [vmem:[%s5147_s26 + $0x58] sm:$0xf] }
  0x6e   : > { %4506 = vmatmul.mubr.msk.bf16.gmra.mrb[20].mxu0 %vm365_vm1, %v5475_v10  ;;  %v2702_v39 = vsel %vm5508_vm7, %v4075_v27, %v2701_v60  ;;  %v2705_v40 = vsel %vm5508_vm7, %v2703_v30, %v2704_v15  ;;  %v5587_v58 = vcombine.low %v2695_v46, %v2698_v35  ;;  %v2711_v1 = vrot.slane %v2583_v47, 5  ;;  %v2587_v30 = vld [vmem:[%s5147_s26 + $0x54] sm:$0xe]  ;;  %v2589_v15 = vld [vmem:[%s5147_s26 + $0x5c] sm:$0x1] }
  0x6f   : > { %4509 = vmatprep.mubr.msk.bf16.mxu0 %vm365_vm1, %v5477_v23  ;;  %v5591_v61 = vcombine.low %v2702_v39, %v2705_v40  ;;  %v4077_v6 = vrot.slane %v2584_v50, 9  ;;  %v2717_v12 = vrot.slane %v2715_v11, 4  ;;  %v2718_v60 = vrot.slane %v2586_v54, 5  ;;  %v2590_v46 = vld [vmem:[%s5147_s26 + $0x60] sm:$0xe]  ;;  %v5076_v39 = vld [vmem:[%s5147_s26 + $0x24] sm:$0xff]  }
  0x70   : > { %v2722_v25 = vrot.slane %v2588_v51, 5  ;;  %v1755_v33 = vsel %vm414_vm0, %v5422_v53, 0  ;;  %v2592_v35 = vld [vmem:[%s5147_s26 + $0x68] sm:$0x1]  ;;  %v4078_v44 = vrot.slane %v2587_v30, 9  ;;  %v5077_v50 = vld [vmem:[%s5147_s26 + $0x30] sm:$0xff]  }
  0x71   : > { %v2719_v27 = vsel %vm5508_vm7, %v2717_v12, %v2718_v60  ;;  %v4079_v53 = vrot.slane %v2590_v46, 9  ;;  %v2598_v30 = vld [vmem:[%s5147_s26 + $0x80] sm:$0x1] }
  0x72   : > { %v2724_v47 = vrot.slane %v2722_v25, 4 }
  0x74   : > { %4366 = vmatmul.mubr.msk.bf16.gmra.mrb[16].mxu1 %vm365_vm1, %v5280_v41 }
  0x75   : > { %4369 = vmatprep.mubr.msk.bf16.mxu1 %vm365_vm1, %v5303_v14 }
  0x76   : > { %4510 = vmatmul.mubr.msk.bf16.gmra.mrb[24].mxu0 %vm365_vm1, %v5499_v2 }
  0x77   : > { %4513 = vmatprep.mubr.msk.bf16.mxu0 %vm365_vm1, %v5503_v7 }
  0x7c   : > { %4370 = vmatmul.mubr.msk.bf16.gmra.mrb[20].mxu1 %vm365_vm1, %v5308_v21 }
  0x7d   : > { %4373 = vmatprep.mubr.msk.bf16.mxu1 %vm365_vm1, %v5328_v26 }
  0x7e   : > { %4514 = vmatmul.mubr.msk.bf16.gmra.mrb[28].mxu0 %vm365_vm1, %v4054_v36  ;;  %v5575_v36 = vld [vmem:[%s5147_s26 + $0xc0] sm:$0xff]  }
  0x7f   : > { %4519 = vmatprep.mubr.msk.bf16.mxu0 %vm365_vm1, %v4088_v9  ;;  %v2708_v9 = vrot.slane %v2582_v32, 5  ;;  %v2729_v32 = vrot.slane %v2591_v13, 5 }
  0x81   : > { %v2710_v63 = vrot.slane %v2708_v9, 4  ;;  %v2709_v19 = vsel %vm5508_vm7, %v4076_v62, %v2708_v9  ;;  %v2731_v54 = vrot.slane %v2729_v32, 4  ;;  %v2732_v62 = vrot.slane %v2592_v35, 5 }
  0x82   : > { %v2730_v51 = vsel %vm5508_vm7, %v4079_v53, %v2729_v32 }
  0x83   : > { %v2712_v22 = vsel %vm5508_vm7, %v2710_v63, %v2711_v1  ;;  %v2594_v63 = vld [vmem:[%s5147_s26 + $0x70] sm:$0xf]  ;;  %v2597_v1 = vld [vmem:[%s5147_s26 + $0x7c] sm:$0xf]  ;;  %v2733_v13 = vsel %vm5508_vm7, %v2731_v54, %v2732_v62 }
  0x84   : > { %4374 = vmatmul.mubr.msk.bf16.gmra.mrb[24].mxu1 %vm365_vm1, %v5332_v28  ;;  %v5615_v9 = vcombine.low %v2709_v19, %v2712_v22  ;;  %v2736_v60 = vrot.slane %v2594_v63, 5  ;;  %v2593_v19 = vld [vmem:[%s5147_s26 + $0x6c] sm:$0xe]  ;;  %v2595_v22 = vld [vmem:[%s5147_s26 + $0x74] sm:$0x1] }
  0x85   : > { %4377 = vmatprep.mubr.msk.bf16.mxu1 %vm365_vm1, %v5357_v56  ;;  %v4080_v46 = vrot.slane %v2593_v19, 9  ;;  %v2739_v35 = vrot.slane %v2595_v22, 5 }
  0x86   : > { %4520 = vmatmul.mubr.msk.bf16.vlgmr.msra.gmra.mrb[0].mxu0 %vm365_vm1, %v5549_v48  ;;  %v2738_v32 = vrot.slane %v2736_v60, 4 }
  0x87   : > { %4552 = vmatpush3.bf16.msra.mxu0 %v3192_v55  ;;  %4523 = vmatprep.mubr.msk.bf16.mxu0 %vm365_vm1, %v5553_v18  ;;  %v2716_v55 = vsel %vm5508_vm7, %v4077_v6, %v2715_v11  ;;  %v2725_v11 = vrot.slane %v2589_v15, 5  ;;  %v2723_v6 = vsel %vm5508_vm7, %v4078_v44, %v2722_v25  ;;  %v5079_v25 = vld [vmem:[%s5147_s26 + $0x3c] sm:$0xff]   ;;  %v2737_v53 = vsel %vm5508_vm7, %v4080_v46, %v2736_v60 }
  0x88   : > { %5046 = vmatprep.subr.msk.bf16.mxu0 %vm414_vm0, %v5564_v34  ;;  %v5619_v40 = vcombine.low %v2716_v55, %v2719_v27  ;;  %v2743_v55 = vrot.slane %v2597_v1, 5  ;;  %v2596_v27 = vld [vmem:[%s5147_s26 + $0x78] sm:$0xe]  ;;  %v2740_v54 = vsel %vm5508_vm7, %v2738_v32, %v2739_v35  ;;  %v2599_v1 = vld [vmem:[%s5147_s26 + $0x84] sm:$0xe] }
  0x89   : > { %v2726_v12 = vsel %vm5508_vm7, %v2724_v47, %v2725_v11  ;;  %v2746_v47 = vrot.slane %v2598_v30, 5  ;;  %v2600_v11 = vld [vmem:[%s5147_s26 + $0x88] sm:$0xf]  ;;  %v4082_v19 = vrot.slane %v2599_v1, 9  ;;  %v2606_v46 = vld [vmem:[%s5147_s26 + $0xa0] sm:$0xf] }
  0x8a   : > { %v5645_v15 = vcombine.low %v2723_v6, %v2726_v12  ;;  %v2745_v44 = vrot.slane %v2743_v55, 4  ;;  %v2602_v12 = vld [vmem:[%s5147_s26 + $0x90] sm:$0xe]  ;;  %v2609_v32 = vld [vmem:[%s5147_s26 + $0xac] sm:$0xf] }
  0x8c   : > { %4378 = vmatmul.mubr.msk.bf16.gmra.mrb[28].mxu1 %vm365_vm1, %v5575_v36  ;;  %v2747_v63 = vsel %vm5508_vm7, %v2745_v44, %v2746_v47  ;;  %v2605_v47 = vld [vmem:[%s5147_s26 + $0x9c] sm:$0xe] }
  0x8d   : > { %4383 = vmatprep.mubr.msk.bf16.mxu1 %vm365_vm1, %v5075_v5  ;;  %v5078_v5 = vld [vmem:[%s5988_s1 + $0x8] sm:$0x3] }
  0x8e   : > { %4524 = vmatmul.mubr.msk.bf16.gmra.mrb[4].mxu0 %vm365_vm1, %v5587_v58 }
  0x8f   : > { %4527 = vmatprep.mubr.msk.bf16.mxu0 %vm365_vm1, %v5591_v61 }
  0x94   : > { %4384 = vmatmul.mubr.msk.bf16.vlgmr.msra.gmra.mrb[0].mxu1 %vm365_vm1, %v5076_v39  ;;  %v4081_v39 = vrot.slane %v2596_v27, 9  ;;  %v4083_v27 = vrot.slane %v2602_v12, 9 }
  0x95   : > { %4416 = vmatpush3.bf16.msra.mxu1 %v1755_v33  ;;  %4387 = vmatprep.mubr.msk.bf16.mxu1 %vm365_vm1, %v5077_v50  ;;  %v5649_v33 = vcombine.low %v2730_v51, %v2733_v13  ;;  %v2603_v50 = vld [vmem:[%s5147_s26 + $0x94] sm:$0xf]  ;;  %v2604_v51 = vld [vmem:[%s5147_s26 + $0x98] sm:$0x1]  ;;  %v5671_v13 = vcombine.low %v2737_v53, %v2740_v54  ;;  %v2608_v53 = vld [vmem:[%s5147_s26 + $0xa8] sm:$0xe] }
  0x96   : > { %5042 = vmatprep.subr.msk.bf16.mxu1 %vm414_vm0, %v5078_v5  ;;  %4528 = vmatmul.mubr.msk.bf16.gmra.mrb[8].mxu0 %vm365_vm1, %v5615_v9  ;;  %v2744_v62 = vsel %vm5508_vm7, %v4081_v39, %v2743_v55  ;;  %v2601_v5 = vld [vmem:[%s5147_s26 + $0x8c] sm:$0x1]  ;;  %v2757_v6 = vrot.slane %v2603_v50, 5  ;;  %v2771_v50 = vrot.slane %v2609_v32, 5  ;;  %v2610_v54 = vld [vmem:[%s5147_s26 + $0xb0] sm:$0x1] }
  0x97   : > { %4531 = vmatprep.mubr.msk.bf16.mxu0 %vm365_vm1, %v5619_v40  ;;  %v5675_v60 = vcombine.low %v2744_v62, %v2747_v63  ;;  %v2753_v55 = vrot.slane %v2601_v5, 5  ;;  %v4084_v63 = vrot.slane %v2605_v47, 9  ;;  %v1183_v32 = vld [vmem:[%s5147_s26] sm:$0xf] }
  0x98   : > { %v2759_v30 = vrot.slane %v2757_v6, 4  ;;  %v2758_v39 = vsel %vm5508_vm7, %v4083_v27, %v2757_v6  ;;  %v4085_v6 = vrot.slane %v2608_v53, 9  ;;  %v2773_v12 = vrot.slane %v2771_v50, 4 }
  0x99   : > { %v1241_v47 = vshrl.u32 %v1183_v32, 16 }
  0x9c   : > { %4388 = vmatmul.mubr.msk.bf16.gmra.mrb[4].mxu1 %vm365_vm1, %v5079_v25  ;;  %v2760_v25 = vrot.slane %v2604_v51, 5  ;;  %v2774_v51 = vrot.slane %v2610_v54, 5 }
  0x9d   : > { %4391 = vmatprep.mubr.msk.bf16.mxu1 %vm365_vm1, %v5210_v0  ;;  %v2750_v0 = vrot.slane %v2600_v11, 5  ;;  %v2607_v11 = vld [vmem:[%s5147_s26 + $0xa4] sm:$0x1] }
  0x9e   : > { %4532 = vmatmul.mubr.msk.bf16.gmra.mrb[12].mxu0 %vm365_vm1, %v5645_v15  ;;  %v2761_v44 = vsel %vm5508_vm7, %v2759_v30, %v2760_v25  ;;  %v2767_v5 = vrot.slane %v2607_v11, 5  ;;  %v2775_v27 = vsel %vm5508_vm7, %v2773_v12, %v2774_v51  ;;  %v2611_v30 = vld [vmem:[%s5147_s26 + $0xb4] sm:$0xe]  ;;  %v2613_v25 = vld [vmem:[%s5147_s26 + $0xbc] sm:$0x1]  ;;  %v1244_v11 = vshll.u32 %v1183_v32, 16 }
  0x9f   : > { %4535 = vmatprep.mubr.msk.bf16.mxu0 %vm365_vm1, %v5649_v33  ;;  %v2752_v22 = vrot.slane %v2750_v0, 4  ;;  %v1185_v12 = vld [vmem:[%s5147_s26 + $0x8] sm:$0x1] }
  0xa1   : > { %v2754_v35 = vsel %vm5508_vm7, %v2752_v22, %v2753_v55 }
  0xa4   : > { %4392 = vmatmul.mubr.msk.bf16.gmra.mrb[8].mxu1 %vm365_vm1, %v5244_v45  ;;  %v2751_v45 = vsel %vm5508_vm7, %v4082_v19, %v2750_v0  ;;  %v5701_v0 = vcombine.low %v2758_v39, %v2761_v44  ;;  %v2612_v19 = vld [vmem:[%s5147_s26 + $0xb8] sm:$0xf]  ;;  %v2781_v44 = vrot.slane %v2613_v25, 5 }
  0xa5   : > { %4395 = vmatprep.mubr.msk.bf16.mxu1 %vm365_vm1, %v5250_v52  ;;  %v2764_v52 = vrot.slane %v2606_v46, 5  ;;  %v5697_v62 = vcombine.low %v2751_v45, %v2754_v35  ;;  %v2778_v55 = vrot.slane %v2612_v19, 5  ;;  %v1184_v45 = vld [vmem:[%s5147_s26 + $0x4] sm:$0xf] }
  0xa6   : > { %4536 = vmatmul.mubr.msk.bf16.gmra.mrb[16].mxu0 %vm365_vm1, %v5671_v13  ;;  %v1254_v53 = vshrl.u32 %v1184_v45, 16 }
  0xa7   : > { %4539 = vmatprep.mubr.msk.bf16.mxu0 %vm365_vm1, %v5675_v60  ;;  %v2766_v1 = vrot.slane %v2764_v52, 4  ;;  %v2780_v39 = vrot.slane %v2778_v55, 4 }
  0xa9   : > { %v2768_v22 = vsel %vm5508_vm7, %v2766_v1, %v2767_v5  ;;  %v2782_v54 = vsel %vm5508_vm7, %v2780_v39, %v2781_v44  ;;  %v1246_v1 = vrot.slane %v1244_v11, 5 }
  0xac   : > { %4396 = vmatmul.mubr.msk.bf16.gmra.mrb[12].mxu1 %vm365_vm1, %v5274_v31  ;;  %v2765_v31 = vsel %vm5508_vm7, %v4084_v63, %v2764_v52  ;;  %v4086_v52 = vrot.slane %v2611_v30, 9  ;;  %v1243_v63 = vrot.slane %v1241_v47, 4 }
  0xad   : > { %4399 = vmatprep.mubr.msk.bf16.mxu1 %vm365_vm1, %v5280_v41  ;;  %v2772_v41 = vsel %vm5508_vm7, %v4085_v6, %v2771_v50  ;;  %v5720_v46 = vcombine.low %v2765_v31, %v2768_v22  ;;  %v1250_v50 = vshll.u32 %v1184_v45, 16  ;;  %v1260_v31 = vshll.u32 %v1185_v12, 16 }
  0xae   : > { %4540 = vmatmul.mubr.msk.bf16.gmra.mrb[20].mxu0 %vm365_vm1, %v5697_v62  ;;  %v5726_v35 = vcombine.low %v2772_v41, %v2775_v27  ;;  %v1247_v51 = vor.u32 %v1246_v1, %v1243_v63 }
  0xaf   : > { %4543 = vmatprep.mubr.msk.bf16.mxu0 %vm365_vm1, %v5701_v0  ;;  %v1252_v5 = vrot.slane %v1250_v50, 5  ;;  %v1262_v41 = vrot.slane %v1260_v31, 5 }
  0xb0   : > { %v1248_v22 = vrot.slane %v1247_v51, 4 }
  0xb4   : > { %4400 = vmatmul.mubr.msk.bf16.gmra.mrb[16].mxu1 %vm365_vm1, %v5303_v14  ;;  %v2779_v14 = vsel %vm5508_vm7, %v4086_v52, %v2778_v55 }
  0xb5   : > { %4403 = vmatprep.mubr.msk.bf16.mxu1 %vm365_vm1, %v5308_v21  ;;  %v1256_v21 = vrot.slane %v1254_v53, 4  ;;  %v5738_v6 = vcombine.low %v2779_v14, %v2782_v54 }
  0xb6   : > { %4544 = vmatmul.mubr.msk.bf16.gmra.mrb[24].mxu0 %vm365_vm1, %v5720_v46 }
  0xb7   : > { %4547 = vmatprep.mubr.msk.bf16.mxu0 %vm365_vm1, %v5726_v35  ;;  %v1257_v19 = vor.u32 %v1256_v21, %v1252_v5 }
  0xb9   : > { %v1258_v55 = vrot.slane %v1257_v19, 4 }
  0xbb   : > { %v1263_v27 = vsel %vm5186_vm4, %v1258_v55, %v1262_v41 }
  0xbc   : > { %4404 = vmatmul.mubr.msk.bf16.gmra.mrb[20].mxu1 %vm365_vm1, %v5328_v26  ;;  %v3470_v26 = vsel %vm414_vm0, %v5564_v34, 0 }
  0xbd   : > { %4407 = vmatprep.mubr.msk.bf16.mxu1 %vm365_vm1, %v5332_v28  ;;  %v1253_v28 = vsel %vm5186_vm4, %v1248_v22, %v1252_v5 }
  0xbe   : > { %4548 = vmatmul.mubr.msk.bf16.gmra.mrb[28].mxu0 %vm365_vm1, %v5738_v6 }
  0xbf   : > { %4553 = vmatprep.mubr.msk.bf16.mxu0 %vm365_vm1, %v5549_v48  ;;  %v4003_v48 = vcombine.low %v1253_v28, %v1263_v27 }
  0xc4   : > { %4408 = vmatmul.mubr.msk.bf16.gmra.mrb[24].mxu1 %vm365_vm1, %v5357_v56  ;;  %v5074_v56 = vld [vmem:[%s5147_s26 + $0xcc] sm:$0xff]  }
  0xc5   : > { %4411 = vmatprep.mubr.msk.bf16.mxu1 %vm365_vm1, %v5575_v36 }
  0xc6   : > { %4554 = vmatmul.mubr.msk.bf16.vlgmr.msra.gmra.mrb[0].mxu0 %vm365_vm1, %v5553_v18 }
  0xc7   : > { %4586 = vmatpush3.bf16.msra.mxu0 %v3470_v26  ;;  %4557 = vmatprep.mubr.msk.bf16.mxu0 %vm365_vm1, %v5587_v58 }
  0xcc   : > { %4412 = vmatmul.mubr.msk.bf16.gmra.mrb[28].mxu1 %vm365_vm1, %v5074_v56 }
  0xcd   : > { %4417 = vmatprep.mubr.msk.bf16.mxu1 %vm365_vm1, %v4003_v48 }
  0xce   : > { %4558 = vmatmul.mubr.msk.bf16.gmra.mrb[4].mxu0 %vm365_vm1, %v5591_v61 }
  0xcf   : > { %4561 = vmatprep.mubr.msk.bf16.mxu0 %vm365_vm1, %v5615_v9 }
  0xd4   : > { %4418 = vmatmul.mubr.msk.bf16.vlgmr.msra.gmra.mrb[0].mxu1 %vm365_vm1, %v5206_v59  ;;  %v2614_v59 = vld [vmem:[%s5147_s26 + $0xc0] sm:$0xe] }
  0xd5   : > { %4620 = vmatpush3.bf16.msra.mxu1 %v5135_v4  ;;  %4421 = vmatprep.mubr.msk.bf16.mxu1 %vm365_vm1, %v5219_v20  ;;  %v2615_v4 = vld [vmem:[%s5147_s26 + $0xc4] sm:$0xf]  ;;  %v2616_v20 = vld [vmem:[%s5147_s26 + $0xc8] sm:$0x1] }
  0xd6   : > { %4562 = vmatmul.mubr.msk.bf16.gmra.mrb[8].mxu0 %vm365_vm1, %v5619_v40  ;;  %v3146_v38 = vrot.slane %v2615_v4, 5 }
  0xd7   : > { %4565 = vmatprep.mubr.msk.bf16.mxu0 %vm365_vm1, %v5645_v15 }
  0xdc   : > { %4422 = vmatmul.mubr.msk.bf16.gmra.mrb[4].mxu1 %vm365_vm1, %v5241_v43  ;;  %v4120_v43 = vrot.slane %v2614_v59, 9 }
  0xdd   : > { %4425 = vmatprep.mubr.msk.bf16.mxu1 %vm365_vm1, %v5262_v16  ;;  %v3148_v16 = vrot.slane %v3146_v38, 4 }
  0xde   : > { %4566 = vmatmul.mubr.msk.bf16.gmra.mrb[12].mxu0 %vm365_vm1, %v5649_v33 }
  0xdf   : > { %4569 = vmatprep.mubr.msk.bf16.mxu0 %vm365_vm1, %v5671_v13 }
  0xe4   : > { %4426 = vmatmul.mubr.msk.bf16.gmra.mrb[8].mxu1 %vm365_vm1, %v5282_v42  ;;  %v3149_v42 = vrot.slane %v2616_v20, 5 }
  0xe5   : > { %4429 = vmatprep.mubr.msk.bf16.mxu1 %vm365_vm1, %v5290_v57  ;;  %v3147_v57 = vsel %vm5508_vm7, %v4120_v43, %v3146_v38 }
  0xe6   : > { %4570 = vmatmul.mubr.msk.bf16.gmra.mrb[16].mxu0 %vm365_vm1, %v5675_v60 }
  0xe7   : > { %4573 = vmatprep.mubr.msk.bf16.mxu0 %vm365_vm1, %v5697_v62 }
  0xec   : > { %4430 = vmatmul.mubr.msk.bf16.gmra.mrb[12].mxu1 %vm365_vm1, %v5305_v17  ;;  %v3150_v17 = vsel %vm5508_vm7, %v3148_v16, %v3149_v42 }
  0xed   : > { %4433 = vmatprep.mubr.msk.bf16.mxu1 %vm365_vm1, %v5316_v24  ;;  %v4122_v24 = vcombine.low %v3147_v57, %v3150_v17 }
  0xee   : > { %4574 = vmatmul.mubr.msk.bf16.gmra.mrb[20].mxu0 %vm365_vm1, %v5701_v0 }
  0xef   : > { %4577 = vmatprep.mubr.msk.bf16.mxu0 %vm365_vm1, %v5720_v46 }
  0xf4   : > { %4434 = vmatmul.mubr.msk.bf16.gmra.mrb[16].mxu1 %vm365_vm1, %v5408_v8 }
  0xf5   : > { %4437 = vmatprep.mubr.msk.bf16.mxu1 %vm365_vm1, %v5424_v29 }
  0xf6   : > { %4578 = vmatmul.mubr.msk.bf16.gmra.mrb[24].mxu0 %vm365_vm1, %v5726_v35 }
  0xf7   : > { %4581 = vmatprep.mubr.msk.bf16.mxu0 %vm365_vm1, %v5738_v6 }
  0xfc   : > { %4438 = vmatmul.mubr.msk.bf16.gmra.mrb[20].mxu1 %vm365_vm1, %v5434_v3 }
  0xfd   : > { %4441 = vmatprep.mubr.msk.bf16.mxu1 %vm365_vm1, %v5454_v49 }
  0xfe   : > { %4582 = vmatmul.mubr.msk.bf16.gmra.mrb[28].mxu0 %vm365_vm1, %v4122_v24 }
  0xff   : > { %4587 = vmatprep.mubr.msk.bf16.mxu0 %vm365_vm1, %v5553_v18 }
 0x104   : > { %4442 = vmatmul.mubr.msk.bf16.gmra.mrb[24].mxu1 %vm365_vm1, %v5475_v10 }
 0x105   : > { %4445 = vmatprep.mubr.msk.bf16.mxu1 %vm365_vm1, %v5477_v23 }
 0x106   : > { %4588 = vmatmul.mubr.msk.bf16.vlgmr.msra.gmra.mrb[0].mxu0 %vm365_vm1, %v5587_v58 }
 0x107   : > { %4591 = vmatprep.mubr.msk.bf16.mxu0 %vm365_vm1, %v5591_v61 }
 0x10c   : > { %4446 = vmatmul.mubr.msk.bf16.gmra.mrb[28].mxu1 %vm365_vm1, %v5499_v2 }
 0x10d   : > { %4467 = vmatprep.mubr.msk.bf16.mxu1 %vm365_vm1, %v5408_v8  ;;  %v2618_v8 = vld [vmem:[%s5147_s26 + $0xd0] sm:$0xf] }
 0x10e   : > { %4592 = vmatmul.mubr.msk.bf16.gmra.mrb[4].mxu0 %vm365_vm1, %v5615_v9 }
 0x10f   : > { %4595 = vmatprep.mubr.msk.bf16.mxu0 %vm365_vm1, %v5619_v40 }
 0x114   : > { %4468 = vmatmul.mubr.msk.bf16.vlgmr.msra.gmra.mrb[16].mxu1 %vm365_vm1, %v5424_v29  ;;  %v3424_v29 = vrot.slane %v2618_v8, 5 }
 0x115   : > { %4471 = vmatprep.mubr.msk.bf16.mxu1 %vm365_vm1, %v5434_v3  ;;  %v2617_v3 = vld [vmem:[%s5147_s26 + $0xcc] sm:$0xe] }
 0x116   : > { %4596 = vmatmul.mubr.msk.bf16.gmra.mrb[8].mxu0 %vm365_vm1, %v5645_v15 }
 0x117   : > { %4599 = vmatprep.mubr.msk.bf16.mxu0 %vm365_vm1, %v5649_v33 }
 0x11c   : > { %4472 = vmatmul.mubr.msk.bf16.gmra.mrb[20].mxu1 %vm365_vm1, %v5454_v49  ;;  %v2619_v49 = vld [vmem:[%s5147_s26 + $0xd4] sm:$0x1] }
 0x11d   : > { %4475 = vmatprep.mubr.msk.bf16.mxu1 %vm365_vm1, %v5475_v10  ;;  %v4139_v10 = vrot.slane %v2617_v3, 9 }
 0x11e   : > { %4600 = vmatmul.mubr.msk.bf16.gmra.mrb[12].mxu0 %vm365_vm1, %v5671_v13 }
 0x11f   : > { %4603 = vmatprep.mubr.msk.bf16.mxu0 %vm365_vm1, %v5675_v60 }
 0x124   : > { %4476 = vmatmul.mubr.msk.bf16.gmra.mrb[24].mxu1 %vm365_vm1, %v5477_v23  ;;  %v3426_v23 = vrot.slane %v3424_v29, 4 }
 0x125   : > { %4479 = vmatprep.mubr.msk.bf16.mxu1 %vm365_vm1, %v5499_v2  ;;  %v3427_v2 = vrot.slane %v2619_v49, 5 }
 0x126   : > { %4604 = vmatmul.mubr.msk.bf16.gmra.mrb[16].mxu0 %vm365_vm1, %v5697_v62 }
 0x127   : > { %4607 = vmatprep.mubr.msk.bf16.mxu0 %vm365_vm1, %v5701_v0  ;;  %v3428_v18 = vsel %vm5508_vm7, %v3426_v23, %v3427_v2 }
 0x12c   : > { %4480 = vmatmul.mubr.msk.bf16.gmra.mrb[28].mxu1 %vm365_vm1, %v5503_v7  ;;  %v3425_v7 = vsel %vm5508_vm7, %v4139_v10, %v3424_v29 }
 0x12d   : > { %v4141_v34 = vcombine.low %v3425_v7, %v3428_v18 }
 0x12e   : > { %4608 = vmatmul.mubr.msk.bf16.gmra.mrb[20].mxu0 %vm365_vm1, %v5720_v46 }
 0x12f   : > { %4611 = vmatprep.mubr.msk.bf16.mxu0 %vm365_vm1, %v5726_v35 }
 0x136   : > { %4612 = vmatmul.mubr.msk.bf16.gmra.mrb[24].mxu0 %vm365_vm1, %v5738_v6 }
 0x137   : > { %4615 = vmatprep.mubr.msk.bf16.mxu0 %vm365_vm1, %v4122_v24 }
 0x13e   : > { %4616 = vmatmul.mubr.msk.bf16.gmra.mrb[28].mxu0 %vm365_vm1, %v4141_v34 }
 0x1a7   : > { %v4419_v36 = vpop.f32.mrb[0].mxu1 }
 0x1a8   : > { %v1791_v58 = vpop.f32.mrb[1].mxu1 }
 0x1a9   : > { %v4420_v61 = vpop.f32.mrb[2].mxu1 }
 0x1aa   : > { %v1794_v9 = vpop.f32.mrb[3].mxu1 }
 0x1af   : > { %v4423_v40 = vpop.f32.mrb[4].mxu1 }
 0x1b0   : > { %v1807_v15 = vpop.f32.mrb[5].mxu1 }
 0x1b1   : > { %v4424_v33 = vpop.f32.mrb[6].mxu1 }
 0x1b2   : > { %v1810_v13 = vpop.f32.mrb[7].mxu1 }
 0x1b7   : > { %v4427_v60 = vpop.f32.mrb[8].mxu1 }
 0x1b8   : > { %v5882_v62 = vpop.f32.mrb[9].mxu1 }
 0x1b9   : > { %v5884_v0 = vpop.f32.mrb[10].mxu1 }
 0x1ba   : > { %v5886_v30 = vpop.f32.mrb[11].mxu1 }
 0x1bf   : > { %v5888_v37 = vpop.f32.mrb[12].mxu1 }
 0x1c0   : > { %v5890_v25 = vpop.f32.mrb[13].mxu1 }
 0x1c1   : > { %v5892_v46 = vpop.f32.mrb[14].mxu1 }
 0x1c2   : > { %v5894_v32 = vpop.f32.mrb[15].mxu1 }
 0x1d9   : > { %v4589_v45 = vpop.f32.mrb[0].mxu0 }
 0x1da   : > { %v4626_v35 = vadd.f32 %v4589_v45, %v4419_v36  ;;  %v3506_v52 = vpop.f32.mrb[1].mxu0 }
 0x1db   : > { %v4632_v39 = vadd.f32 %v3506_v52, %v1791_v58  ;;  %v4590_v44 = vpop.f32.mrb[2].mxu0 }
 0x1dc   : > { %3667 = vst [vmem:[%s5900_s18 + $0x10] sm:$0xff] %v4626_v35  ;;  %v4638_v47 = vadd.f32 %v4590_v44, %v4420_v61  ;;  %v3509_v11 = vpop.f32.mrb[3].mxu0  ;;  %v3768_v63 = vmul.f32 %v4626_v35, %v4626_v35 }
 0x1dd   : > { %3665 = vst [vmem:[%s5900_s18] sm:$0xff] %v4632_v39  ;;  %v4644_v50 = vadd.f32 %v3509_v11, %v1794_v9  ;;  %v3766_v53 = vmul.f32 %v4632_v39, %v4632_v39 }
 0x1de   : > { %3668 = vst [vmem:[%s5900_s18 + $0x18] sm:$0xff] %v4638_v47  ;;  %v3769_v51 = vmul.f32 %v4638_v47, %v4638_v47 }
 0x1df   : > { %3666 = vst [vmem:[%s5900_s18 + $0x8] sm:$0xff] %v4644_v50  ;;  %v3729_v14 = vadd.f32 %v4644_v50, %v4632_v39  ;;  %v3767_v54 = vmul.f32 %v4644_v50, %v4644_v50 }
 0x1e1   : > { %v3730_v1 = vadd.f32 %v4626_v35, %v3729_v14  ;;  %v3798_v5 = vadd.f32 %v3767_v54, %v3766_v53  ;;  %v4593_v21 = vpop.f32.mrb[4].mxu0 }
 0x1e2   : > { %v4650_v6 = vadd.f32 %v4593_v21, %v4423_v40  ;;  %v3522_v12 = vpop.f32.mrb[5].mxu0 }
 0x1e3   : > { %v3799_v19 = vadd.f32 %v3798_v5, %v3768_v63  ;;  %v4656_v31 = vadd.f32 %v3522_v12, %v1807_v15  ;;  %v3731_v22 = vadd.f32 %v4638_v47, %v3730_v1  ;;  %v4594_v55 = vpop.f32.mrb[6].mxu0 }
 0x1e4   : > { %3671 = vst [vmem:[%s5900_s18 + $0x30] sm:$0xff] %v4650_v6  ;;  %v4662_v41 = vadd.f32 %v4594_v55, %v4424_v33  ;;  %v3525_v26 = vpop.f32.mrb[7].mxu0  ;;  %v3772_v42 = vmul.f32 %v4650_v6, %v4650_v6 }
 0x1e5   : > { %3669 = vst [vmem:[%s5900_s18 + $0x20] sm:$0xff] %v4656_v31  ;;  %v3732_v28 = vadd.f32 %v4656_v31, %v3731_v22  ;;  %v3770_v27 = vmul.f32 %v4656_v31, %v4656_v31  ;;  %v3800_v56 = vadd.f32 %v3799_v19, %v3769_v51  ;;  %v4668_v48 = vadd.f32 %v3525_v26, %v1810_v13 }
 0x1e6   : > { %3672 = vst [vmem:[%s5900_s18 + $0x38] sm:$0xff] %v4662_v41  ;;  %v3773_v49 = vmul.f32 %v4662_v41, %v4662_v41 }
 0x1e7   : > { %v5909_v4 = vpop.f32.mrb[16].mxu1  ;;  %v3801_v38 = vadd.f32 %v3800_v56, %v3770_v27  ;;  %3670 = vst [vmem:[%s5900_s18 + $0x28] sm:$0xff] %v4668_v48  ;;  %v3733_v59 = vadd.f32 %v4668_v48, %v3732_v28  ;;  %v3771_v20 = vmul.f32 %v4668_v48, %v4668_v48 }
 0x1e8   : > { %v5912_v43 = vpop.f32.mrb[17].mxu1 }
 0x1e9   : > { %v5914_v16 = vpop.f32.mrb[18].mxu1  ;;  %v3734_v57 = vadd.f32 %v4650_v6, %v3733_v59  ;;  %v3802_v17 = vadd.f32 %v3801_v38, %v3771_v20  ;;  %v4597_v24 = vpop.f32.mrb[8].mxu0 }
 0x1ea   : > { %v5916_v8 = vpop.f32.mrb[19].mxu1  ;;  %v4674_v29 = vadd.f32 %v4597_v24, %v4427_v60  ;;  %v3538_v3 = vpop.f32.mrb[9].mxu0 }
 0x1eb   : > { %v3803_v10 = vadd.f32 %v3802_v17, %v3772_v42  ;;  %v4680_v23 = vadd.f32 %v3538_v3, %v5882_v62  ;;  %v3735_v2 = vadd.f32 %v4662_v41, %v3734_v57  ;;  %v4598_v7 = vpop.f32.mrb[10].mxu0 }
 0x1ec   : > { %3675 = vst [vmem:[%s5900_s18 + $0x50] sm:$0xff] %v4674_v29  ;;  %v4686_v18 = vadd.f32 %v4598_v7, %v5884_v0  ;;  %v3541_v34 = vpop.f32.mrb[11].mxu0  ;;  %v3776_v0 = vmul.f32 %v4674_v29, %v4674_v29 }
 0x1ed   : > { %3673 = vst [vmem:[%s5900_s18 + $0x40] sm:$0xff] %v4680_v23  ;;  %v3736_v36 = vadd.f32 %v4680_v23, %v3735_v2  ;;  %v3774_v58 = vmul.f32 %v4680_v23, %v4680_v23  ;;  %v3804_v61 = vadd.f32 %v3803_v10, %v3773_v49  ;;  %v4692_v9 = vadd.f32 %v3541_v34, %v5886_v30 }
 0x1ee   : > { %3676 = vst [vmem:[%s5900_s18 + $0x58] sm:$0xff] %v4686_v18  ;;  %v3777_v47 = vmul.f32 %v4686_v18, %v4686_v18 }
 0x1ef   : > { %v5924_v40 = vpop.f32.mrb[20].mxu1  ;;  %v3805_v15 = vadd.f32 %v3804_v61, %v3774_v58  ;;  %3674 = vst [vmem:[%s5900_s18 + $0x48] sm:$0xff] %v4692_v9  ;;  %v3737_v33 = vadd.f32 %v4692_v9, %v3736_v36  ;;  %v3775_v13 = vmul.f32 %v4692_v9, %v4692_v9 }
 0x1f0   : > { %v5927_v60 = vpop.f32.mrb[21].mxu1 }
 0x1f1   : > { %v5929_v62 = vpop.f32.mrb[22].mxu1  ;;  %v3738_v45 = vadd.f32 %v4674_v29, %v3737_v33  ;;  %v3806_v35 = vadd.f32 %v3805_v15, %v3775_v13  ;;  %v4601_v52 = vpop.f32.mrb[12].mxu0 }
 0x1f2   : > { %v5931_v39 = vpop.f32.mrb[23].mxu1  ;;  %v4698_v30 = vadd.f32 %v4601_v52, %v5888_v37  ;;  %v3554_v44 = vpop.f32.mrb[13].mxu0 }
 0x1f3   : > { %v3807_v11 = vadd.f32 %v3806_v35, %v3776_v0  ;;  %v4704_v50 = vadd.f32 %v3554_v44, %v5890_v25  ;;  %v3739_v53 = vadd.f32 %v4686_v18, %v3738_v45  ;;  %v4602_v14 = vpop.f32.mrb[14].mxu0 }
 0x1f4   : > { %3679 = vst [vmem:[%s5900_s18 + $0x70] sm:$0xff] %v4698_v30  ;;  %v4710_v54 = vadd.f32 %v4602_v14, %v5892_v46  ;;  %v3557_v63 = vpop.f32.mrb[15].mxu0  ;;  %v3780_v46 = vmul.f32 %v4698_v30, %v4698_v30 }
 0x1f5   : > { %3677 = vst [vmem:[%s5900_s18 + $0x60] sm:$0xff] %v4704_v50  ;;  %v3740_v1 = vadd.f32 %v4704_v50, %v3739_v53  ;;  %v3778_v5 = vmul.f32 %v4704_v50, %v4704_v50  ;;  %v3808_v21 = vadd.f32 %v3807_v11, %v3777_v47  ;;  %v4716_v6 = vadd.f32 %v3557_v63, %v5894_v32 }
 0x1f6   : > { %3680 = vst [vmem:[%s5900_s18 + $0x78] sm:$0xff] %v4710_v54  ;;  %v3781_v27 = vmul.f32 %v4710_v54, %v4710_v54 }
 0x1f7   : > { %v5940_v37 = vpop.f32.mrb[24].mxu1  ;;  %v3809_v12 = vadd.f32 %v3808_v21, %v3778_v5  ;;  %3678 = vst [vmem:[%s5900_s18 + $0x68] sm:$0xff] %v4716_v6  ;;  %v3741_v51 = vadd.f32 %v4716_v6, %v3740_v1  ;;  %v3779_v25 = vmul.f32 %v4716_v6, %v4716_v6 }
 0x1f8   : > { %v5943_v19 = vpop.f32.mrb[25].mxu1 }
 0x1f9   : > { %v5945_v31 = vpop.f32.mrb[26].mxu1  ;;  %v3742_v22 = vadd.f32 %v4698_v30, %v3741_v51  ;;  %v3810_v55 = vadd.f32 %v3809_v12, %v3779_v25  ;;  %v4605_v41 = vpop.f32.mrb[16].mxu0 }
 0x1fa   : > { %v5947_v26 = vpop.f32.mrb[27].mxu1  ;;  %v4722_v32 = vadd.f32 %v4605_v41, %v5909_v4  ;;  %v3570_v28 = vpop.f32.mrb[17].mxu0 }
 0x1fb   : > { %v3811_v56 = vadd.f32 %v3810_v55, %v3780_v46  ;;  %v4728_v48 = vadd.f32 %v3570_v28, %v5912_v43  ;;  %v3743_v38 = vadd.f32 %v4710_v54, %v3742_v22  ;;  %v4606_v59 = vpop.f32.mrb[18].mxu0 }
 0x1fc   : > { %3683 = vst [vmem:[%s5900_s18 + $0x90] sm:$0xff] %v4722_v32  ;;  %v4734_v20 = vadd.f32 %v4606_v59, %v5914_v16  ;;  %v3573_v42 = vpop.f32.mrb[19].mxu0  ;;  %v3784_v2 = vmul.f32 %v4722_v32, %v4722_v32 }
 0x1fd   : > { %3681 = vst [vmem:[%s5900_s18 + $0x80] sm:$0xff] %v4728_v48  ;;  %v3744_v57 = vadd.f32 %v4728_v48, %v3743_v38  ;;  %v3782_v17 = vmul.f32 %v4728_v48, %v4728_v48  ;;  %v3812_v24 = vadd.f32 %v3811_v56, %v3781_v27  ;;  %v4740_v29 = vadd.f32 %v3573_v42, %v5916_v8 }
 0x1fe   : > { %3684 = vst [vmem:[%s5900_s18 + $0x98] sm:$0xff] %v4734_v20  ;;  %v3785_v58 = vmul.f32 %v4734_v20, %v4734_v20 }
 0x1ff   : > { %v4481_v4 = vpop.f32.mrb[28].mxu1  ;;  %v3813_v3 = vadd.f32 %v3812_v24, %v3782_v17  ;;  %3682 = vst [vmem:[%s5900_s18 + $0x88] sm:$0xff] %v4740_v29  ;;  %v3745_v49 = vadd.f32 %v4740_v29, %v3744_v57  ;;  %v3783_v10 = vmul.f32 %v4740_v29, %v4740_v29 }
 0x200   : > { %v2195_v43 = vpop.f32.mrb[29].mxu1 }
 0x201   : > { %v4482_v23 = vpop.f32.mrb[30].mxu1  ;;  %v3746_v7 = vadd.f32 %v4722_v32, %v3745_v49  ;;  %v3814_v16 = vadd.f32 %v3813_v3, %v3783_v10  ;;  %v4609_v18 = vpop.f32.mrb[20].mxu0 }
 0x202   : > { %v5957_v34 = vpop.f32.mrb[31].mxu1  ;;  %v4746_v36 = vadd.f32 %v4609_v18, %v5924_v40  ;;  %v3586_v8 = vpop.f32.mrb[21].mxu0 }
 0x203   : > { %v3815_v61 = vadd.f32 %v3814_v16, %v3784_v2  ;;  %v4752_v9 = vadd.f32 %v3586_v8, %v5927_v60  ;;  %v3747_v15 = vadd.f32 %v4734_v20, %v3746_v7  ;;  %v4610_v33 = vpop.f32.mrb[22].mxu0 }
 0x204   : > { %3687 = vst [vmem:[%s5900_s18 + $0xb0] sm:$0xff] %v4746_v36  ;;  %v4758_v13 = vadd.f32 %v4610_v33, %v5929_v62  ;;  %v3589_v0 = vpop.f32.mrb[23].mxu0  ;;  %v3788_v60 = vmul.f32 %v4746_v36, %v4746_v36 }
 0x205   : > { %3685 = vst [vmem:[%s5900_s18 + $0xa0] sm:$0xff] %v4752_v9  ;;  %v3748_v45 = vadd.f32 %v4752_v9, %v3747_v15  ;;  %v3786_v35 = vmul.f32 %v4752_v9, %v4752_v9  ;;  %v3816_v52 = vadd.f32 %v3815_v61, %v3785_v58  ;;  %v4764_v30 = vadd.f32 %v3589_v0, %v5931_v39 }
 0x206   : > { %3688 = vst [vmem:[%s5900_s18 + $0xb8] sm:$0xff] %v4758_v13  ;;  %v3789_v54 = vmul.f32 %v4758_v13, %v4758_v13 }
 0x207   : > { %v3817_v40 = vadd.f32 %v3816_v52, %v3786_v35  ;;  %3686 = vst [vmem:[%s5900_s18 + $0xa8] sm:$0xff] %v4764_v30  ;;  %v3749_v44 = vadd.f32 %v4764_v30, %v3748_v45  ;;  %v3787_v47 = vmul.f32 %v4764_v30, %v4764_v30 }
 0x209   : > { %v3750_v11 = vadd.f32 %v4746_v36, %v3749_v44  ;;  %v3818_v50 = vadd.f32 %v3817_v40, %v3787_v47  ;;  %v4613_v53 = vpop.f32.mrb[24].mxu0 }
 0x20a   : > { %v4770_v62 = vadd.f32 %v4613_v53, %v5940_v37  ;;  %v3602_v14 = vpop.f32.mrb[25].mxu0 }
 0x20b   : > { %v3819_v63 = vadd.f32 %v3818_v50, %v3788_v60  ;;  %v4776_v39 = vadd.f32 %v3602_v14, %v5943_v19  ;;  %v3751_v1 = vadd.f32 %v4758_v13, %v3750_v11  ;;  %v4614_v5 = vpop.f32.mrb[26].mxu0 }
 0x20c   : > { %3691 = vst [vmem:[%s5900_s18 + $0xd0] sm:$0xff] %v4770_v62  ;;  %v4782_v21 = vadd.f32 %v4614_v5, %v5945_v31  ;;  %v3605_v6 = vpop.f32.mrb[27].mxu0  ;;  %v3792_v19 = vmul.f32 %v4770_v62, %v4770_v62 }
 0x20d   : > { %3689 = vst [vmem:[%s5900_s18 + $0xc0] sm:$0xff] %v4776_v39  ;;  %v3752_v12 = vadd.f32 %v4776_v39, %v3751_v1  ;;  %v3790_v51 = vmul.f32 %v4776_v39, %v4776_v39  ;;  %v3820_v25 = vadd.f32 %v3819_v63, %v3789_v54  ;;  %v4788_v46 = vadd.f32 %v3605_v6, %v5947_v26 }
 0x20e   : > { %3692 = vst [vmem:[%s5900_s18 + $0xd8] sm:$0xff] %v4782_v21  ;;  %v3793_v56 = vmul.f32 %v4782_v21, %v4782_v21 }
 0x20f   : > { %v3821_v37 = vadd.f32 %v3820_v25, %v3790_v51  ;;  %3690 = vst [vmem:[%s5900_s18 + $0xc8] sm:$0xff] %v4788_v46  ;;  %v3753_v22 = vadd.f32 %v4788_v46, %v3752_v12  ;;  %v3791_v55 = vmul.f32 %v4788_v46, %v4788_v46 }
 0x211   : > { %v3754_v41 = vadd.f32 %v4770_v62, %v3753_v22  ;;  %v3822_v32 = vadd.f32 %v3821_v37, %v3791_v55  ;;  %v4617_v28 = vpop.f32.mrb[28].mxu0 }
 0x212   : > { %v4794_v31 = vadd.f32 %v4617_v28, %v4481_v4  ;;  %v3618_v27 = vpop.f32.mrb[29].mxu0 }
 0x213   : > { %v3823_v48 = vadd.f32 %v3822_v32, %v3792_v19  ;;  %v4800_v38 = vadd.f32 %v3618_v27, %v2195_v43  ;;  %v3755_v59 = vadd.f32 %v4782_v21, %v3754_v41  ;;  %v4618_v26 = vpop.f32.mrb[30].mxu0 }
 0x214   : > { %3695 = vst [vmem:[%s5900_s18 + $0xf0] sm:$0xff] %v4794_v31  ;;  %v4806_v20 = vadd.f32 %v4618_v26, %v4482_v23  ;;  %v3621_v42 = vpop.f32.mrb[31].mxu0  ;;  %v3796_v10 = vmul.f32 %v4794_v31, %v4794_v31 }
 0x215   : > { %3693 = vst [vmem:[%s5900_s18 + $0xe0] sm:$0xff] %v4800_v38  ;;  %v3756_v57 = vadd.f32 %v4800_v38, %v3755_v59  ;;  %v3794_v17 = vmul.f32 %v4800_v38, %v4800_v38  ;;  %v3824_v24 = vadd.f32 %v3823_v48, %v3793_v56  ;;  %v4812_v29 = vadd.f32 %v3621_v42, %v5957_v34 }
 0x216   : > { %3696 = vst [vmem:[%s5900_s18 + $0xf8] sm:$0xff] %v4806_v20  ;;  %v3797_v7 = vmul.f32 %v4806_v20, %v4806_v20 }
 0x217   : > { %v3825_v3 = vadd.f32 %v3824_v24, %v3794_v17  ;;  %3694 = vst [vmem:[%s5900_s18 + $0xe8] sm:$0xff] %v4812_v29  ;;  %v3757_v4 = vadd.f32 %v4812_v29, %v3756_v57  ;;  %v3795_v49 = vmul.f32 %v4812_v29, %v4812_v29 }
 0x219   : > { %v3758_v2 = vadd.f32 %v4794_v31, %v3757_v4  ;;  %v3826_v43 = vadd.f32 %v3825_v3, %v3795_v49 }
 0x21b   : > { %v3759_v16 = vadd.f32 %v4806_v20, %v3758_v2  ;;  %v3827_v18 = vadd.f32 %v3826_v43, %v3796_v10 }
 0x21d   : > { %v3760_v23 = vrot.slane %v3759_v16, 4  ;;  %v3828_v36 = vadd.f32 %v3827_v18, %v3797_v7 }
 0x21f   : > { %v3761_v8 = vadd.f32 %v3760_v23, %v3759_v16  ;;  %v3829_v58 = vrot.slane %v3828_v36, 4 }
 0x221   : > { %v3762_v61 = vrot.slane %v3761_v8, 2  ;;  %v3830_v9 = vadd.f32 %v3829_v58, %v3828_v36 }
 0x223   : > { %v3763_v15 = vadd.f32 %v3762_v61, %v3761_v8  ;;  %v3831_v34 = vrot.slane %v3830_v9, 2 }
 0x225   : > { %v3764_v33 = vrot.slane %v3763_v15, 1  ;;  %v3832_v13 = vadd.f32 %v3831_v34, %v3830_v9 }
 0x227   : > { %v3833_v0 = vrot.slane %v3832_v13, 1  ;;  %v3765_v45 = vadd.f32 %v3764_v33, %v3763_v15 }
 0x229   : > { %v3834_v35 = vadd.f32 %v3833_v0, %v3832_v13 }
 0x22b   : > { %v3836_v52 = vsel %vm3835_vm8, %v3765_v45, %v3834_v35 }
 0x22c   : > { %3837 = vst [vmem:[%s182_s22] sm:$0x3] %v3836_v52 }
 0x22d PF: > { %s14_s12 = sadd.s32 1, %s5086_s12  }
 0x22e   : > { %p11_p5 = scmp.ge.s32.totalorder %s14_s12, 4  }
 0x230   :  { %13 = sbr.rel (!%p11_p5) target bundleno = 1 (0x1), region = 78 }

// kernel: double_conv_block.6
= control target key start
LH: loop header
LB: loop body
LE: loop exit
PB: predicated region body
PF: predicated region fallthrough
CT: control target
= control target key end

     0   :  { %s5868_s12 = smov 0   ;;  %s6752_s0 = inlined_call_operand.vmem [shape: bf16[2,18,18,128], index: 0, kind: input, shape index: {}]   ;;  %s6753_s1 = inlined_call_operand.vmem [shape: bf16[9,128,128], index: 1, kind: input, shape index: {}]   ;;  %s6754_s2 = inlined_call_operand.vmem [shape: f32[512,128], index: 2, kind: output, shape index: {0}]   ;;  %s6755_s3 = inlined_call_operand.vmem [shape: f32[2,2,128], index: 3, kind: output, shape index: {1}]  }
   0x1 LB: > { %s5874_s13 = sadd.s32 4294967295, %s5846_s12   ;;  %p4359_p0 = scmp.ge.s32.totalorder %s5846_s12, 1  ;;  %s5846_s12 = sphi %s5868_s12, %s14_s12  }
   0x2   : > { %p140_p1 = scmp.lt.s32.totalorder %s5846_s12, 3 }
   0x4   : > { %p141_p2 = pnand %p4359_p0, %p140_p1 }
   0x5   : > { %v5728_v0 = vld [vmem:[%s6753_s1] sm:$0xff] (!%p141_p2)   ;;  %v5730_v2 = vld [vmem:[%s6753_s1 + $0x8] sm:$0xff] (!%p141_p2)   ;;  %p168_p3 = scmp.lt.s32.totalorder (!%p141_p2), %s5874_s13, 1  ;;  %v5732_v4 = vld [vmem:[%s6753_s1 + $0x10] sm:$0xff] (!%p141_p2)   ;;  %vm1379_vm0 = vsmask.f32 (!%p141_p2), 3328 }
   0x6   : > { %144 = sbr.rel (%p141_p2) target bundleno = 560 (0x230), region = 28  ;;  %v5729_v1 = vld [vmem:[%s6753_s1 + $0x100] sm:$0xff] (!%p141_p2)   ;;  %4854 = vmatprep.subr.bf16.mxu1 (!%p141_p2), %v5728_v0  ;;  %v5731_v3 = vld [vmem:[%s6753_s1 + $0x108] sm:$0xff] (!%p141_p2)   ;;  %v5733_v5 = vld [vmem:[%s6753_s1 + $0x110] sm:$0xff] (!%p141_p2)   ;;  %vm1380_vm1 = vsmask.f32 (!%p141_p2), 7440 }
   0x7   : > { %5046 = vmatprep.subr.bf16.mxu0 (!%p141_p2), %v5729_v1  ;;  %4855 = vmatpush3.bf16.msra.mxu1 (!%p141_p2), %v5728_v0  ;;  %v5734_v6 = vld [vmem:[%s6753_s1 + $0x18] sm:$0xff] (!%p141_p2)   ;;  %v5736_v8 = vld [vmem:[%s6753_s1 + $0x20] sm:$0xff] (!%p141_p2)   ;;  %v5738_v10 = vld [vmem:[%s6753_s1 + $0x28] sm:$0xff] (!%p141_p2)   ;;  %vm2954_vm3 = vcmask (!%p141_p2), 1042432   ;;  %vm2955_vm4 = vcmask (!%p141_p2), 1046532   ;;  %vm4265_vm6 = vcmask (!%p141_p2), 1040384  }
   0x8   : > { %5047 = vmatpush3.bf16.msra.mxu0 (!%p141_p2), %v5729_v1  ;;  %4856 = vmatprep.subr.bf16.mxu1 (!%p141_p2), %v5730_v2  ;;  %v5735_v7 = vld [vmem:[%s6753_s1 + $0x118] sm:$0xff] (!%p141_p2)   ;;  %v5737_v9 = vld [vmem:[%s6753_s1 + $0x120] sm:$0xff] (!%p141_p2)   ;;  %v5739_v11 = vld [vmem:[%s6753_s1 + $0x128] sm:$0xff] (!%p141_p2)  }
   0x9   : > { %5048 = vmatprep.subr.bf16.mxu0 (!%p141_p2), %v5731_v3  ;;  %v5740_v18 = vld [vmem:[%s6753_s1 + $0x30] sm:$0xff] (!%p141_p2)   ;;  %v5742_v32 = vld [vmem:[%s6753_s1 + $0x38] sm:$0xff] (!%p141_p2)   ;;  %vm5942_vm2 = vmor (!%p141_p2), %vm1379_vm0, %vm1380_vm1 }
   0xa   : > { %v5741_v24 = vld [vmem:[%s6753_s1 + $0x130] sm:$0xff] (!%p141_p2)   ;;  %v5743_v38 = vld [vmem:[%s6753_s1 + $0x138] sm:$0xff] (!%p141_p2)   ;;  %v5746_v47 = vld [vmem:[%s6753_s1 + $0xc0] sm:$0xff] (!%p141_p2)  }
   0xb   : > { %4857 = vmatpush3.bf16.msra.mxu1 (!%p141_p2), %v5730_v2  ;;  %v5747_v52 = vld [vmem:[%s6753_s1 + $0x1c0] sm:$0xff] (!%p141_p2)   ;;  %vm6319_vm5 = vmor (!%p141_p2), %vm2954_vm3, %vm2955_vm4  ;;  %v5816_v33 = vld [vmem:[%s6753_s1 + $0x230] sm:$0xff] (!%p141_p2)  }
   0xc   : > { %5049 = vmatpush3.bf16.msra.mxu0 (!%p141_p2), %v5731_v3  ;;  %4858 = vmatprep.subr.bf16.mxu1 (!%p141_p2), %v5732_v4 }
   0xd   : > { %s5898_s26 = scalar_select %p168_p3, %s5874_s13, 1  ;;  %5050 = vmatprep.subr.bf16.mxu0 %v5733_v5 }
   0xf   : > { %s5718_s4 = smul.u32 216, %s5898_s26  ;;  %4859 = vmatpush3.bf16.msra.mxu1 %v5732_v4 }
  0x10   : > { %5051 = vmatpush3.bf16.msra.mxu0 %v5733_v5  ;;  %4860 = vmatprep.subr.bf16.mxu1 %v5734_v6 }
  0x11   : > { %5052 = vmatprep.subr.bf16.mxu0 %v5735_v7  ;;  %s5919_s15 = scalar_lea.vmem %s6752_s0, %s5718_s4 }
  0x12   : > { %v5744_v12 = vld [vmem:[%s5919_s15] sm:$0xff]   ;;  %v1328_v13 = vld [vmem:[%s5919_s15 + $0xc] sm:$0xf]  ;;  %v1329_v14 = vld [vmem:[%s5919_s15 + $0x10] sm:$0xf] }
  0x13   : > { %4861 = vmatpush3.bf16.msra.mxu1 %v5734_v6  ;;  %v1330_v15 = vld [vmem:[%s5919_s15 + $0x14] sm:$0x1]  ;;  %4870 = vmatprep.mubr.bf16.mxu1 %v5744_v12  ;;  %v1407_v16 = vshrl.u32 %v1328_v13, 16  ;;  %v1410_v17 = vshll.u32 %v1328_v13, 16  ;;  %v1416_v19 = vshll.u32 %v1329_v14, 16  ;;  %v1420_v20 = vshrl.u32 %v1329_v14, 16 }
  0x14   : > { %5053 = vmatpush3.bf16.msra.mxu0 %v5735_v7  ;;  %4862 = vmatprep.subr.bf16.mxu1 %v5736_v8  ;;  %v1426_v21 = vshll.u32 %v1330_v15, 16  ;;  %v1331_v29 = vld [vmem:[%s5919_s15 + $0x18] sm:$0xf]  ;;  %v1332_v30 = vld [vmem:[%s5919_s15 + $0x1c] sm:$0xf]  ;;  %v5963_v55 = vld [vmem:[%s5919_s15 + $0xc] sm:$0xff]  }
  0x15   : > { %5054 = vmatprep.subr.bf16.mxu0 %v5737_v9  ;;  %v1409_v22 = vrot.slane %v1407_v16, 4  ;;  %v1412_v23 = vrot.slane %v1410_v17, 5  ;;  %v1418_v25 = vrot.slane %v1416_v19, 5  ;;  %v1422_v26 = vrot.slane %v1420_v20, 4  ;;  %v1333_v31 = vld [vmem:[%s5919_s15 + $0x20] sm:$0x1] }
  0x16   : > { %v1428_v27 = vrot.slane %v1426_v21, 5  ;;  %v1431_v35 = vshrl.u32 %v1331_v29, 16  ;;  %v1434_v36 = vshll.u32 %v1331_v29, 16  ;;  %v1440_v37 = vshll.u32 %v1332_v30, 16  ;;  %v1334_v53 = vld [vmem:[%s5919_s15 + $0x24] sm:$0xf] }
  0x17   : > { %4863 = vmatpush3.bf16.msra.mxu1 %v5736_v8  ;;  %v1413_v28 = vor.u32 %v1412_v23, %v1409_v22  ;;  %v1423_v34 = vor.u32 %v1422_v26, %v1418_v25  ;;  %v1444_v40 = vshrl.u32 %v1332_v30, 16  ;;  %v1450_v41 = vshll.u32 %v1333_v31, 16  ;;  %v1335_v57 = vld [vmem:[%s5919_s15 + $0x28] sm:$0xf]  ;;  %v1336_v58 = vld [vmem:[%s5919_s15 + $0x2c] sm:$0x1] }
  0x18   : > { %5055 = vmatpush3.bf16.msra.mxu0 %v5737_v9  ;;  %4864 = vmatprep.subr.bf16.mxu1 %v5738_v10  ;;  %v1433_v43 = vrot.slane %v1431_v35, 4  ;;  %v1436_v44 = vrot.slane %v1434_v36, 5  ;;  %v1442_v45 = vrot.slane %v1440_v37, 5  ;;  %v1455_v59 = vshrl.u32 %v1334_v53, 16  ;;  %v5969_v2 = vld [vmem:[%s5919_s15 + $0x18] sm:$0xff]   ;;  %v5748_v6 = vld [vmem:[%s6753_s1 + $0x1c8] sm:$0xff]  }
  0x19   : > { %5056 = vmatprep.subr.bf16.mxu0 %v5739_v11  ;;  %v1414_v39 = vrot.slane %v1413_v28, 4  ;;  %v1424_v42 = vrot.slane %v1423_v34, 4  ;;  %v1446_v48 = vrot.slane %v1444_v40, 4  ;;  %v1452_v51 = vrot.slane %v1450_v41, 5  ;;  %v1337_v13 = vld [vmem:[%s5919_s15 + $0x30] sm:$0xf] }
  0x1a   : > { %v1437_v50 = vor.u32 %v1436_v44, %v1433_v43  ;;  %v1458_v60 = vshll.u32 %v1334_v53, 16  ;;  %v1464_v62 = vshll.u32 %v1335_v57, 16  ;;  %v1468_v63 = vshrl.u32 %v1335_v57, 16  ;;  %v1338_v14 = vld [vmem:[%s5919_s15 + $0x34] sm:$0xf]  ;;  %v5992_v28 = vld [vmem:[%s5919_s15 + $0x24] sm:$0xff]  }
  0x1b   : > { %4865 = vmatpush3.bf16.msra.mxu1 %v5738_v10  ;;  %v1419_v46 = vsel %vm5942_vm2, %v1414_v39, %v1418_v25  ;;  %v1429_v49 = vsel %vm5942_vm2, %v1424_v42, %v1428_v27  ;;  %v1447_v56 = vor.u32 %v1446_v48, %v1442_v45  ;;  %v1474_v0 = vshll.u32 %v1336_v58, 16  ;;  %v5751_v10 = vld [vmem:[%s6753_s1 + $0xc8] sm:$0xff]   ;;  %v1339_v17 = vld [vmem:[%s5919_s15 + $0x38] sm:$0x1]  ;;  %v5752_v31 = vld [vmem:[%s6753_s1 + $0x1d0] sm:$0xff]  }
  0x1c   : > { %5057 = vmatpush3.bf16.msra.mxu0 %v5739_v11  ;;  %4866 = vmatprep.subr.bf16.mxu1 %v5740_v18  ;;  %v5960_v54 = vcombine.low %v1419_v46, %v1429_v49  ;;  %v1438_v61 = vrot.slane %v1437_v50, 4  ;;  %v1457_v3 = vrot.slane %v1455_v59, 4  ;;  %v1460_v4 = vrot.slane %v1458_v60, 5  ;;  %v6000_v36 = vld [vmem:[%s5919_s15 + $0x30] sm:$0xff]   ;;  %v1340_v39 = vld [vmem:[%s5919_s15 + $0x3c] sm:$0xf] }
  0x1d   : > { %5058 = vmatprep.subr.bf16.mxu0 %v5741_v24  ;;  %v1448_v1 = vrot.slane %v1447_v56, 4  ;;  %v1466_v7 = vrot.slane %v1464_v62, 5  ;;  %v1470_v8 = vrot.slane %v1468_v63, 4  ;;  %v1476_v9 = vrot.slane %v1474_v0, 5  ;;  %v1341_v40 = vld [vmem:[%s5919_s15 + $0x40] sm:$0xf] }
  0x1e   : > { %5062 = vmatprep.mubr.bf16.mxu0 %v5960_v54  ;;  %v1443_v5 = vsel %vm5942_vm2, %v1438_v61, %v1442_v45  ;;  %v1461_v12 = vor.u32 %v1460_v4, %v1457_v3  ;;  %v1482_v19 = vshll.u32 %v1337_v13, 16  ;;  %v1488_v21 = vshll.u32 %v1338_v14, 16  ;;  %v1342_v41 = vld [vmem:[%s5919_s15 + $0x44] sm:$0x1]  ;;  %v5756_v56 = vld [vmem:[%s6753_s1 + $0xd0] sm:$0xff]  }
  0x1f   : > { %4867 = vmatpush3.bf16.msra.mxu1 %v5740_v18  ;;  %v1453_v11 = vsel %vm5942_vm2, %v1448_v1, %v1452_v51  ;;  %v1471_v16 = vor.u32 %v1470_v8, %v1466_v7  ;;  %v1479_v18 = vshrl.u32 %v1337_v13, 16  ;;  %v1492_v22 = vshrl.u32 %v1338_v14, 16  ;;  %v1343_v60 = vld [vmem:[%s5919_s15 + $0x48] sm:$0xf]  ;;  %v1344_v63 = vld [vmem:[%s5919_s15 + $0x4c] sm:$0xf] }
  0x20   : > { %5059 = vmatpush3.bf16.msra.mxu0 %v5741_v24  ;;  %4868 = vmatprep.subr.bf16.mxu1 %v5742_v32  ;;  %v5983_v15 = vcombine.low %v1443_v5, %v1453_v11  ;;  %v1462_v20 = vrot.slane %v1461_v12, 4  ;;  %v1498_v23 = vshll.u32 %v1339_v17, 16  ;;  %v1484_v26 = vrot.slane %v1482_v19, 5  ;;  %v1345_v0 = vld [vmem:[%s5919_s15 + $0x50] sm:$0x1]  ;;  %v5757_v11 = vld [vmem:[%s6753_s1 + $0x1e0] sm:$0xff]  }
  0x21   : > { %5060 = vmatprep.subr.bf16.mxu0 %v5743_v38  ;;  %v1472_v24 = vrot.slane %v1471_v16, 4  ;;  %v1481_v25 = vrot.slane %v1479_v18, 4  ;;  %v1490_v29 = vrot.slane %v1488_v21, 5  ;;  %v1494_v30 = vrot.slane %v1492_v22, 4  ;;  %v6030_v13 = vld [vmem:[%s5919_s15 + $0x3c] sm:$0xff]   ;;  %v6037_v22 = vld [vmem:[%s5919_s15 + $0x48] sm:$0xff]  }
  0x22   : > { %v1467_v27 = vsel %vm5942_vm2, %v1462_v20, %v1466_v7  ;;  %v1500_v35 = vrot.slane %v1498_v23, 5  ;;  %v1503_v43 = vshrl.u32 %v1340_v39, 16  ;;  %v1506_v44 = vshll.u32 %v1340_v39, 16  ;;  %v1346_v23 = vld [vmem:[%s5919_s15 + $0x54] sm:$0xf] }
  0x23   : > { %4869 = vmatpush3.bf16.msra.mxu1 %v5742_v32  ;;  %v1477_v32 = vsel %vm5942_vm2, %v1472_v24, %v1476_v9  ;;  %v1485_v34 = vor.u32 %v1484_v26, %v1481_v25  ;;  %v1512_v45 = vshll.u32 %v1341_v40, 16  ;;  %v1516_v48 = vshrl.u32 %v1341_v40, 16  ;;  %v1347_v24 = vld [vmem:[%s5919_s15 + $0x58] sm:$0xf] }
  0x24   : > { %5061 = vmatpush3.bf16.msra.mxu0 %v5743_v38  ;;  %4902 = vmatprep.subr.bf16.mxu1 %v5746_v47  ;;  %v6002_v37 = vcombine.low %v1467_v27, %v1477_v32  ;;  %v1495_v38 = vor.u32 %v1494_v30, %v1490_v29  ;;  %v1522_v49 = vshll.u32 %v1342_v41, 16  ;;  %v1505_v51 = vrot.slane %v1503_v43, 4  ;;  %v5758_v27 = vld [vmem:[%s6753_s1 + $0x1e8] sm:$0xff]  }
  0x25   : > { %5094 = vmatprep.subr.bf16.mxu0 %v5747_v52  ;;  %v1486_v42 = vrot.slane %v1485_v34, 4  ;;  %v1514_v53 = vrot.slane %v1512_v45, 5  ;;  %v1518_v58 = vrot.slane %v1516_v48, 4  ;;  %v1527_v1 = vshrl.u32 %v1343_v60, 16 }
  0x26   : > { %4871 = vmatmul.mubr.bf16.vlgmr.msra.gmra.mrb[0].mxu1 %v5963_v55  ;;  %v1496_v46 = vrot.slane %v1495_v38, 4  ;;  %v1524_v59 = vrot.slane %v1522_v49, 5  ;;  %v1530_v3 = vshll.u32 %v1343_v60, 16  ;;  %v1536_v5 = vshll.u32 %v1344_v63, 16 }
  0x27   : > { %5063 = vmatmul.mubr.bf16.vlgmr.msra.gmra.mrb[0].mxu0 %v5983_v15  ;;  %4903 = vmatpush3.bf16.msra.mxu1 %v5746_v47  ;;  %v5753_v47 = vld [vmem:[%s6753_s1 + $0x1d8] sm:$0xff]   ;;  %v1491_v50 = vsel %vm5942_vm2, %v1486_v42, %v1490_v29  ;;  %v1519_v4 = vor.u32 %v1518_v58, %v1514_v53  ;;  %v1546_v7 = vshll.u32 %v1345_v0, 16  ;;  %v1529_v9 = vrot.slane %v1527_v1, 4 }
  0x28   : > { %5095 = vmatpush3.bf16.msra.mxu0 %v5747_v52  ;;  %4874 = vmatprep.mubr.bf16.mxu1 %v5969_v2  ;;  %v1508_v52 = vrot.slane %v1506_v44, 5  ;;  %v1501_v57 = vsel %vm5942_vm2, %v1496_v46, %v1500_v35  ;;  %v1538_v14 = vrot.slane %v1536_v5, 5  ;;  %v1348_v29 = vld [vmem:[%s5919_s15 + $0x5c] sm:$0x1]  ;;  %v1551_v30 = vshrl.u32 %v1346_v23, 16  ;;  %v6055_v46 = vld [vmem:[%s5919_s15 + $0x54] sm:$0xff]  }
  0x29   : > { %5096 = vmatprep.subr.bf16.mxu0 %v5748_v6  ;;  %4904 = vmatprep.subr.bf16.mxu1 %v5751_v10  ;;  %v6020_v61 = vcombine.low %v1491_v50, %v1501_v57  ;;  %v1520_v12 = vrot.slane %v1519_v4, 4  ;;  %v1548_v21 = vrot.slane %v1546_v7, 5  ;;  %v1560_v34 = vshll.u32 %v1347_v24, 16  ;;  %v1349_v50 = vld [vmem:[%s5919_s15 + $0x60] sm:$0xf]  ;;  %v5763_v7 = vld [vmem:[%s6753_s1 + $0x1f8] sm:$0xff]  }
  0x2a   : > { %5066 = vmatprep.mubr.bf16.mxu0 %v6002_v37  ;;  %v1509_v62 = vor.u32 %v1508_v52, %v1505_v51  ;;  %v1564_v35 = vshrl.u32 %v1347_v24, 16  ;;  %v1570_v38 = vshll.u32 %v1348_v29, 16  ;;  %v1553_v40 = vrot.slane %v1551_v30, 4  ;;  %v1350_v51 = vld [vmem:[%s5919_s15 + $0x64] sm:$0xf]  ;;  %v5769_v24 = vld [vmem:[%s6753_s1 + $0xe8] sm:$0xff]  }
  0x2b   : > { %4905 = vmatpush3.bf16.msra.mxu1 %v5751_v10  ;;  %v1532_v10 = vrot.slane %v1530_v3, 5  ;;  %v1525_v19 = vsel %vm5942_vm2, %v1520_v12, %v1524_v59  ;;  %v1562_v43 = vrot.slane %v1560_v34, 5  ;;  %v1351_v52 = vld [vmem:[%s5919_s15 + $0x68] sm:$0x1]  ;;  %v1578_v57 = vshll.u32 %v1349_v50, 16  ;;  %v5762_v59 = vld [vmem:[%s6753_s1 + $0x1f0] sm:$0xff]  }
  0x2c   : > { %5097 = vmatpush3.bf16.msra.mxu0 %v5748_v6  ;;  %4906 = vmatprep.subr.bf16.mxu1 %v5756_v56  ;;  %v1540_v6 = vshrl.u32 %v1344_v63, 16  ;;  %v1510_v8 = vrot.slane %v1509_v62, 4  ;;  %v1566_v44 = vrot.slane %v1564_v35, 4  ;;  %v1572_v45 = vrot.slane %v1570_v38, 5  ;;  %v5773_v29 = vld [vmem:[%s6753_s1 + $0xf0] sm:$0xff]   ;;  %v6113_v30 = vld [vmem:[%s5919_s15 + $0x84] sm:$0xff]  }
  0x2d   : > { %5098 = vmatprep.subr.bf16.mxu0 %v5752_v31  ;;  %v1533_v18 = vor.u32 %v1532_v10, %v1529_v9  ;;  %v1584_v58 = vshll.u32 %v1350_v51, 16  ;;  %v1588_v62 = vshrl.u32 %v1350_v51, 16  ;;  %v1594_v63 = vshll.u32 %v1351_v52, 16  ;;  %v6078_v10 = vld [vmem:[%s5919_s15 + $0x60] sm:$0xff]   ;;  %v5777_v34 = vld [vmem:[%s6753_s1 + $0xf8] sm:$0xff]   ;;  %v5778_v52 = vld [vmem:[%s6753_s1 + $0x90] sm:$0xff]  }
  0x2e   : > { %4875 = vmatmul.mubr.bf16.gmra.mrb[4].mxu1 %v5992_v28  ;;  %v1542_v16 = vrot.slane %v1540_v6, 4  ;;  %v1515_v17 = vsel %vm5942_vm2, %v1510_v8, %v1514_v53  ;;  %v1567_v53 = vor.u32 %v1566_v44, %v1562_v43  ;;  %v1580_v3 = vrot.slane %v1578_v57, 5  ;;  %v1352_v35 = vld [vmem:[%s5919_s15 + $0x6c] sm:$0xf]  ;;  %v1353_v38 = vld [vmem:[%s5919_s15 + $0x70] sm:$0xf] }
  0x2f   : > { %4878 = vmatprep.mubr.bf16.mxu1 %v6000_v36  ;;  %4907 = vmatpush3.bf16.msra.mxu1 %v5756_v56  ;;  %v6041_v25 = vcombine.low %v1515_v17, %v1525_v19  ;;  %v1534_v26 = vrot.slane %v1533_v18, 4  ;;  %v1575_v56 = vshrl.u32 %v1349_v50, 16  ;;  %v1586_v4 = vrot.slane %v1584_v58, 5  ;;  %v5766_v17 = vld [vmem:[%s6753_s1 + $0xe0] sm:$0xff]   ;;  %v6088_v19 = vld [vmem:[%s5919_s15 + $0x6c] sm:$0xff]  }
  0x30   : > { %5099 = vmatpush3.bf16.msra.mxu0 %v5752_v31  ;;  %v1543_v20 = vor.u32 %v1542_v16, %v1538_v14  ;;  %v1554_v31 = vshll.u32 %v1346_v23, 16  ;;  %v1568_v0 = vrot.slane %v1567_v53, 4  ;;  %v1590_v6 = vrot.slane %v1588_v62, 4  ;;  %v1356_v53 = vld [vmem:[%s5919_s15 + $0x7c] sm:$0xf] }
  0x31   : > { %5067 = vmatmul.mubr.bf16.gmra.mrb[4].mxu0 %v6020_v61  ;;  %5100 = vmatprep.subr.bf16.mxu0 %v5753_v47  ;;  %v1539_v39 = vsel %vm5942_vm2, %v1534_v26, %v1538_v14  ;;  %v1577_v1 = vrot.slane %v1575_v56, 4  ;;  %v1596_v14 = vrot.slane %v1594_v63, 5  ;;  %v1357_v58 = vld [vmem:[%s5919_s15 + $0x80] sm:$0x1]  ;;  %v1636_v62 = vshrl.u32 %v1356_v53, 16 }
  0x32   : > { %v1544_v32 = vrot.slane %v1543_v20, 4  ;;  %5070 = vmatprep.mubr.bf16.mxu0 %v6041_v25  ;;  %v1556_v41 = vrot.slane %v1554_v31, 5  ;;  %v1573_v8 = vsel %vm5942_vm2, %v1568_v0, %v1572_v45  ;;  %v1591_v12 = vor.u32 %v1590_v6, %v1586_v4  ;;  %v6116_v31 = vld [vmem:[%s5919_s15 + $0x90] sm:$0xff]   ;;  %v6142_v63 = vld [vmem:[%s6753_s1 + $0x180] sm:$0xff]  }
  0x33   : > { %v1581_v9 = vor.u32 %v1580_v3, %v1577_v1  ;;  %v1642_v3 = vshll.u32 %v1357_v58, 16 }
  0x34   : > { %5101 = vmatpush3.bf16.msra.mxu0 %v5753_v47  ;;  %v1549_v42 = vsel %vm5942_vm2, %v1544_v32, %v1548_v21  ;;  %v5761_v47 = vld [vmem:[%s6753_s1 + $0xd8] sm:$0xff]   ;;  %v1557_v49 = vor.u32 %v1556_v41, %v1553_v40  ;;  %v1592_v18 = vrot.slane %v1591_v12, 4  ;;  %v5774_v32 = vld [vmem:[%s6753_s1 + $0x88] sm:$0xff]   ;;  %v1599_v40 = vshrl.u32 %v1352_v35, 16 }
  0x35   : > { %5102 = vmatprep.subr.bf16.mxu0 %v5757_v11  ;;  %v6060_v48 = vcombine.low %v1539_v39, %v1549_v42  ;;  %4908 = vmatprep.subr.bf16.mxu1 %v5761_v47  ;;  %v1582_v16 = vrot.slane %v1581_v9, 4  ;;  %v6093_v21 = vld [vmem:[%s5919_s15 + $0x78] sm:$0xff]   ;;  %v1354_v39 = vld [vmem:[%s5919_s15 + $0x74] sm:$0x1]  ;;  %v1602_v41 = vshll.u32 %v1352_v35, 16  ;;  %v1608_v42 = vshll.u32 %v1353_v38, 16 }
  0x36   : > { %4879 = vmatmul.mubr.bf16.gmra.mrb[8].mxu1 %v6030_v13  ;;  %v1558_v60 = vrot.slane %v1557_v49, 4  ;;  %v1597_v23 = vsel %vm5942_vm2, %v1592_v18, %v1596_v14  ;;  %v1618_v44 = vshll.u32 %v1354_v39, 16  ;;  %v1601_v45 = vrot.slane %v1599_v40, 4  ;;  %v1355_v49 = vld [vmem:[%s5919_s15 + $0x78] sm:$0xf]  ;;  %v6151_v9 = vld [vmem:[%s5919_s15 + $0xa8] sm:$0xff]  }
  0x37   : > { %4882 = vmatprep.mubr.bf16.mxu1 %v6037_v22  ;;  %4909 = vmatpush3.bf16.msra.mxu1 %v5761_v47  ;;  %v1587_v20 = vsel %vm5942_vm2, %v1582_v16, %v1586_v4  ;;  %v1604_v47 = vrot.slane %v1602_v41, 5  ;;  %v6131_v50 = vrot.slane %v1608_v42, 5  ;;  %v1623_v56 = vshrl.u32 %v1355_v49, 16  ;;  %v6146_v4 = vld [vmem:[%s5919_s15 + $0x9c] sm:$0xff]   ;;  %v1361_v35 = vld [vmem:[%s5919_s15 + $0x90] sm:$0xf] }
  0x38   : > { %5103 = vmatpush3.bf16.msra.mxu0 %v5757_v11  ;;  %v1563_v5 = vsel %vm5942_vm2, %v1558_v60, %v1562_v43  ;;  %4910 = vmatprep.subr.bf16.mxu1 %v5766_v17  ;;  %v6100_v26 = vcombine.low %v1587_v20, %v1597_v23  ;;  %v1612_v43 = vshrl.u32 %v1353_v38, 16  ;;  %v1632_v60 = vshll.u32 %v1356_v53, 16  ;;  %v1360_v40 = vld [vmem:[%s5919_s15 + $0x8c] sm:$0x1] }
  0x39   : > { %5104 = vmatprep.subr.bf16.mxu0 %v5758_v27  ;;  %5071 = vmatmul.mubr.bf16.gmra.mrb[8].mxu0 %v6060_v48  ;;  %v6080_v11 = vcombine.low %v1563_v5, %v1573_v8  ;;  %v1605_v57 = vor.u32 %v1604_v47, %v1601_v45  ;;  %v1625_v1 = vrot.slane %v1623_v56, 4  ;;  %v1358_v8 = vld [vmem:[%s5919_s15 + $0x84] sm:$0xf]  ;;  %v1620_v16 = vrot.slane %v1618_v44, 5  ;;  %v1362_v45 = vld [vmem:[%s5919_s15 + $0x94] sm:$0xf] }
  0x3a   : > { %v1614_v51 = vrot.slane %v1612_v43, 4  ;;  %v1634_v6 = vrot.slane %v1632_v60, 5  ;;  %v1644_v23 = vrot.slane %v1642_v3, 5  ;;  %v1666_v58 = vshll.u32 %v1360_v40, 16  ;;  %v1364_v60 = vld [vmem:[%s5919_s15 + $0x9c] sm:$0xf] }
  0x3b   : > { %5074 = vmatprep.mubr.bf16.mxu0 %v6080_v11  ;;  %4911 = vmatpush3.bf16.msra.mxu1 %v5766_v17  ;;  %v1606_v12 = vrot.slane %v1605_v57, 4  ;;  %v1359_v17 = vld [vmem:[%s5919_s15 + $0x88] sm:$0xf]  ;;  %v1684_v3 = vshrl.u32 %v1362_v45, 16 }
  0x3c   : > { %5105 = vmatpush3.bf16.msra.mxu0 %v5758_v27  ;;  %v5770_v27 = vld [vmem:[%s6753_s1 + $0x80] sm:$0xff]   ;;  %4912 = vmatprep.subr.bf16.mxu1 %v5769_v24  ;;  %v1615_v0 = vor.u32 %v1614_v51, %v6131_v50  ;;  %v1674_v51 = vshll.u32 %v1361_v35, 16 }
  0x3d   : > { %5106 = vmatprep.subr.bf16.mxu0 %v5762_v59  ;;  %v1611_v47 = vsel %vm5942_vm2, %v1606_v12, %v6131_v50  ;;  %v5782_v50 = vld [vmem:[%s6753_s1 + $0xa0] sm:$0xff]  }
  0x3e   : > { %4883 = vmatmul.mubr.bf16.gmra.mrb[12].mxu1 %v6055_v46  ;;  %v1616_v14 = vrot.slane %v1615_v0, 4  ;;  %v1676_v0 = vrot.slane %v1674_v51, 5 }
  0x3f   : > { %4886 = vmatprep.mubr.bf16.mxu1 %v6078_v10  ;;  %4913 = vmatpush3.bf16.msra.mxu1 %v5769_v24  ;;  %v1647_v24 = vshrl.u32 %v1358_v8, 16 }
  0x40   : > { %5107 = vmatpush3.bf16.msra.mxu0 %v5762_v59  ;;  %4914 = vmatprep.subr.bf16.mxu1 %v5773_v29  ;;  %v1626_v59 = vshll.u32 %v1355_v49, 16  ;;  %v1671_v49 = vshrl.u32 %v1361_v35, 16  ;;  %v1621_v53 = vsel %vm5942_vm2, %v1616_v14, %v1620_v16  ;;  %v1686_v14 = vrot.slane %v1684_v3, 4 }
  0x41   : > { %5108 = vmatprep.subr.bf16.mxu0 %v5763_v7  ;;  %5075 = vmatmul.mubr.bf16.gmra.mrb[12].mxu0 %v6100_v26  ;;  %v1649_v41 = vrot.slane %v1647_v24, 4  ;;  %v1367_v24 = vld [vmem:[%s5919_s15 + $0xa8] sm:$0xf] }
  0x42   : > { %5110 = vmatprep.mubr.bf16.mxu0 %v5983_v15  ;;  %v1628_v5 = vrot.slane %v1626_v59, 5  ;;  %v1363_v59 = vld [vmem:[%s5919_s15 + $0x98] sm:$0x1]  ;;  %v1722_v51 = vshll.u32 %v1367_v24, 16 }
  0x43   : > { %4915 = vmatpush3.bf16.msra.mxu1 %v5773_v29  ;;  %v1656_v29 = vshll.u32 %v1359_v17, 16  ;;  %v1690_v16 = vshll.u32 %v1363_v59, 16  ;;  %v1370_v59 = vld [vmem:[%s5919_s15 + $0xb4] sm:$0xf] }
  0x44   : > { %5109 = vmatpush3.bf16.msra.mxu0 %v5763_v7  ;;  %4916 = vmatprep.subr.bf16.mxu1 %v5777_v34  ;;  %v1638_v7 = vrot.slane %v1636_v62, 4  ;;  %v1629_v18 = vor.u32 %v1628_v5, %v1625_v1  ;;  %v1673_v62 = vrot.slane %v1671_v49, 4  ;;  %v1680_v1 = vshll.u32 %v1362_v45, 16  ;;  %v1369_v49 = vld [vmem:[%s5919_s15 + $0xb0] sm:$0x1] }
  0x45   : > { %5142 = vmatprep.subr.bf16.mxu0 %v5770_v27  ;;  %v6163_v43 = vrot.slane %v1656_v29, 5  ;;  %v6198_v29 = vrot.slane %v1666_v58, 5 }
  0x46   : > { %4887 = vmatmul.mubr.bf16.gmra.mrb[16].mxu1 %v6088_v19  ;;  %v1639_v20 = vor.u32 %v1638_v7, %v1634_v6  ;;  %v1630_v38 = vrot.slane %v1629_v18, 4  ;;  %v1365_v7 = vld [vmem:[%s5919_s15 + $0xa0] sm:$0xf]  ;;  %v6185_v12 = vrot.slane %v1680_v1, 5  ;;  %v6187_v18 = vcombine.low %v1611_v47, %v1621_v53 }
  0x47   : > { %4890 = vmatprep.mubr.bf16.mxu1 %v6093_v21  ;;  %4917 = vmatpush3.bf16.msra.mxu1 %v5777_v34  ;;  %v1660_v34 = vshrl.u32 %v1359_v17, 16  ;;  %v1698_v17 = vshll.u32 %v1364_v60, 16  ;;  %v1704_v40 = vshll.u32 %v1365_v7, 16  ;;  %v1692_v47 = vrot.slane %v1690_v16, 5 }
  0x48   : > { %4950 = vmatprep.subr.bf16.mxu1 %v6142_v63  ;;  %v1640_v39 = vrot.slane %v1639_v20, 4  ;;  %v1635_v56 = vsel %vm5942_vm2, %v1630_v38, %v1634_v6  ;;  %v1368_v38 = vld [vmem:[%s5919_s15 + $0xac] sm:$0xf] }
  0x49   : > { %5111 = vmatmul.mubr.bf16.vlgmr.msra.gmra.mrb[0].mxu0 %v6002_v37  ;;  %v1662_v44 = vrot.slane %v1660_v34, 4  ;;  %v1677_v34 = vor.u32 %v1676_v0, %v1673_v62  ;;  %v6205_v53 = vrot.slane %v1704_v40, 5  ;;  %v1724_v62 = vrot.slane %v1722_v51, 5 }
  0x4a   : > { %5114 = vmatprep.mubr.bf16.mxu0 %v6020_v61  ;;  %5143 = vmatpush3.bf16.msra.mxu0 %v5770_v27  ;;  %v1650_v27 = vshll.u32 %v1358_v8, 16  ;;  %v1645_v57 = vsel %vm5942_vm2, %v1640_v39, %v1644_v23  ;;  %v1695_v8 = vshrl.u32 %v1364_v60, 16  ;;  %v1366_v23 = vld [vmem:[%s5919_s15 + $0xa4] sm:$0x1]  ;;  %v1700_v39 = vrot.slane %v1698_v17, 5 }
  0x4b   : > { %5144 = vmatprep.subr.bf16.mxu0 %v5774_v32  ;;  %v1663_v6 = vor.u32 %v1662_v44, %v6163_v43  ;;  %v6189_v20 = vcombine.low %v1635_v56, %v1645_v57  ;;  %v1714_v57 = vshll.u32 %v1366_v23, 16  ;;  %v1678_v60 = vrot.slane %v1677_v34, 4 }
  0x4c   : > { %v1652_v42 = vrot.slane %v1650_v27, 5  ;;  %v5784_v27 = vld [vmem:[%s6753_s1 + $0xa8] sm:$0xff]   ;;  %v1697_v35 = vrot.slane %v1695_v8, 4  ;;  %v1728_v0 = vshll.u32 %v1368_v38, 16  ;;  %v1743_v17 = vshrl.u32 %v1370_v59, 16 }
  0x4d   : > { %v1664_v45 = vrot.slane %v1663_v6, 4  ;;  %v1738_v6 = vshll.u32 %v1369_v49, 16  ;;  %v5781_v8 = vld [vmem:[%s6753_s1 + $0x188] sm:$0xff]  }
  0x4e   : > { %4891 = vmatmul.mubr.bf16.gmra.mrb[20].mxu1 %v6113_v30  ;;  %5145 = vmatpush3.bf16.msra.mxu0 %v5774_v32  ;;  %v5780_v32 = vld [vmem:[%s6753_s1 + $0x98] sm:$0xff]   ;;  %v1653_v5 = vor.u32 %v1652_v42, %v1649_v41  ;;  %v1708_v41 = vshrl.u32 %v1365_v7, 16  ;;  %v1719_v42 = vshrl.u32 %v1367_v24, 16  ;;  %v1701_v1 = vor.u32 %v1700_v39, %v1697_v35  ;;  %v1373_v39 = vld [vmem:[%s5919_s15 + $0xc0] sm:$0xf] }
  0x4f   : > { %4894 = vmatprep.mubr.bf16.mxu1 %v6116_v31  ;;  %5146 = vmatprep.subr.bf16.mxu0 %v5778_v52  ;;  %v6216_v16 = vrot.slane %v1728_v0, 5  ;;  %v1669_v23 = vsel %vm5942_vm2, %v1664_v45, %v6198_v29  ;;  %v6221_v24 = vrot.slane %v1714_v57, 5  ;;  %v1745_v45 = vrot.slane %v1743_v17, 4  ;;  %v5786_v57 = vld [vmem:[%s6753_s1 + $0xb0] sm:$0xff]   ;;  %v1372_v0 = vld [vmem:[%s5919_s15 + $0xbc] sm:$0x1] }
  0x50   : > { %v1654_v44 = vrot.slane %v1653_v5, 4  ;;  %v1710_v56 = vrot.slane %v1708_v41, 4  ;;  %v1721_v58 = vrot.slane %v1719_v42, 4  ;;  %v1732_v5 = vshrl.u32 %v1368_v38, 16  ;;  %v1375_v17 = vld [vmem:[%s5919_s15 + $0xc8] sm:$0x1] }
  0x51   : > { %5115 = vmatmul.mubr.bf16.gmra.mrb[4].mxu0 %v6041_v25  ;;  %v1702_v29 = vrot.slane %v1701_v1, 4  ;;  %v1740_v42 = vrot.slane %v1738_v6, 5  ;;  %v1376_v1 = vld [vmem:[%s5919_s15 + $0xcc] sm:$0xf] }
  0x52   : > { %5118 = vmatprep.mubr.bf16.mxu0 %v6060_v48  ;;  %5147 = vmatpush3.bf16.msra.mxu0 %v5778_v52  ;;  %v6181_v52 = vld [vmem:[%s5919_s15 + $0xb4] sm:$0xff]   ;;  %v1711_v3 = vor.u32 %v1710_v56, %v6205_v53  ;;  %v1659_v7 = vsel %vm5942_vm2, %v1654_v44, %v6163_v43  ;;  %v1734_v34 = vrot.slane %v1732_v5, 4  ;;  %v1683_v43 = vsel %vm5942_vm2, %v1678_v60, %v6185_v12 }
  0x53   : > { %5148 = vmatprep.subr.bf16.mxu0 %v5780_v32  ;;  %v2153_v56 = vshrl.u32 %v1373_v39, 16 }
  0x54   : > { %v1712_v40 = vrot.slane %v1711_v3, 4  ;;  %v1735_v41 = vor.u32 %v1734_v34, %v6216_v16  ;;  %v5785_v34 = vld [vmem:[%s6753_s1 + $0x198] sm:$0xff]  }
  0x55   : > { %v2155_v3 = vrot.slane %v2153_v56, 4 }
  0x56   : > { %4895 = vmatmul.mubr.bf16.gmra.mrb[24].mxu1 %v6146_v4  ;;  %5149 = vmatpush3.bf16.msra.mxu0 %v5780_v32  ;;  %v1687_v32 = vor.u32 %v1686_v14, %v6185_v12  ;;  %v1725_v14 = vor.u32 %v1724_v62, %v1721_v58  ;;  %v1374_v12 = vld [vmem:[%s5919_s15 + $0xc4] sm:$0xf]  ;;  %v6244_v58 = vcombine.low %v1659_v7, %v1669_v23 }
  0x57   : > { %4898 = vmatprep.mubr.bf16.mxu1 %v6151_v9  ;;  %5150 = vmatprep.subr.bf16.mxu0 %v5782_v50  ;;  %v2166_v60 = vshrl.u32 %v1374_v12, 16  ;;  %v1707_v7 = vsel %vm5942_vm2, %v1702_v29, %v6205_v53 }
  0x58   : > { %v1726_v44 = vrot.slane %v1725_v14, 4  ;;  %v1717_v14 = vsel %vm5942_vm2, %v1712_v40, %v6221_v24  ;;  %v2172_v40 = vshll.u32 %v1375_v17, 16 }
  0x59   : > { %5119 = vmatmul.mubr.bf16.gmra.mrb[8].mxu0 %v6080_v11  ;;  %v2168_v23 = vrot.slane %v2166_v60, 4  ;;  %v2853_v60 = vld [vmem:[%s5919_s15 + $0x4] sm:$0xf] }
  0x5a   : > { %5122 = vmatprep.mubr.bf16.mxu0 %v6100_v26  ;;  %5151 = vmatpush3.bf16.msra.mxu0 %v5782_v50  ;;  %v1371_v50 = vld [vmem:[%s5919_s15 + $0xb8] sm:$0xf] }
  0x5b   : > { %5152 = vmatprep.subr.bf16.mxu0 %v5784_v27  ;;  %v1752_v35 = vshll.u32 %v1371_v50, 16  ;;  %v1756_v38 = vshrl.u32 %v1371_v50, 16  ;;  %v1377_v50 = vld [vmem:[%s5919_s15 + $0xd0] sm:$0xf] }
  0x5d   : > { %v6239_v49 = vrot.slane %v1752_v35, 5  ;;  %v1758_v51 = vrot.slane %v1756_v38, 4  ;;  %v2506_v35 = vshll.u32 %v1376_v1, 16  ;;  %v2512_v38 = vshll.u32 %v1377_v50, 16 }
  0x5e   : > { %4899 = vmatmul.mubr.bf16.gmra.mrb[28].mxu1 %v6181_v52  ;;  %5153 = vmatpush3.bf16.msra.mxu0 %v5784_v27 }
  0x5f   : > { %4918 = vmatprep.mubr.bf16.mxu1 %v5963_v55  ;;  %v1688_v55 = vrot.slane %v1687_v32, 4  ;;  %v1746_v32 = vshll.u32 %v1370_v59, 16  ;;  %v2156_v59 = vshll.u32 %v1373_v39, 16  ;;  %5154 = vmatprep.subr.bf16.mxu0 %v5786_v57  ;;  %v1759_v24 = vor.u32 %v1758_v51, %v6239_v49 }
  0x60   : > { %v2516_v39 = vshrl.u32 %v1377_v50, 16  ;;  %v2514_v51 = vrot.slane %v2512_v38, 5  ;;  %v2859_v38 = vld [vmem:[%s5919_s15 + $0x1c] sm:$0xf] }
  0x61   : > { %5123 = vmatmul.mubr.bf16.gmra.mrb[12].mxu0 %v6187_v18  ;;  %v1693_v27 = vsel %vm5942_vm2, %v1688_v55, %v1692_v47  ;;  %v1748_v47 = vrot.slane %v1746_v32, 5  ;;  %v5787_v55 = vld [vmem:[%s6753_s1 + $0xb8] sm:$0xff]   ;;  %v2158_v5 = vrot.slane %v2156_v59, 5  ;;  %v6272_v32 = vld [vmem:[%s6753_s1 + $0x140] sm:$0xff]  }
  0x62   : > { %5126 = vmatprep.mubr.bf16.mxu0 %v6189_v20  ;;  %v6249_v62 = vcombine.low %v1683_v43, %v1693_v27  ;;  %5155 = vmatpush3.bf16.msra.mxu0 %v5786_v57  ;;  %v1762_v43 = vshll.u32 %v1372_v0, 16  ;;  %v2503_v27 = vshrl.u32 %v1376_v1, 16  ;;  %v2518_v56 = vrot.slane %v2516_v39, 4  ;;  %v5794_v39 = vld [vmem:[%s6753_s1 + $0x1b8] sm:$0xff]  }
  0x63   : > { %5156 = vmatprep.subr.bf16.mxu0 %v5787_v55  ;;  %v2159_v29 = vor.u32 %v2158_v5, %v2155_v3 }
  0x64   : > { %v2519_v5 = vor.u32 %v2518_v56, %v2514_v51 }
  0x65   : > { %v2160_v57 = vrot.slane %v2159_v29, 4  ;;  %v2855_v29 = vld [vmem:[%s5919_s15 + $0xc] sm:$0xe] }
  0x66   : > { %4919 = vmatmul.mubr.bf16.vlgmr.msra.gmra.mrb[0].mxu1 %v5969_v2  ;;  %v5783_v2 = vld [vmem:[%s6753_s1 + $0x190] sm:$0xff]   ;;  %5157 = vmatpush3.bf16.msra.mxu0 %v5787_v55  ;;  %v5789_v55 = vld [vmem:[%s6753_s1 + $0x1a8] sm:$0xff]  }
  0x67   : > { %4951 = vmatpush3.bf16.msra.mxu1 %v6142_v63  ;;  %4922 = vmatprep.mubr.bf16.mxu1 %v5992_v28  ;;  %v1736_v63 = vrot.slane %v1735_v41, 4  ;;  %v2162_v28 = vshll.u32 %v1374_v12, 16  ;;  %v6282_v41 = vcombine.low %v1707_v7, %v1717_v14  ;;  %v2852_v14 = vld [vmem:[%s5919_s15] sm:$0xe] }
  0x68   : > { %4952 = vmatprep.subr.bf16.mxu1 %v5781_v8  ;;  %5190 = vmatprep.subr.bf16.mxu0 %v6272_v32 }
  0x69   : > { %v6253_v6 = vrot.slane %v2162_v28, 5  ;;  %5127 = vmatmul.mubr.bf16.gmra.mrb[16].mxu0 %v6244_v58  ;;  %v1741_v53 = vsel %vm5942_vm2, %v1736_v63, %v1740_v42  ;;  %v5788_v42 = vld [vmem:[%s6753_s1 + $0x1a0] sm:$0xff]   ;;  %v2508_v63 = vrot.slane %v2506_v35, 5  ;;  %v2174_v28 = vrot.slane %v2172_v40, 5  ;;  %v2858_v40 = vld [vmem:[%s5919_s15 + $0x18] sm:$0xe] }
  0x6a   : > { %5130 = vmatprep.mubr.bf16.mxu0 %v6249_v62 }
  0x6b   : > { %4953 = vmatpush3.bf16.msra.mxu1 %v5781_v8  ;;  %v1731_v8 = vsel %vm5942_vm2, %v1726_v44, %v6216_v16  ;;  %v1749_v16 = vor.u32 %v1748_v47, %v1745_v45  ;;  %v1760_v44 = vrot.slane %v1759_v24, 4  ;;  %v1378_v45 = vld [vmem:[%s5919_s15 + $0xd4] sm:$0x1]  ;;  %v2505_v47 = vrot.slane %v2503_v27, 4 }
  0x6c   : > { %4954 = vmatprep.subr.bf16.mxu1 %v5783_v2  ;;  %v2522_v50 = vshll.u32 %v1378_v45, 16  ;;  %v2165_v7 = vsel %vm5942_vm2, %v2160_v57, %v6253_v6  ;;  %v2973_v45 = vrot.slane %v2859_v38, 5 }
  0x6d   : > { %v1750_v12 = vrot.slane %v1749_v16, 4  ;;  %v2509_v3 = vor.u32 %v2508_v63, %v2505_v47  ;;  %v2860_v47 = vld [vmem:[%s5919_s15 + $0x20] sm:$0x1] }
  0x6e   : > { %4923 = vmatmul.mubr.bf16.gmra.mrb[4].mxu1 %v6000_v36  ;;  %v2169_v36 = vor.u32 %v2168_v23, %v6253_v6  ;;  %v2856_v23 = vld [vmem:[%s5919_s15 + $0x10] sm:$0xf]  ;;  %v2524_v16 = vrot.slane %v2522_v50, 5  ;;  %v6346_v63 = vld [vmem:[%s6753_s1 + $0x40] sm:$0xff]  }
  0x6f   : > { %4926 = vmatprep.mubr.bf16.mxu1 %v6030_v13  ;;  %4955 = vmatpush3.bf16.msra.mxu1 %v5783_v2  ;;  %v6288_v13 = vcombine.low %v1731_v8, %v1741_v53  ;;  %v1764_v2 = vrot.slane %v1762_v43, 5  ;;  %v1755_v0 = vsel %vm5942_vm2, %v1750_v12, %v6239_v49  ;;  %v2959_v49 = vrot.slane %v2853_v60, 5  ;;  %v2854_v8 = vld [vmem:[%s5919_s15 + $0x8] sm:$0x1] }
  0x70   : > { %4956 = vmatprep.subr.bf16.mxu1 %v5785_v34  ;;  %v2170_v59 = vrot.slane %v2169_v36, 4  ;;  %v2520_v53 = vrot.slane %v2519_v5, 4  ;;  %v4528_v43 = vrot.slane %v2852_v14, 9  ;;  %v2962_v35 = vrot.slane %v2854_v8, 5  ;;  %v2857_v36 = vld [vmem:[%s5919_s15 + $0x14] sm:$0x1] }
  0x71   : > { %5131 = vmatmul.mubr.bf16.gmra.mrb[20].mxu0 %v6282_v41  ;;  %v1765_v1 = vsel %vm5942_vm2, %v1760_v44, %v1764_v2  ;;  %v2961_v27 = vrot.slane %v2959_v49, 4  ;;  %v2966_v44 = vrot.slane %v2856_v23, 5  ;;  %v2975_v60 = vrot.slane %v2973_v45, 4  ;;  %v2863_v5 = vld [vmem:[%s5919_s15 + $0x2c] sm:$0x1] }
  0x72   : > { %5134 = vmatprep.mubr.bf16.mxu0 %v6288_v13  ;;  %v6314_v17 = vcombine.low %v1755_v0, %v1765_v1  ;;  %v2525_v12 = vsel %vm5942_vm2, %v2520_v53, %v2524_v16  ;;  %v2960_v2 = vsel %vm6319_vm5, %v4528_v43, %v2959_v49  ;;  %v2862_v0 = vld [vmem:[%s5919_s15 + $0x28] sm:$0xf]  ;;  %v2865_v1 = vld [vmem:[%s5919_s15 + $0x34] sm:$0xf]  ;;  %v2864_v14 = vld [vmem:[%s5919_s15 + $0x30] sm:$0xe] }
  0x73   : > { %4957 = vmatpush3.bf16.msra.mxu1 %v5785_v34  ;;  %v2510_v34 = vrot.slane %v2509_v3, 4  ;;  %v2968_v57 = vrot.slane %v2966_v44, 4  ;;  %v2861_v3 = vld [vmem:[%s5919_s15 + $0x24] sm:$0xe]  ;;  %v2987_v8 = vrot.slane %v2865_v1, 5  ;;  %v2983_v53 = vrot.slane %v2863_v5, 5 }
  0x74   : > { %4958 = vmatprep.subr.bf16.mxu1 %v5788_v42  ;;  %v4532_v43 = vrot.slane %v2864_v14, 9  ;;  %v2876_v5 = vld [vmem:[%s5919_s15 + $0x60] sm:$0xe] }
  0x76   : > { %4927 = vmatmul.mubr.bf16.gmra.mrb[8].mxu1 %v6037_v22  ;;  %v2175_v22 = vsel %vm5942_vm2, %v2170_v59, %v2174_v28  ;;  %v2969_v59 = vrot.slane %v2857_v36, 5  ;;  %v4530_v28 = vrot.slane %v2858_v40, 9  ;;  %v2869_v36 = vld [vmem:[%s5919_s15 + $0x44] sm:$0x1]  ;;  %v2871_v40 = vld [vmem:[%s5919_s15 + $0x4c] sm:$0xf] }
  0x77   : > { %4930 = vmatprep.mubr.bf16.mxu1 %v6055_v46  ;;  %4959 = vmatpush3.bf16.msra.mxu1 %v5788_v42  ;;  %v5791_v46 = vld [vmem:[%s6753_s1 + $0x1b0] sm:$0xff]   ;;  %v6317_v6 = vcombine.low %v2165_v7, %v2175_v22  ;;  %v2515_v42 = vsel %vm5942_vm2, %v2510_v34, %v2514_v51  ;;  %v4529_v51 = vrot.slane %v2855_v29, 9  ;;  %v2980_v22 = vrot.slane %v2862_v0, 5  ;;  %v2867_v29 = vld [vmem:[%s5919_s15 + $0x3c] sm:$0xe] }
  0x78   : > { %4960 = vmatprep.subr.bf16.mxu1 %v5789_v55  ;;  %v2970_v7 = vsel %vm6319_vm5, %v2968_v57, %v2969_v59  ;;  %v2974_v49 = vsel %vm6319_vm5, %v4530_v28, %v2973_v45  ;;  %v4531_v34 = vrot.slane %v2861_v3, 9  ;;  %v4533_v45 = vrot.slane %v2867_v29, 9  ;;  %v2874_v28 = vld [vmem:[%s5919_s15 + $0x58] sm:$0xf]  ;;  %v2875_v3 = vld [vmem:[%s5919_s15 + $0x5c] sm:$0x1] }
  0x79   : > { %5135 = vmatmul.mubr.bf16.gmra.mrb[24].mxu0 %v6314_v17  ;;  %v2967_v50 = vsel %vm6319_vm5, %v4529_v51, %v2966_v44  ;;  %v2872_v51 = vld [vmem:[%s5919_s15 + $0x50] sm:$0x1] }
  0x7a   : > { %5138 = vmatprep.mubr.bf16.mxu0 %v6317_v6  ;;  %v6365_v23 = vcombine.low %v2967_v50, %v2970_v7  ;;  %v3004_v1 = vrot.slane %v2872_v51, 5  ;;  %v3008_v50 = vrot.slane %v2874_v28, 5  ;;  %v5797_v7 = vld [vmem:[%s6753_s1 + $0x158] sm:$0xff]   ;;  %v2880_v29 = vld [vmem:[%s5919_s15 + $0x70] sm:$0xf] }
  0x7b   : > { %4961 = vmatpush3.bf16.msra.mxu1 %v5789_v55  ;;  %v2976_v55 = vrot.slane %v2860_v47, 5  ;;  %v2997_v47 = vrot.slane %v2869_v36, 5  ;;  %v2883_v36 = vld [vmem:[%s5919_s15 + $0x7c] sm:$0xf]  ;;  %v2884_v51 = vld [vmem:[%s5919_s15 + $0x80] sm:$0x1] }
  0x7c   : > { %4962 = vmatprep.subr.bf16.mxu1 %v5791_v46 }
  0x7e   : > { %4931 = vmatmul.mubr.bf16.gmra.mrb[12].mxu1 %v6078_v10  ;;  %v2963_v10 = vsel %vm6319_vm5, %v2961_v27, %v2962_v35  ;;  %v2868_v27 = vld [vmem:[%s5919_s15 + $0x40] sm:$0xf]  ;;  %v2989_v35 = vrot.slane %v2987_v8, 4 }
  0x7f   : > { %4934 = vmatprep.mubr.bf16.mxu1 %v6088_v19  ;;  %4963 = vmatpush3.bf16.msra.mxu1 %v5791_v46  ;;  %v4519_v19 = vcombine.low %v2515_v42, %v2525_v12  ;;  %v4560_v56 = vcombine.low %v2960_v2, %v2963_v10  ;;  %v2866_v46 = vld [vmem:[%s5919_s15 + $0x38] sm:$0x1]  ;;  %v2994_v42 = vrot.slane %v2868_v27, 5  ;;  %v2981_v12 = vsel %vm6319_vm5, %v4531_v34, %v2980_v22  ;;  %v2870_v10 = vld [vmem:[%s5919_s15 + $0x48] sm:$0xe]  ;;  %v5799_v27 = vld [vmem:[%s6753_s1 + $0x160] sm:$0xff]  }
  0x80   : > { %4964 = vmatprep.subr.bf16.mxu1 %v5794_v39  ;;  %v2990_v38 = vrot.slane %v2866_v46, 5  ;;  %v2988_v2 = vsel %vm6319_vm5, %v4532_v43, %v2987_v8  ;;  %v4534_v59 = vrot.slane %v2870_v10, 9  ;;  %v3011_v46 = vrot.slane %v2875_v3, 5  ;;  %v2881_v10 = vld [vmem:[%s5919_s15 + $0x74] sm:$0x1] }
  0x81   : > { %5139 = vmatmul.mubr.bf16.gmra.mrb[28].mxu0 %v4519_v19  ;;  %v3001_v19 = vrot.slane %v2871_v40, 5  ;;  %v2996_v57 = vrot.slane %v2994_v42, 4  ;;  %v2995_v14 = vsel %vm6319_vm5, %v4533_v45, %v2994_v42  ;;  %v4536_v34 = vrot.slane %v2876_v5, 9  ;;  %v5801_v40 = vld [vmem:[%s6753_s1 + $0x168] sm:$0xff]  }
  0x82   : > { %5158 = vmatprep.mubr.bf16.mxu0 %v4560_v56  ;;  %v3010_v43 = vrot.slane %v3008_v50, 4  ;;  %v2879_v42 = vld [vmem:[%s5919_s15 + $0x6c] sm:$0xe]  ;;  %v3025_v28 = vrot.slane %v2881_v10, 5  ;;  %v2886_v5 = vld [vmem:[%s5919_s15 + $0x88] sm:$0xf] }
  0x83   : > { %4965 = vmatpush3.bf16.msra.mxu1 %v5794_v39  ;;  %v5792_v39 = vld [vmem:[%s6753_s1 + $0x148] sm:$0xff]   ;;  %v3003_v0 = vrot.slane %v3001_v19, 4  ;;  %v2998_v8 = vsel %vm6319_vm5, %v2996_v57, %v2997_v47  ;;  %v5803_v57 = vld [vmem:[%s6753_s1 + $0x170] sm:$0xff]  }
  0x84   : > { %4998 = vmatprep.subr.bf16.mxu1 %v6346_v63 }
  0x86   : > { %4935 = vmatmul.mubr.bf16.gmra.mrb[16].mxu1 %v6093_v21  ;;  %v2977_v21 = vsel %vm6319_vm5, %v2975_v60, %v2976_v55  ;;  %v2877_v55 = vld [vmem:[%s5919_s15 + $0x64] sm:$0xf] }
  0x87   : > { %4938 = vmatprep.mubr.bf16.mxu1 %v6113_v30  ;;  %v6367_v16 = vcombine.low %v2974_v49, %v2977_v21  ;;  %v2982_v30 = vrot.slane %v2980_v22, 4  ;;  %v2878_v49 = vld [vmem:[%s5919_s15 + $0x68] sm:$0x1]  ;;  %v3015_v21 = vrot.slane %v2877_v55, 5 }
  0x88   : > { %v5798_v55 = vld [vmem:[%s6753_s1 + $0x48] sm:$0xff]  }
  0x89   : > { %5159 = vmatmul.mubr.bf16.vlgmr.msra.gmra.mrb[0].mxu0 %v6365_v23  ;;  %v2984_v44 = vsel %vm6319_vm5, %v2982_v30, %v2983_v53  ;;  %v3005_v53 = vsel %vm6319_vm5, %v3003_v0, %v3004_v1  ;;  %v6420_v30 = vld [vmem:[%s5919_s15 + $0xc0] sm:$0xff]   ;;  %v3016_v45 = vsel %vm6319_vm5, %v4536_v34, %v3015_v21  ;;  %v3036_v34 = vrot.slane %v2886_v5, 5  ;;  %v2891_v5 = vld [vmem:[%s5919_s15 + $0x9c] sm:$0xe] }
  0x8a   : > { %5162 = vmatprep.mubr.bf16.mxu0 %v6367_v16  ;;  %5191 = vmatpush3.bf16.msra.mxu0 %v6272_v32  ;;  %v5795_v32 = vld [vmem:[%s6753_s1 + $0x150] sm:$0xff]   ;;  %v6394_v56 = vcombine.low %v2981_v12, %v2984_v44  ;;  %v3012_v44 = vsel %vm6319_vm5, %v3010_v43, %v3011_v46 }
  0x8b   : > { %5192 = vmatprep.subr.bf16.mxu0 %v5792_v39 }
  0x8e   : > { %4939 = vmatmul.mubr.bf16.gmra.mrb[20].mxu1 %v6116_v31  ;;  %v2991_v31 = vsel %vm6319_vm5, %v2989_v35, %v2990_v38  ;;  %5193 = vmatpush3.bf16.msra.mxu0 %v5792_v39  ;;  %v3017_v35 = vrot.slane %v3015_v21, 4  ;;  %v3018_v38 = vrot.slane %v2878_v49, 5  ;;  %v5819_v49 = vld [vmem:[%s5919_s15 + $0x24] sm:$0xff]  }
  0x8f   : > { %4942 = vmatprep.mubr.bf16.mxu1 %v6146_v4  ;;  %v2873_v4 = vld [vmem:[%s5919_s15 + $0x54] sm:$0xe]  ;;  %v6398_v60 = vcombine.low %v2988_v2, %v2991_v31  ;;  %5194 = vmatprep.subr.bf16.mxu0 %v5795_v32  ;;  %v5818_v2 = vld [vmem:[%s5919_s15 + $0x18] sm:$0xff]   ;;  %v3022_v31 = vrot.slane %v2880_v29, 5  ;;  %v2885_v21 = vld [vmem:[%s5919_s15 + $0x84] sm:$0xe] }
  0x90   : > { %v4535_v22 = vrot.slane %v2873_v4, 9  ;;  %v3019_v47 = vsel %vm6319_vm5, %v3017_v35, %v3018_v38  ;;  %v4537_v4 = vrot.slane %v2879_v42, 9  ;;  %v5800_v38 = vld [vmem:[%s6753_s1 + $0x50] sm:$0xff]   ;;  %v4539_v42 = vrot.slane %v2885_v21, 9  ;;  %v5805_v21 = vld [vmem:[%s6753_s1 + $0x60] sm:$0xff]  }
  0x91   : > { %5163 = vmatmul.mubr.bf16.gmra.mrb[4].mxu0 %v6394_v56  ;;  %v6458_v0 = vcombine.low %v3016_v45, %v3019_v47  ;;  %v3024_v1 = vrot.slane %v3022_v31, 4  ;;  %v2888_v29 = vld [vmem:[%s5919_s15 + $0x90] sm:$0xe]  ;;  %v2892_v45 = vld [vmem:[%s5919_s15 + $0xa0] sm:$0xf] }
  0x92   : > { %5166 = vmatprep.mubr.bf16.mxu0 %v6398_v60  ;;  %5195 = vmatpush3.bf16.msra.mxu0 %v5795_v32  ;;  %v3009_v12 = vsel %vm6319_vm5, %v4535_v22, %v3008_v50  ;;  %v3029_v32 = vrot.slane %v2883_v36, 5  ;;  %v2889_v22 = vld [vmem:[%s5919_s15 + $0x94] sm:$0xf]  ;;  %v6493_v47 = vld [vmem:[%s6753_s1 + $0x200] sm:$0xff]  }
  0x93   : > { %5196 = vmatprep.subr.bf16.mxu0 %v5797_v7  ;;  %v3026_v46 = vsel %vm6319_vm5, %v3024_v1, %v3025_v28  ;;  %v3043_v35 = vrot.slane %v2889_v22, 5  ;;  %v5822_v28 = vld [vmem:[%s5919_s15 + $0x48] sm:$0xff]  }
  0x94   : > { %v3031_v50 = vrot.slane %v3029_v32, 4  ;;  %v2894_v22 = vld [vmem:[%s5919_s15 + $0xa8] sm:$0xe] }
  0x95   : > { %v3045_v10 = vrot.slane %v3043_v35, 4 }
  0x96   : > { %4943 = vmatmul.mubr.bf16.gmra.mrb[24].mxu1 %v6151_v9  ;;  %v3002_v9 = vsel %vm6319_vm5, %v4534_v59, %v3001_v19  ;;  %5197 = vmatpush3.bf16.msra.mxu0 %v5797_v7  ;;  %v2882_v19 = vld [vmem:[%s5919_s15 + $0x78] sm:$0xe]  ;;  %v6453_v59 = vcombine.low %v3009_v12, %v3012_v44  ;;  %v3032_v7 = vrot.slane %v2884_v51, 5  ;;  %v3038_v12 = vrot.slane %v3036_v34, 4  ;;  %v5821_v51 = vld [vmem:[%s5919_s15 + $0x3c] sm:$0xff]  }
  0x97   : > { %4946 = vmatprep.mubr.bf16.mxu1 %v6181_v52  ;;  %v6425_v52 = vcombine.low %v2995_v14, %v2998_v8  ;;  %v6427_v39 = vcombine.low %v3002_v9, %v3005_v53  ;;  %5198 = vmatprep.subr.bf16.mxu0 %v5799_v27  ;;  %v4538_v3 = vrot.slane %v2882_v19, 9  ;;  %v5804_v14 = vld [vmem:[%s6753_s1 + $0x178] sm:$0xff]   ;;  %v3023_v8 = vsel %vm6319_vm5, %v4537_v4, %v3022_v31  ;;  %v5820_v9 = vld [vmem:[%s5919_s15 + $0x30] sm:$0xff]   ;;  %v2895_v19 = vld [vmem:[%s5919_s15 + $0xac] sm:$0xf] }
  0x98   : > { %v3033_v43 = vsel %vm6319_vm5, %v3031_v50, %v3032_v7  ;;  %v6485_v36 = vcombine.low %v3023_v8, %v3026_v46  ;;  %v2893_v50 = vld [vmem:[%s5919_s15 + $0xa4] sm:$0x1]  ;;  %v3057_v7 = vrot.slane %v2895_v19, 5  ;;  %v4541_v46 = vrot.slane %v2891_v5, 9  ;;  %v5808_v19 = vld [vmem:[%s6753_s1 + $0x70] sm:$0xff]  }
  0x99   : > { %5167 = vmatmul.mubr.bf16.gmra.mrb[8].mxu0 %v6425_v52  ;;  %v3030_v53 = vsel %vm6319_vm5, %v4538_v3, %v3029_v32  ;;  %v5802_v32 = vld [vmem:[%s6753_s1 + $0x58] sm:$0xff]  }
  0x9a   : > { %5170 = vmatprep.mubr.bf16.mxu0 %v6427_v39  ;;  %5199 = vmatpush3.bf16.msra.mxu0 %v5799_v27  ;;  %v2887_v27 = vld [vmem:[%s5919_s15 + $0x8c] sm:$0x1] }
  0x9b   : > { %5200 = vmatprep.subr.bf16.mxu0 %v5801_v40  ;;  %v3039_v44 = vrot.slane %v2887_v27, 5 }
  0x9d   : > { %v3040_v4 = vsel %vm6319_vm5, %v3038_v12, %v3039_v44  ;;  %v5824_v12 = vld [vmem:[%s5919_s15 + $0x60] sm:$0xff]  }
  0x9e   : > { %4947 = vmatmul.mubr.bf16.gmra.mrb[28].mxu1 %v6420_v30  ;;  %5201 = vmatpush3.bf16.msra.mxu0 %v5801_v40  ;;  %v6487_v40 = vcombine.low %v3030_v53, %v3033_v43  ;;  %v4542_v53 = vrot.slane %v2894_v22, 9  ;;  %v3059_v43 = vrot.slane %v3057_v7, 4  ;;  %v1325_v22 = vld [vmem:[%s5919_s15] sm:$0xf] }
  0x9f   : > { %4966 = vmatprep.mubr.bf16.mxu1 %v5818_v2  ;;  %5202 = vmatprep.subr.bf16.mxu0 %v5803_v57  ;;  %v4540_v2 = vrot.slane %v2888_v29, 9  ;;  %v5823_v29 = vld [vmem:[%s5919_s15 + $0x54] sm:$0xff]  }
  0xa1   : > { %5171 = vmatmul.mubr.bf16.gmra.mrb[12].mxu0 %v6453_v59  ;;  %v3044_v1 = vsel %vm6319_vm5, %v4540_v2, %v3043_v35  ;;  %v2898_v35 = vld [vmem:[%s5919_s15 + $0xb8] sm:$0xf]  ;;  %v3058_v2 = vsel %vm6319_vm5, %v4542_v53, %v3057_v7  ;;  %v1386_v53 = vshll.u32 %v1325_v22, 16 }
  0xa2   : > { %5174 = vmatprep.mubr.bf16.mxu0 %v6458_v0  ;;  %5203 = vmatpush3.bf16.msra.mxu0 %v5803_v57  ;;  %v3037_v57 = vsel %vm6319_vm5, %v4539_v42, %v3036_v34  ;;  %v3064_v44 = vrot.slane %v2898_v35, 5  ;;  %v5809_v35 = vld [vmem:[%s6753_s1 + $0x208] sm:$0xff]  }
  0xa3   : > { %5204 = vmatprep.subr.bf16.mxu0 %v5804_v14 }
  0xa6   : > { %4967 = vmatmul.mubr.bf16.vlgmr.msra.gmra.mrb[0].mxu1 %v5819_v49  ;;  %5205 = vmatpush3.bf16.msra.mxu0 %v5804_v14  ;;  %v2896_v49 = vld [vmem:[%s5919_s15 + $0xb0] sm:$0x1]  ;;  %v6519_v14 = vcombine.low %v3037_v57, %v3040_v4  ;;  %v3066_v4 = vrot.slane %v3064_v44, 4 }
  0xa7   : > { %4999 = vmatpush3.bf16.msra.mxu1 %v6346_v63  ;;  %4970 = vmatprep.mubr.bf16.mxu1 %v5820_v9  ;;  %v2890_v63 = vld [vmem:[%s5919_s15 + $0x98] sm:$0x1]  ;;  %v3053_v9 = vrot.slane %v2893_v50, 5  ;;  %v3060_v27 = vrot.slane %v2896_v49, 5  ;;  %v1326_v49 = vld [vmem:[%s5919_s15 + $0x4] sm:$0xf] }
  0xa8   : > { %5000 = vmatprep.subr.bf16.mxu1 %v5798_v55  ;;  %v3046_v31 = vrot.slane %v2890_v63, 5  ;;  %5238 = vmatprep.subr.bf16.mxu0 %v6493_v47  ;;  %v5826_v50 = vld [vmem:[%s5919_s15 + $0x78] sm:$0xff]  }
  0xa9   : > { %5175 = vmatmul.mubr.bf16.gmra.mrb[16].mxu0 %v6485_v36 }
  0xaa   : > { %5178 = vmatprep.mubr.bf16.mxu0 %v6487_v40  ;;  %v3047_v3 = vsel %vm6319_vm5, %v3045_v10, %v3046_v31  ;;  %v3061_v10 = vsel %vm6319_vm5, %v3059_v43, %v3060_v27  ;;  %v2897_v31 = vld [vmem:[%s5919_s15 + $0xb4] sm:$0xe]  ;;  %v1392_v43 = vshll.u32 %v1326_v49, 16  ;;  %v1396_v27 = vshrl.u32 %v1326_v49, 16  ;;  %v5833_v49 = vld [vmem:[%s6753_s1 + $0x108] sm:$0xff]  }
  0xab   : > { %5001 = vmatpush3.bf16.msra.mxu1 %v5798_v55  ;;  %v3050_v55 = vrot.slane %v2892_v45, 5  ;;  %v6521_v8 = vcombine.low %v3044_v1, %v3047_v3  ;;  %v2899_v45 = vld [vmem:[%s5919_s15 + $0xbc] sm:$0x1]  ;;  %v4543_v57 = vrot.slane %v2897_v31, 9  ;;  %v5825_v1 = vld [vmem:[%s5919_s15 + $0x6c] sm:$0xff]  }
  0xac   : > { %5002 = vmatprep.subr.bf16.mxu1 %v5800_v38 }
  0xad   : > { %v3052_v34 = vrot.slane %v3050_v55, 4  ;;  %v3051_v63 = vsel %vm6319_vm5, %v4541_v46, %v3050_v55  ;;  %v5811_v55 = vld [vmem:[%s6753_s1 + $0x78] sm:$0xff]   ;;  %v3065_v3 = vsel %vm6319_vm5, %v4543_v57, %v3064_v44  ;;  %v5828_v46 = vld [vmem:[%s5919_s15 + $0x84] sm:$0xff]  }
  0xae   : > { %4971 = vmatmul.mubr.bf16.gmra.mrb[4].mxu1 %v5821_v51  ;;  %v6546_v51 = vcombine.low %v3058_v2, %v3061_v10  ;;  %v5830_v44 = vld [vmem:[%s5919_s15 + $0x9c] sm:$0xff]   ;;  %v5812_v2 = vld [vmem:[%s6753_s1 + $0x210] sm:$0xff]  }
  0xaf   : > { %4974 = vmatprep.mubr.bf16.mxu1 %v5822_v28  ;;  %5003 = vmatpush3.bf16.msra.mxu1 %v5800_v38  ;;  %v5806_v38 = vld [vmem:[%s6753_s1 + $0x68] sm:$0xff]   ;;  %v3054_v42 = vsel %vm6319_vm5, %v3052_v34, %v3053_v9  ;;  %v3067_v28 = vrot.slane %v2899_v45, 5  ;;  %v5829_v34 = vld [vmem:[%s5919_s15 + $0x90] sm:$0xff]   ;;  %v1383_v9 = vshrl.u32 %v1325_v22, 16  ;;  %v5817_v22 = vld [vmem:[%s6753_s1 + $0x238] sm:$0xff]  }
  0xb0   : > { %5004 = vmatprep.subr.bf16.mxu1 %v5802_v32 }
  0xb1   : > { %5179 = vmatmul.mubr.bf16.gmra.mrb[20].mxu0 %v6519_v14  ;;  %v3068_v5 = vsel %vm6319_vm5, %v3066_v4, %v3067_v28  ;;  %v5832_v28 = vld [vmem:[%s5919_s15 + $0xb4] sm:$0xff]  }
  0xb2   : > { %5182 = vmatprep.mubr.bf16.mxu0 %v6521_v8  ;;  %v6559_v7 = vcombine.low %v3065_v3, %v3068_v5  ;;  %v5814_v3 = vld [vmem:[%s6753_s1 + $0x220] sm:$0xff]   ;;  %v5810_v5 = vld [vmem:[%s5919_s15 + $0xcc] sm:$0xff]  }
  0xb3   : > { %5005 = vmatpush3.bf16.msra.mxu1 %v5802_v32  ;;  %v6544_v32 = vcombine.low %v3051_v63, %v3054_v42  ;;  %v1394_v63 = vrot.slane %v1392_v43, 5  ;;  %v1398_v42 = vrot.slane %v1396_v27, 4 }
  0xb4   : > { %5006 = vmatprep.subr.bf16.mxu1 %v5805_v21 }
  0xb5   : > { %v1399_v31 = vor.u32 %v1398_v42, %v1394_v63 }
  0xb6   : > { %4975 = vmatmul.mubr.bf16.gmra.mrb[8].mxu1 %v5823_v29  ;;  %v1388_v29 = vrot.slane %v1386_v53, 5 }
  0xb7   : > { %4978 = vmatprep.mubr.bf16.mxu1 %v5824_v12  ;;  %5007 = vmatpush3.bf16.msra.mxu1 %v5805_v21  ;;  %v6566_v21 = vld [vmem:[%s6753_s1 + $0x100] sm:$0xff]   ;;  %v1327_v12 = vld [vmem:[%s5919_s15 + $0x8] sm:$0x1]  ;;  %v1400_v57 = vrot.slane %v1399_v31, 4 }
  0xb8   : > { %5008 = vmatprep.subr.bf16.mxu1 %v5806_v38  ;;  %v1402_v45 = vshll.u32 %v1327_v12, 16 }
  0xb9   : > { %5183 = vmatmul.mubr.bf16.gmra.mrb[24].mxu0 %v6544_v32 }
  0xba   : > { %5186 = vmatprep.mubr.bf16.mxu0 %v6546_v51  ;;  %v1404_v4 = vrot.slane %v1402_v45, 5 }
  0xbb   : > { %5009 = vmatpush3.bf16.msra.mxu1 %v5806_v38  ;;  %v1385_v38 = vrot.slane %v1383_v9, 4  ;;  %v5837_v9 = vld [vmem:[%s6753_s1 + $0x128] sm:$0xff]  }
  0xbc   : > { %5010 = vmatprep.subr.bf16.mxu1 %v5808_v19 }
  0xbd   : > { %v1389_v10 = vor.u32 %v1388_v29, %v1385_v38  ;;  %v5839_v38 = vld [vmem:[%s6753_s1 + $0x138] sm:$0xff]  }
  0xbe   : > { %4979 = vmatmul.mubr.bf16.gmra.mrb[12].mxu1 %v5825_v1  ;;  %v1405_v1 = vsel %vm5942_vm2, %v1400_v57, %v1404_v4 }
  0xbf   : > { %4982 = vmatprep.mubr.bf16.mxu1 %v5826_v50  ;;  %5011 = vmatpush3.bf16.msra.mxu1 %v5808_v19  ;;  %v1390_v19 = vrot.slane %v1389_v10, 4 }
  0xc0   : > { %5012 = vmatprep.subr.bf16.mxu1 %v5811_v55 }
  0xc1   : > { %5187 = vmatmul.mubr.bf16.gmra.mrb[28].mxu0 %v6559_v7 }
  0xc2   : > { %5206 = vmatprep.mubr.bf16.mxu0 %v6365_v23  ;;  %v5831_v23 = vld [vmem:[%s5919_s15 + $0xa8] sm:$0xff]  }
  0xc3   : > { %5013 = vmatpush3.bf16.msra.mxu1 %v5811_v55  ;;  %v1395_v55 = vsel %vm5942_vm2, %v1390_v19, %v1394_v63 }
  0xc4   : > { %5286 = vmatprep.subr.bf16.mxu1 %v6566_v21  ;;  %v4454_v50 = vcombine.low %v1395_v55, %v1405_v1 }
  0xc6   : > { %4983 = vmatmul.mubr.bf16.gmra.mrb[16].mxu1 %v5828_v46  ;;  %v5836_v46 = vld [vmem:[%s6753_s1 + $0x120] sm:$0xff]  }
  0xc7   : > { %4986 = vmatprep.mubr.bf16.mxu1 %v5829_v34  ;;  %v2902_v34 = vld [vmem:[%s5919_s15 + $0xc8] sm:$0x1] }
  0xc8   : > { %v3463_v27 = vrot.slane %v2902_v34, 5 }
  0xc9   : > { %5207 = vmatmul.mubr.bf16.vlgmr.msra.gmra.mrb[0].mxu0 %v6367_v16 }
  0xca   : > { %5210 = vmatprep.mubr.bf16.mxu0 %v6394_v56  ;;  %5239 = vmatpush3.bf16.msra.mxu0 %v6493_v47  ;;  %v5813_v47 = vld [vmem:[%s6753_s1 + $0x218] sm:$0xff]  }
  0xcb   : > { %5240 = vmatprep.subr.bf16.mxu0 %v5809_v35 }
  0xce   : > { %4987 = vmatmul.mubr.bf16.gmra.mrb[20].mxu1 %v5830_v44  ;;  %5241 = vmatpush3.bf16.msra.mxu0 %v5809_v35 }
  0xcf   : > { %4990 = vmatprep.mubr.bf16.mxu1 %v5831_v23  ;;  %5242 = vmatprep.subr.bf16.mxu0 %v5812_v2 }
  0xd1   : > { %5211 = vmatmul.mubr.bf16.gmra.mrb[4].mxu0 %v6398_v60 }
  0xd2   : > { %5214 = vmatprep.mubr.bf16.mxu0 %v6425_v52  ;;  %5243 = vmatpush3.bf16.msra.mxu0 %v5812_v2 }
  0xd3   : > { %5244 = vmatprep.subr.bf16.mxu0 %v5813_v47 }
  0xd6   : > { %4991 = vmatmul.mubr.bf16.gmra.mrb[24].mxu1 %v5832_v28  ;;  %5245 = vmatpush3.bf16.msra.mxu0 %v5813_v47 }
  0xd7   : > { %4994 = vmatprep.mubr.bf16.mxu1 %v6420_v30  ;;  %5246 = vmatprep.subr.bf16.mxu0 %v5814_v3  ;;  %v5815_v30 = vld [vmem:[%s6753_s1 + $0x228] sm:$0xff]  }
  0xd9   : > { %5215 = vmatmul.mubr.bf16.gmra.mrb[8].mxu0 %v6427_v39 }
  0xda   : > { %5218 = vmatprep.mubr.bf16.mxu0 %v6453_v59  ;;  %5247 = vmatpush3.bf16.msra.mxu0 %v5814_v3 }
  0xdb   : > { %5248 = vmatprep.subr.bf16.mxu0 %v5815_v30 }
  0xde   : > { %4995 = vmatmul.mubr.bf16.gmra.mrb[28].mxu1 %v5810_v5  ;;  %5249 = vmatpush3.bf16.msra.mxu0 %v5815_v30 }
  0xdf   : > { %5014 = vmatprep.mubr.bf16.mxu1 %v4454_v50  ;;  %5250 = vmatprep.subr.bf16.mxu0 %v5816_v33 }
  0xe1   : > { %5219 = vmatmul.mubr.bf16.gmra.mrb[12].mxu0 %v6458_v0 }
  0xe2   : > { %5222 = vmatprep.mubr.bf16.mxu0 %v6485_v36  ;;  %5251 = vmatpush3.bf16.msra.mxu0 %v5816_v33 }
  0xe3   : > { %5252 = vmatprep.subr.bf16.mxu0 %v5817_v22 }
  0xe6   : > { %5015 = vmatmul.mubr.bf16.vlgmr.msra.gmra.mrb[0].mxu1 %v5960_v54  ;;  %v5834_v54 = vld [vmem:[%s6753_s1 + $0x110] sm:$0xff]   ;;  %5253 = vmatpush3.bf16.msra.mxu0 %v5817_v22 }
  0xe7   : > { %5294 = vmatpush3.bf16.msra.mxu1 %v6566_v21  ;;  %5018 = vmatprep.mubr.bf16.mxu1 %v5983_v15  ;;  %v5835_v15 = vld [vmem:[%s6753_s1 + $0x118] sm:$0xff]   ;;  %v2901_v21 = vld [vmem:[%s5919_s15 + $0xc4] sm:$0xf] }
  0xe8   : > { %5287 = vmatprep.subr.bf16.mxu1 %v5833_v49 }
  0xe9   : > { %5223 = vmatmul.mubr.bf16.gmra.mrb[16].mxu0 %v6487_v40 }
  0xea   : > { %5226 = vmatprep.mubr.bf16.mxu0 %v6519_v14 }
  0xeb   : > { %5295 = vmatpush3.bf16.msra.mxu1 %v5833_v49 }
  0xec   : > { %5288 = vmatprep.subr.bf16.mxu1 %v5834_v54 }
  0xee   : > { %5019 = vmatmul.mubr.bf16.gmra.mrb[4].mxu1 %v6002_v37  ;;  %v3460_v37 = vrot.slane %v2901_v21, 5 }
  0xef   : > { %5022 = vmatprep.mubr.bf16.mxu1 %v6020_v61  ;;  %5296 = vmatpush3.bf16.msra.mxu1 %v5834_v54  ;;  %v2900_v61 = vld [vmem:[%s5919_s15 + $0xc0] sm:$0xe] }
  0xf0   : > { %5289 = vmatprep.subr.bf16.mxu1 %v5835_v15  ;;  %v4584_v53 = vrot.slane %v2900_v61, 9  ;;  %v3462_v43 = vrot.slane %v3460_v37, 4 }
  0xf1   : > { %5227 = vmatmul.mubr.bf16.gmra.mrb[20].mxu0 %v6521_v8 }
  0xf2   : > { %5230 = vmatprep.mubr.bf16.mxu0 %v6544_v32  ;;  %v3464_v35 = vsel %vm6319_vm5, %v3462_v43, %v3463_v27 }
  0xf3   : > { %5297 = vmatpush3.bf16.msra.mxu1 %v5835_v15 }
  0xf4   : > { %5290 = vmatprep.subr.bf16.mxu1 %v5836_v46 }
  0xf6   : > { %5023 = vmatmul.mubr.bf16.gmra.mrb[8].mxu1 %v6041_v25  ;;  %v5838_v25 = vld [vmem:[%s6753_s1 + $0x130] sm:$0xff]  }
  0xf7   : > { %5026 = vmatprep.mubr.bf16.mxu1 %v6060_v48  ;;  %5298 = vmatpush3.bf16.msra.mxu1 %v5836_v46  ;;  %v3461_v48 = vsel %vm6319_vm5, %v4584_v53, %v3460_v37 }
  0xf8   : > { %5291 = vmatprep.subr.bf16.mxu1 %v5837_v9  ;;  %v4601_v29 = vcombine.low %v3461_v48, %v3464_v35 }
  0xf9   : > { %5231 = vmatmul.mubr.bf16.gmra.mrb[24].mxu0 %v6546_v51 }
  0xfa   : > { %5234 = vmatprep.mubr.bf16.mxu0 %v6559_v7 }
  0xfb   : > { %5299 = vmatpush3.bf16.msra.mxu1 %v5837_v9 }
  0xfc   : > { %5292 = vmatprep.subr.bf16.mxu1 %v5838_v25 }
  0xfe   : > { %5027 = vmatmul.mubr.bf16.gmra.mrb[12].mxu1 %v6080_v11  ;;  %v2904_v11 = vld [vmem:[%s5919_s15 + $0xd0] sm:$0xf] }
  0xff   : > { %5030 = vmatprep.mubr.bf16.mxu1 %v6100_v26  ;;  %5300 = vmatpush3.bf16.msra.mxu1 %v5838_v25  ;;  %v3796_v26 = vrot.slane %v2904_v11, 5 }
 0x100   : > { %5293 = vmatprep.subr.bf16.mxu1 %v5839_v38 }
 0x101   : > { %5235 = vmatmul.mubr.bf16.gmra.mrb[28].mxu0 %v4601_v29 }
 0x102   : > { %5254 = vmatprep.mubr.bf16.mxu0 %v6367_v16  ;;  %v3798_v16 = vrot.slane %v3796_v26, 4 }
 0x103   : > { %5301 = vmatpush3.bf16.msra.mxu1 %v5839_v38 }
 0x106   : > { %5031 = vmatmul.mubr.bf16.gmra.mrb[16].mxu1 %v6187_v18 }
 0x107   : > { %5034 = vmatprep.mubr.bf16.mxu1 %v6189_v20 }
 0x109   : > { %5255 = vmatmul.mubr.bf16.vlgmr.msra.gmra.mrb[0].mxu0 %v6394_v56 }
 0x10a   : > { %5258 = vmatprep.mubr.bf16.mxu0 %v6398_v60 }
 0x10e   : > { %5035 = vmatmul.mubr.bf16.gmra.mrb[20].mxu1 %v6244_v58 }
 0x10f   : > { %5038 = vmatprep.mubr.bf16.mxu1 %v6249_v62 }
 0x111   : > { %5259 = vmatmul.mubr.bf16.gmra.mrb[4].mxu0 %v6425_v52 }
 0x112   : > { %5262 = vmatprep.mubr.bf16.mxu0 %v6427_v39 }
 0x116   : > { %5039 = vmatmul.mubr.bf16.gmra.mrb[24].mxu1 %v6282_v41 }
 0x117   : > { %5042 = vmatprep.mubr.bf16.mxu1 %v6288_v13 }
 0x119   : > { %5263 = vmatmul.mubr.bf16.gmra.mrb[8].mxu0 %v6453_v59 }
 0x11a   : > { %5266 = vmatprep.mubr.bf16.mxu0 %v6458_v0 }
 0x11e   : > { %5043 = vmatmul.mubr.bf16.gmra.mrb[28].mxu1 %v6314_v17 }
 0x11f   : > { %5078 = vmatprep.mubr.bf16.mxu1 %v6187_v18  ;;  %v2903_v18 = vld [vmem:[%s5919_s15 + $0xcc] sm:$0xe] }
 0x121   : > { %5267 = vmatmul.mubr.bf16.gmra.mrb[12].mxu0 %v6485_v36 }
 0x122   : > { %5270 = vmatprep.mubr.bf16.mxu0 %v6487_v40 }
 0x126   : > { %5079 = vmatmul.mubr.bf16.vlgmr.msra.gmra.mrb[16].mxu1 %v6189_v20  ;;  %v2905_v20 = vld [vmem:[%s5919_s15 + $0xd4] sm:$0x1]  ;;  %s4361_s15 = sshll.u32 %s5874_s13, 5  ;;  %s4363_s13 = sshll.u32 %s5898_s26, 1 }
 0x127   : > { %5082 = vmatprep.mubr.bf16.mxu1 %v6244_v58  ;;  %v4610_v58 = vrot.slane %v2903_v18, 9  ;;  %v3799_v56 = vrot.slane %v2905_v20, 5  ;;  %p174_p4 = scmp.lt.s32.totalorder %s4361_s15, 63  ;;  %s182_s22 = scalar_lea.vmem %s6755_s3, %s4363_s13 }
 0x129   : > { %5271 = vmatmul.mubr.bf16.gmra.mrb[16].mxu0 %v6519_v14  ;;  %s6761_s15 = smov (!%p174_p4, %s4361_s15), 63 }
 0x12a   : > { %5274 = vmatprep.mubr.bf16.mxu0 %v6521_v8  ;;  %s4362_s16 = sshll.u32 %s6761_s15, 3 }
 0x12b   : > { %s6706_s19 = scalar_lea.vmem %s6754_s2, %s4362_s16 }
 0x12e   : > { %5083 = vmatmul.mubr.bf16.gmra.mrb[20].mxu1 %v6249_v62  ;;  %v3797_v62 = vsel %vm6319_vm5, %v4610_v58, %v3796_v26 }
 0x12f   : > { %5086 = vmatprep.mubr.bf16.mxu1 %v6282_v41  ;;  %v3800_v41 = vsel %vm6319_vm5, %v3798_v16, %v3799_v56 }
 0x131   : > { %5275 = vmatmul.mubr.bf16.gmra.mrb[20].mxu0 %v6544_v32 }
 0x132   : > { %5278 = vmatprep.mubr.bf16.mxu0 %v6546_v51 }
 0x136   : > { %5087 = vmatmul.mubr.bf16.gmra.mrb[24].mxu1 %v6288_v13  ;;  %v4627_v13 = vcombine.low %v3797_v62, %v3800_v41 }
 0x137   : > { %5090 = vmatprep.mubr.bf16.mxu1 %v6314_v17 }
 0x139   : > { %5279 = vmatmul.mubr.bf16.gmra.mrb[24].mxu0 %v6559_v7 }
 0x13a   : > { %5282 = vmatprep.mubr.bf16.mxu0 %v4601_v29 }
 0x13e   : > { %5091 = vmatmul.mubr.bf16.gmra.mrb[28].mxu1 %v6317_v6 }
 0x141   : > { %5283 = vmatmul.mubr.bf16.gmra.mrb[28].mxu0 %v4627_v13 }
 0x1b9   : > { %v5016_v17 = vpop.f32.mrb[0].mxu1 }
 0x1ba   : > { %v1961_v60 = vpop.f32.mrb[1].mxu1 }
 0x1bb   : > { %v5017_v52 = vpop.f32.mrb[2].mxu1 }
 0x1bc   : > { %v1964_v39 = vpop.f32.mrb[3].mxu1 }
 0x1c1   : > { %v5020_v59 = vpop.f32.mrb[4].mxu1 }
 0x1c2   : > { %v1977_v0 = vpop.f32.mrb[5].mxu1 }
 0x1c3   : > { %v5021_v36 = vpop.f32.mrb[6].mxu1 }
 0x1c4   : > { %v1980_v40 = vpop.f32.mrb[7].mxu1 }
 0x1c9   : > { %v5024_v14 = vpop.f32.mrb[8].mxu1 }
 0x1ca   : > { %v1993_v6 = vpop.f32.mrb[9].mxu1 }
 0x1cb   : > { %v5025_v8 = vpop.f32.mrb[10].mxu1 }
 0x1cc   : > { %v6692_v32 = vpop.f32.mrb[11].mxu1 }
 0x1d1   : > { %v6694_v51 = vpop.f32.mrb[12].mxu1 }
 0x1d2   : > { %v6696_v24 = vpop.f32.mrb[13].mxu1 }
 0x1d3   : > { %v6699_v7 = vpop.f32.mrb[14].mxu1 }
 0x1d4   : > { %v6701_v63 = vpop.f32.mrb[15].mxu1 }
 0x1dc   : > { %v5256_v42 = vpop.f32.mrb[0].mxu0 }
 0x1dd   : > { %v5307_v12 = vadd.f32 %v5256_v42, %v5016_v17  ;;  %v3936_v44 = vpop.f32.mrb[1].mxu0 }
 0x1de   : > { %v5313_v23 = vadd.f32 %v3936_v44, %v1961_v60  ;;  %v5257_v2 = vpop.f32.mrb[2].mxu0 }
 0x1df   : > { %4097 = vst [vmem:[%s6706_s19 + $0x10] sm:$0xff] %v5307_v12  ;;  %v5319_v10 = vadd.f32 %v5257_v2, %v5017_v52  ;;  %v3939_v31 = vpop.f32.mrb[3].mxu0  ;;  %v4198_v47 = vmul.f32 %v5307_v12, %v5307_v12 }
 0x1e0   : > { %4095 = vst [vmem:[%s6706_s19] sm:$0xff] %v5313_v23  ;;  %v5325_v45 = vadd.f32 %v3939_v31, %v1964_v39  ;;  %v4196_v19 = vmul.f32 %v5313_v23, %v5313_v23 }
 0x1e1   : > { %4098 = vst [vmem:[%s6706_s19 + $0x18] sm:$0xff] %v5319_v10  ;;  %v4199_v50 = vmul.f32 %v5319_v10, %v5319_v10 }
 0x1e2   : > { %4096 = vst [vmem:[%s6706_s19 + $0x8] sm:$0xff] %v5325_v45  ;;  %v4159_v57 = vadd.f32 %v5325_v45, %v5313_v23  ;;  %v4197_v4 = vmul.f32 %v5325_v45, %v5325_v45 }
 0x1e4   : > { %v4160_v28 = vadd.f32 %v5307_v12, %v4159_v57  ;;  %v4228_v55 = vadd.f32 %v4197_v4, %v4196_v19  ;;  %v5260_v1 = vpop.f32.mrb[4].mxu0 }
 0x1e5   : > { %v5331_v3 = vadd.f32 %v5260_v1, %v5020_v59  ;;  %v3952_v5 = vpop.f32.mrb[5].mxu0 }
 0x1e6   : > { %v4229_v30 = vadd.f32 %v4228_v55, %v4198_v47  ;;  %v5337_v33 = vadd.f32 %v3952_v5, %v1977_v0  ;;  %v4161_v22 = vadd.f32 %v5319_v10, %v4160_v28  ;;  %v5261_v49 = vpop.f32.mrb[6].mxu0 }
 0x1e7   : > { %4101 = vst [vmem:[%s6706_s19 + $0x30] sm:$0xff] %v5331_v3  ;;  %v5343_v54 = vadd.f32 %v5261_v49, %v5021_v36  ;;  %v3955_v15 = vpop.f32.mrb[7].mxu0  ;;  %v4202_v43 = vmul.f32 %v5331_v3, %v5331_v3 }
 0x1e8   : > { %4099 = vst [vmem:[%s6706_s19 + $0x20] sm:$0xff] %v5337_v33  ;;  %v4162_v21 = vadd.f32 %v5337_v33, %v4161_v22  ;;  %v4200_v46 = vmul.f32 %v5337_v33, %v5337_v33  ;;  %v4230_v37 = vadd.f32 %v4229_v30, %v4199_v50  ;;  %v5349_v61 = vadd.f32 %v3955_v15, %v1980_v40 }
 0x1e9   : > { %4102 = vst [vmem:[%s6706_s19 + $0x38] sm:$0xff] %v5343_v54  ;;  %v4203_v29 = vmul.f32 %v5343_v54, %v5343_v54 }
 0x1ea   : > { %v4231_v34 = vadd.f32 %v4230_v37, %v4200_v46  ;;  %4100 = vst [vmem:[%s6706_s19 + $0x28] sm:$0xff] %v5349_v61  ;;  %v4163_v9 = vadd.f32 %v5349_v61, %v4162_v21  ;;  %v4201_v53 = vmul.f32 %v5349_v61, %v5349_v61 }
 0x1ec   : > { %v4164_v27 = vadd.f32 %v5331_v3, %v4163_v9  ;;  %v4232_v25 = vadd.f32 %v4231_v34, %v4201_v53  ;;  %v5264_v48 = vpop.f32.mrb[8].mxu0 }
 0x1ed   : > { %v5355_v35 = vadd.f32 %v5264_v48, %v5024_v14  ;;  %v3968_v38 = vpop.f32.mrb[9].mxu0 }
 0x1ee   : > { %v4233_v11 = vadd.f32 %v4232_v25, %v4202_v43  ;;  %v5361_v26 = vadd.f32 %v3968_v38, %v1993_v6  ;;  %v4165_v18 = vadd.f32 %v5343_v54, %v4164_v27  ;;  %v5265_v20 = vpop.f32.mrb[10].mxu0 }
 0x1ef   : > { %4105 = vst [vmem:[%s6706_s19 + $0x50] sm:$0xff] %v5355_v35  ;;  %v5367_v58 = vadd.f32 %v5265_v20, %v5025_v8  ;;  %v3971_v16 = vpop.f32.mrb[11].mxu0  ;;  %v4206_v39 = vmul.f32 %v5355_v35, %v5355_v35 }
 0x1f0   : > { %4103 = vst [vmem:[%s6706_s19 + $0x40] sm:$0xff] %v5361_v26  ;;  %v4166_v56 = vadd.f32 %v5361_v26, %v4165_v18  ;;  %v4204_v62 = vmul.f32 %v5361_v26, %v5361_v26  ;;  %v4234_v41 = vadd.f32 %v4233_v11, %v4203_v29  ;;  %v5373_v13 = vadd.f32 %v3971_v16, %v6692_v32 }
 0x1f1   : > { %4106 = vst [vmem:[%s6706_s19 + $0x58] sm:$0xff] %v5367_v58  ;;  %v4207_v42 = vmul.f32 %v5367_v58, %v5367_v58 }
 0x1f2   : > { %v4235_v17 = vadd.f32 %v4234_v41, %v4204_v62  ;;  %4104 = vst [vmem:[%s6706_s19 + $0x48] sm:$0xff] %v5373_v13  ;;  %v4167_v60 = vadd.f32 %v5373_v13, %v4166_v56  ;;  %v4205_v52 = vmul.f32 %v5373_v13, %v5373_v13 }
 0x1f4   : > { %v4168_v59 = vadd.f32 %v5355_v35, %v4167_v60  ;;  %v4236_v0 = vadd.f32 %v4235_v17, %v4205_v52  ;;  %v5268_v36 = vpop.f32.mrb[12].mxu0 }
 0x1f5   : > { %v5379_v14 = vadd.f32 %v5268_v36, %v6694_v51  ;;  %v3984_v6 = vpop.f32.mrb[13].mxu0 }
 0x1f6   : > { %v4237_v12 = vadd.f32 %v4236_v0, %v4206_v39  ;;  %v5385_v32 = vadd.f32 %v3984_v6, %v6696_v24  ;;  %v4169_v44 = vadd.f32 %v5367_v58, %v4168_v59  ;;  %v5269_v23 = vpop.f32.mrb[14].mxu0 }
 0x1f7   : > { %4109 = vst [vmem:[%s6706_s19 + $0x70] sm:$0xff] %v5379_v14  ;;  %v5391_v10 = vadd.f32 %v5269_v23, %v6699_v7  ;;  %v3987_v31 = vpop.f32.mrb[15].mxu0  ;;  %v4210_v55 = vmul.f32 %v5379_v14, %v5379_v14 }
 0x1f8   : > { %4107 = vst [vmem:[%s6706_s19 + $0x60] sm:$0xff] %v5385_v32  ;;  %v4170_v19 = vadd.f32 %v5385_v32, %v4169_v44  ;;  %v4208_v57 = vmul.f32 %v5385_v32, %v5385_v32  ;;  %v4238_v51 = vadd.f32 %v4237_v12, %v4207_v42  ;;  %v5397_v4 = vadd.f32 %v3987_v31, %v6701_v63 }
 0x1f9   : > { %v5080_v40 = vpop.f32.mrb[16].mxu1  ;;  %4110 = vst [vmem:[%s6706_s19 + $0x78] sm:$0xff] %v5391_v10  ;;  %v4211_v22 = vmul.f32 %v5391_v10, %v5391_v10 }
 0x1fa   : > { %v2375_v8 = vpop.f32.mrb[17].mxu1  ;;  %v4239_v47 = vadd.f32 %v4238_v51, %v4208_v57  ;;  %4108 = vst [vmem:[%s6706_s19 + $0x68] sm:$0xff] %v5397_v4  ;;  %v4171_v28 = vadd.f32 %v5397_v4, %v4170_v19  ;;  %v4209_v24 = vmul.f32 %v5397_v4, %v5397_v4 }
 0x1fb   : > { %v5081_v2 = vpop.f32.mrb[18].mxu1 }
 0x1fc   : > { %v2378_v45 = vpop.f32.mrb[19].mxu1  ;;  %v4172_v1 = vadd.f32 %v5379_v14, %v4171_v28  ;;  %v4240_v3 = vadd.f32 %v4239_v47, %v4209_v24  ;;  %v5272_v5 = vpop.f32.mrb[16].mxu0 }
 0x1fd   : > { %v5403_v50 = vadd.f32 %v5272_v5, %v5080_v40  ;;  %v4000_v30 = vpop.f32.mrb[17].mxu0 }
 0x1fe   : > { %v4241_v49 = vadd.f32 %v4240_v3, %v4210_v55  ;;  %v5409_v63 = vadd.f32 %v4000_v30, %v2375_v8  ;;  %v4173_v54 = vadd.f32 %v5391_v10, %v4172_v1  ;;  %v5273_v15 = vpop.f32.mrb[18].mxu0 }
 0x1ff   : > { %4113 = vst [vmem:[%s6706_s19 + $0x90] sm:$0xff] %v5403_v50  ;;  %v5415_v46 = vadd.f32 %v5273_v15, %v5081_v2  ;;  %v4003_v37 = vpop.f32.mrb[19].mxu0  ;;  %v4214_v35 = vmul.f32 %v5403_v50, %v5403_v50 }
 0x200   : > { %4111 = vst [vmem:[%s6706_s19 + $0x80] sm:$0xff] %v5409_v63  ;;  %v4174_v34 = vadd.f32 %v5409_v63, %v4173_v54  ;;  %v4212_v9 = vmul.f32 %v5409_v63, %v5409_v63  ;;  %v4242_v53 = vadd.f32 %v4241_v49, %v4211_v22  ;;  %v5421_v43 = vadd.f32 %v4003_v37, %v2378_v45 }
 0x201   : > { %v5084_v7 = vpop.f32.mrb[20].mxu1  ;;  %4114 = vst [vmem:[%s6706_s19 + $0x98] sm:$0xff] %v5415_v46  ;;  %v4215_v16 = vmul.f32 %v5415_v46, %v5415_v46 }
 0x202   : > { %v2391_v33 = vpop.f32.mrb[21].mxu1  ;;  %v4243_v27 = vadd.f32 %v4242_v53, %v4212_v9  ;;  %4112 = vst [vmem:[%s6706_s19 + $0x88] sm:$0xff] %v5421_v43  ;;  %v4175_v25 = vadd.f32 %v5421_v43, %v4174_v34  ;;  %v4213_v48 = vmul.f32 %v5421_v43, %v5421_v43 }
 0x203   : > { %v5085_v21 = vpop.f32.mrb[22].mxu1 }
 0x204   : > { %v2394_v61 = vpop.f32.mrb[23].mxu1  ;;  %v4176_v38 = vadd.f32 %v5403_v50, %v4175_v25  ;;  %v4244_v29 = vadd.f32 %v4243_v27, %v4213_v48  ;;  %v5276_v11 = vpop.f32.mrb[20].mxu0 }
 0x205   : > { %v5427_v18 = vadd.f32 %v5276_v11, %v5084_v7  ;;  %v4016_v20 = vpop.f32.mrb[21].mxu0 }
 0x206   : > { %v4245_v56 = vadd.f32 %v4244_v29, %v4214_v35  ;;  %v5433_v62 = vadd.f32 %v4016_v20, %v2391_v33  ;;  %v4177_v41 = vadd.f32 %v5415_v46, %v4176_v38  ;;  %v5277_v13 = vpop.f32.mrb[22].mxu0 }
 0x207   : > { %4117 = vst [vmem:[%s6706_s19 + $0xb0] sm:$0xff] %v5427_v18  ;;  %v5439_v60 = vadd.f32 %v5277_v13, %v5085_v21  ;;  %v4019_v52 = vpop.f32.mrb[23].mxu0  ;;  %v4218_v42 = vmul.f32 %v5427_v18, %v5427_v18 }
 0x208   : > { %4115 = vst [vmem:[%s6706_s19 + $0xa0] sm:$0xff] %v5433_v62  ;;  %v4178_v59 = vadd.f32 %v5433_v62, %v4177_v41  ;;  %v4216_v0 = vmul.f32 %v5433_v62, %v5433_v62  ;;  %v4246_v36 = vadd.f32 %v4245_v56, %v4215_v16  ;;  %v5445_v40 = vadd.f32 %v4019_v52, %v2394_v61 }
 0x209   : > { %v5088_v26 = vpop.f32.mrb[24].mxu1  ;;  %4118 = vst [vmem:[%s6706_s19 + $0xb8] sm:$0xff] %v5439_v60  ;;  %v4219_v45 = vmul.f32 %v5439_v60, %v5439_v60 }
 0x20a   : > { %v2407_v58 = vpop.f32.mrb[25].mxu1  ;;  %v4247_v14 = vadd.f32 %v4246_v36, %v4216_v0  ;;  %4116 = vst [vmem:[%s6706_s19 + $0xa8] sm:$0xff] %v5445_v40  ;;  %v4179_v6 = vadd.f32 %v5445_v40, %v4178_v59  ;;  %v4217_v8 = vmul.f32 %v5445_v40, %v5445_v40 }
 0x20b   : > { %v5089_v17 = vpop.f32.mrb[26].mxu1 }
 0x20c   : > { %v2410_v39 = vpop.f32.mrb[27].mxu1  ;;  %v4180_v12 = vadd.f32 %v5427_v18, %v4179_v6  ;;  %v4248_v32 = vadd.f32 %v4247_v14, %v4217_v8  ;;  %v5280_v44 = vpop.f32.mrb[24].mxu0 }
 0x20d   : > { %v5451_v2 = vadd.f32 %v5280_v44, %v5088_v26  ;;  %v4032_v10 = vpop.f32.mrb[25].mxu0 }
 0x20e   : > { %v4249_v19 = vadd.f32 %v4248_v32, %v4218_v42  ;;  %v5457_v57 = vadd.f32 %v4032_v10, %v2407_v58  ;;  %v4181_v51 = vadd.f32 %v5439_v60, %v4180_v12  ;;  %v5281_v4 = vpop.f32.mrb[26].mxu0 }
 0x20f   : > { %4121 = vst [vmem:[%s6706_s19 + $0xd0] sm:$0xff] %v5451_v2  ;;  %v5463_v28 = vadd.f32 %v5281_v4, %v5089_v17  ;;  %v4035_v24 = vpop.f32.mrb[27].mxu0  ;;  %v4222_v22 = vmul.f32 %v5451_v2, %v5451_v2 }
 0x210   : > { %4119 = vst [vmem:[%s6706_s19 + $0xc0] sm:$0xff] %v5457_v57  ;;  %v4182_v1 = vadd.f32 %v5457_v57, %v4181_v51  ;;  %v4220_v3 = vmul.f32 %v5457_v57, %v5457_v57  ;;  %v4250_v5 = vadd.f32 %v4249_v19, %v4219_v45  ;;  %v5469_v7 = vadd.f32 %v4035_v24, %v2410_v39 }
 0x211   : > { %v5092_v23 = vpop.f32.mrb[28].mxu1  ;;  %4122 = vst [vmem:[%s6706_s19 + $0xd8] sm:$0xff] %v5463_v28  ;;  %v4223_v46 = vmul.f32 %v5463_v28, %v5463_v28 }
 0x212   : > { %v2423_v31 = vpop.f32.mrb[29].mxu1  ;;  %v4251_v50 = vadd.f32 %v4250_v5, %v4220_v3  ;;  %4120 = vst [vmem:[%s6706_s19 + $0xc8] sm:$0xff] %v5469_v7  ;;  %v4183_v30 = vadd.f32 %v5469_v7, %v4182_v1  ;;  %v4221_v33 = vmul.f32 %v5469_v7, %v5469_v7 }
 0x213   : > { %v5093_v47 = vpop.f32.mrb[30].mxu1 }
 0x214   : > { %v2426_v55 = vpop.f32.mrb[31].mxu1  ;;  %v4184_v49 = vadd.f32 %v5451_v2, %v4183_v30  ;;  %v4252_v63 = vadd.f32 %v4251_v50, %v4221_v33  ;;  %v5284_v54 = vpop.f32.mrb[28].mxu0 }
 0x215   : > { %v5475_v15 = vadd.f32 %v5284_v54, %v5092_v23  ;;  %v4048_v21 = vpop.f32.mrb[29].mxu0 }
 0x216   : > { %v4253_v37 = vadd.f32 %v4252_v63, %v4222_v22  ;;  %v5481_v61 = vadd.f32 %v4048_v21, %v2423_v31  ;;  %v4185_v34 = vadd.f32 %v5463_v28, %v4184_v49  ;;  %v5285_v9 = vpop.f32.mrb[30].mxu0 }
 0x217   : > { %4125 = vst [vmem:[%s6706_s19 + $0xf0] sm:$0xff] %v5475_v15  ;;  %v5487_v53 = vadd.f32 %v5285_v9, %v5093_v47  ;;  %v4051_v43 = vpop.f32.mrb[31].mxu0  ;;  %v4226_v26 = vmul.f32 %v5475_v15, %v5475_v15 }
 0x218   : > { %4123 = vst [vmem:[%s6706_s19 + $0xe0] sm:$0xff] %v5481_v61  ;;  %v4186_v27 = vadd.f32 %v5481_v61, %v4185_v34  ;;  %v4224_v25 = vmul.f32 %v5481_v61, %v5481_v61  ;;  %v4254_v48 = vadd.f32 %v4253_v37, %v4223_v46  ;;  %v5493_v35 = vadd.f32 %v4051_v43, %v2426_v55 }
 0x219   : > { %4126 = vst [vmem:[%s6706_s19 + $0xf8] sm:$0xff] %v5487_v53  ;;  %v4227_v58 = vmul.f32 %v5487_v53, %v5487_v53 }
 0x21a   : > { %v4255_v38 = vadd.f32 %v4254_v48, %v4224_v25  ;;  %4124 = vst [vmem:[%s6706_s19 + $0xe8] sm:$0xff] %v5493_v35  ;;  %v4187_v29 = vadd.f32 %v5493_v35, %v4186_v27  ;;  %v4225_v11 = vmul.f32 %v5493_v35, %v5493_v35 }
 0x21c   : > { %v4188_v18 = vadd.f32 %v5475_v15, %v4187_v29  ;;  %v4256_v20 = vadd.f32 %v4255_v38, %v4225_v11 }
 0x21e   : > { %v4189_v16 = vadd.f32 %v5487_v53, %v4188_v18  ;;  %v4257_v56 = vadd.f32 %v4256_v20, %v4226_v26 }
 0x220   : > { %v4190_v62 = vrot.slane %v4189_v16, 4  ;;  %v4258_v41 = vadd.f32 %v4257_v56, %v4227_v58 }
 0x222   : > { %v4191_v13 = vadd.f32 %v4190_v62, %v4189_v16  ;;  %v4259_v17 = vrot.slane %v4258_v41, 4 }
 0x224   : > { %v4192_v60 = vrot.slane %v4191_v13, 2  ;;  %v4260_v52 = vadd.f32 %v4259_v17, %v4258_v41 }
 0x226   : > { %v4193_v39 = vadd.f32 %v4192_v60, %v4191_v13  ;;  %v4261_v59 = vrot.slane %v4260_v52, 2 }
 0x228   : > { %v4194_v0 = vrot.slane %v4193_v39, 1  ;;  %v4262_v36 = vadd.f32 %v4261_v59, %v4260_v52 }
 0x22a   : > { %v4263_v40 = vrot.slane %v4262_v36, 1  ;;  %v4195_v14 = vadd.f32 %v4194_v0, %v4193_v39 }
 0x22c   : > { %v4264_v6 = vadd.f32 %v4263_v40, %v4262_v36 }
 0x22e   : > { %v4266_v8 = vsel %vm4265_vm6, %v4195_v14, %v4264_v6 }
 0x22f   : > { %4267 = vst [vmem:[%s182_s22] sm:$0x3] %v4266_v8 }
 0x230 PF: > { %s14_s12 = sadd.s32 1, %s5846_s12  }
 0x231   : > { %p11_p5 = scmp.ge.s32.totalorder %s14_s12, 4  }
 0x233   :  { %13 = sbr.rel (!%p11_p5) target bundleno = 1 (0x1), region = 78 }

</bundles_post_ra>
